<compile_context>
chip_gen: v7x
topology: tpu7x:2x2x1
jax: 0.10.0
libtpu: 0.0.40
codegen_flags: <defaults>
</compile_context>

<pallas_src>
import functools

import numpy as np
import jax
import jax.numpy as jnp
from jax.experimental import pallas as pl
from jax.experimental.pallas import tpu as pltpu


def _elu(x):
    # ELU(alpha=1): x for x > 0, exp(x) - 1 otherwise (exp runs on the EUP slot).
    return jnp.where(x > 0, x, jnp.exp(jnp.minimum(x, 0.0)) - 1.0)


def _sel_matrices(hi, wi):
    """0/1 gather matrices for a 4x4 / stride-2 / pad-1 conv on an (hi, wi) map.

    g[t, i*wo + j, r*wi + q] == 1 iff tap t = a*4 + b of output (i, j) reads input
    (r, q) = (2i + a - 1, 2j + b - 1).  Out-of-range taps (the zero padding) are
    all-zero rows, so padding is handled for free by the matmul.
    """
    ho, wo = hi // 2, wi // 2
    g = np.zeros((16, ho * wo, hi * wi), np.float32)
    for a in range(4):
        for b in range(4):
            t = a * 4 + b
            for i in range(ho):
                r = 2 * i + a - 1
                if not (0 <= r < hi):
                    continue
                for j in range(wo):
                    q = 2 * j + b - 1
                    if not (0 <= q < wi):
                        continue
                    g[t, i * wo + j, r * wi + q] = 1.0
    return jnp.asarray(g, jnp.bfloat16)


# --------------------------------- fused kernel --------------------------------- #
def _gathered_conv(a, g_ref, w_ref, t_ref):
    """One Conv(4x4, s=2, p=1) + BN-shift + ELU layer, fully in VMEM.

    im2col is assembled with 16 exact 0/1 selection matmuls (MXU is idle anyway,
    and this avoids strided / sublane-misaligned loads), then contracted with a
    single fat K = 16*C dot.  BN scale is already folded into w_ref.
    """
    cols = [
        jnp.dot(g_ref[t], a, preferred_element_type=jnp.float32).astype(jnp.bfloat16)
        for t in range(16)
    ]
    im = jnp.concatenate(cols, axis=-1)                  # (M_out, 16*C), lane-dense
    z = jnp.dot(im, w_ref[...], preferred_element_type=jnp.float32)
    return _elu(z + t_ref[...]).astype(jnp.bfloat16)


def _make_encoder_kernel(with_fc, n_pos3, feat):
    def kernel(p1_ref, w1_ref, t1_ref, g2_ref, w2_ref, t2_ref,
               g3_ref, w3_ref, t3_ref, w4_ref, t4_ref, *rest):
        if with_fc:
            wf_ref, bf_ref, o_ref = rest
        else:
            (o_ref,) = rest

        # ---- layer 1: single K=48 dot on the wrapper-built im2col -------------
        z1 = jnp.dot(p1_ref[0], w1_ref[...], preferred_element_type=jnp.float32)
        a1 = _elu(z1 + t1_ref[...]).astype(jnp.bfloat16)          # (256, feat)

        # ---- layers 2 & 3: in-VMEM im2col + one fat dot each -------------------
        a2 = _gathered_conv(a1, g2_ref, w2_ref, t2_ref)           # (64, feat)
        a3 = _gathered_conv(a2, g3_ref, w3_ref, t3_ref)           # (16, feat)

        # ---- layer 4: 4x4 VALID conv on the 4x4 map == full contraction --------
        # 16 accumulated M=1 dots avoid a sublane->lane relayout (flatten) of a3.
        acc = jnp.zeros((1, feat), jnp.float32)
        for p in range(n_pos3):
            acc = acc + jnp.dot(a3[p:p + 1, :],
                                w4_ref[p * feat:(p + 1) * feat, :],
                                preferred_element_type=jnp.float32)
        h = _elu(acc + t4_ref[...])                               # (1, feat)

        if with_fc:                                               # Flatten + Linear + ELU
            y = jnp.dot(h.astype(jnp.bfloat16), wf_ref[...],
                        preferred_element_type=jnp.float32) + bf_ref[...]
            h = _elu(y)
        o_ref[0] = h.astype(o_ref.dtype)

    return kernel


# ---------------------------------- module glue ---------------------------------- #
def encoder_forward(params, x_nchw):
    """Pallas forward of Encoder.  x_nchw: (N, 3, 32, 32) as implied by the PyTorch
    module (Conv(4x4, valid) after three stride-2 convs: 32 -> 16 -> 8 -> 4 -> 1)."""
    n, cin, h, w = x_nchw.shape
    assert h == w and h // 8 == 4, "Encoder expects 32x32 spatial inputs"
    feat = params["w1"].shape[-1]
    with_fc = "wf" in params
    out_dim = params["wf"].shape[-1] if with_fc else feat

    # ---- wrapper-side prep: tiny one-time layout + weight folding (~100 KB) ----
    x = jnp.transpose(x_nchw, (0, 2, 3, 1)).astype(jnp.float32)       # NHWC
    ho = h // 2
    xp = jnp.pad(x, ((0, 0), (1, 1), (1, 1), (0, 0)))
    # full 4x4 im2col for layer 1 -> single K = 16*cin dot inside the kernel
    p1 = jnp.concatenate(
        [xp[:, a:a + 2 * ho:2, b:b + 2 * ho:2, :] for a in range(4) for b in range(4)],
        axis=-1).reshape(n, ho * ho, 16 * cin).astype(jnp.bfloat16)

    def fold(k):  # fold BN scale into the conv weight; bf16 for the MXU
        return (params[f"w{k}"] * params[f"s{k}"]).reshape(-1, feat).astype(jnp.bfloat16)

    w1r, w2r, w3r, w4r = fold(1), fold(2), fold(3), fold(4)
    t1, t2, t3, t4 = (params[f"t{k}"].reshape(1, feat) for k in range(1, 5))
    g2 = _sel_matrices(h // 2, h // 2)          # (16, 64, 256) bf16, exact 0/1
    g3 = _sel_matrices(h // 4, h // 4)          # (16, 16,  64) bf16, exact 0/1

    def full_spec(arr):
        nd = arr.ndim
        return pl.BlockSpec(arr.shape, lambda i: (0,) * nd)

    in_specs = [
        pl.BlockSpec((1, ho * ho, 16 * cin), lambda i: (i, 0, 0)),    # per-batch patches
        full_spec(w1r), full_spec(t1),
        full_spec(g2), full_spec(w2r), full_spec(t2),
        full_spec(g3), full_spec(w3r), full_spec(t3),
        full_spec(w4r), full_spec(t4),
    ]
    args = [p1, w1r, t1, g2, w2r, t2, g3, w3r, t3, w4r, t4]
    if with_fc:
        wf = params["wf"].astype(jnp.bfloat16)
        bf = params["bf"].reshape(1, out_dim).astype(jnp.float32)
        in_specs += [full_spec(wf), full_spec(bf)]
        args += [wf, bf]

    kernel = _make_encoder_kernel(with_fc, (h // 8) * (h // 8), feat)
    out = pl.pallas_call(
        kernel,
        out_shape=jax.ShapeDtypeStruct((n, 1, out_dim), jnp.float32),
        grid=(n,),
        in_specs=in_specs,
        out_specs=pl.BlockSpec((1, 1, out_dim), lambda i: (i, 0, 0)),
        compiler_params=pltpu.CompilerParams(dimension_semantics=("parallel",)),
    )(*args)
    return out.reshape(n, out_dim)


def encoder_reference(params, x_nchw, *, match_kernel_precision):
    """Pure-XLA reference.  match_kernel_precision=True applies the same bf16
    operand rounding as the Pallas kernel (folded-scale weights, bf16 matmul
    inputs, f32 accumulation/epilogue) so the comparison is tight; False is the
    straight f32 module math (loose sanity check)."""
    x = jnp.transpose(x_nchw, (0, 2, 3, 1)).astype(jnp.float32)
    for k, (stride, pad) in enumerate([(2, 1), (2, 1), (2, 1), (1, 0)], start=1):
        wgt = params[f"w{k}"] * params[f"s{k}"]
        if match_kernel_precision:
            lhs, rhs, prec = x.astype(jnp.bfloat16), wgt.astype(jnp.bfloat16), None
        else:
            lhs, rhs, prec = x, wgt, jax.lax.Precision.HIGHEST
        z = jax.lax.conv_general_dilated(
            lhs, rhs, window_strides=(stride, stride),
            padding=[(pad, pad), (pad, pad)],
            dimension_numbers=("NHWC", "HWIO", "NHWC"),
            preferred_element_type=jnp.float32, precision=prec)
        x = _elu(z + params[f"t{k}"])
    x = x.reshape(x.shape[0], -1)
    if "wf" in params:
        if match_kernel_precision:
            z = jnp.dot(x.astype(jnp.bfloat16), params["wf"].astype(jnp.bfloat16),
                        preferred_element_type=jnp.float32)
        else:
            z = jnp.dot(x, params["wf"], precision=jax.lax.Precision.HIGHEST)
        x = _elu(z + params["bf"])
    return x


def init_params(key, feat_size=64, output_size=None):
    ks = jax.random.split(key, 10)

    def uniform(k, shape, fan_in):
        bound = 1.0 / jnp.sqrt(jnp.float32(fan_in))
        return jax.random.uniform(k, shape, jnp.float32, -bound, bound)

    def folded_bn(k, c, eps=1e-5):
        # inference-mode BatchNorm folded to per-channel scale/shift
        # TODO(synk): training-mode batch statistics are not computed.
        k1, k2, k3, k4 = jax.random.split(k, 4)
        gamma = jax.random.uniform(k1, (c,), jnp.float32, 0.8, 1.2)
        beta = jax.random.uniform(k2, (c,), jnp.float32, -0.1, 0.1)
        mean = jax.random.uniform(k3, (c,), jnp.float32, -0.1, 0.1)
        var = jax.random.uniform(k4, (c,), jnp.float32, 0.5, 1.5)
        scale = gamma / jnp.sqrt(var + eps)
        return scale, beta - mean * scale

    params = {}
    cin = 3
    for i in range(1, 5):
        params[f"w{i}"] = uniform(ks[2 * (i - 1)], (4, 4, cin, feat_size), 4 * 4 * cin)
        params[f"s{i}"], params[f"t{i}"] = folded_bn(ks[2 * (i - 1) + 1], feat_size)
        cin = feat_size
    if output_size is not None:
        params["wf"] = uniform(ks[8], (feat_size, output_size), feat_size)
        params["bf"] = uniform(ks[9], (output_size,), feat_size)
    return params


if __name__ == "__main__":
    key = jax.random.PRNGKey(0)
    pkey, xkey = jax.random.split(key)
    feat_size, output_size = 64, 32
    params = init_params(pkey, feat_size=feat_size, output_size=output_size)

    x = jax.random.normal(xkey, (2, 3, 32, 32), jnp.float32)

    y = jax.block_until_ready(jax.jit(encoder_forward)(params, x))
    assert y.shape == (2, output_size), y.shape
    assert bool(jnp.all(jnp.isfinite(y)))

    # tight check vs. an XLA reference with matched MXU (bf16-operand) precision
    y_ref = jax.block_until_ready(
        jax.jit(functools.partial(encoder_reference, match_kernel_precision=True))(params, x))
    assert bool(jnp.allclose(y, y_ref, rtol=2e-3, atol=2e-3)), \
        float(jnp.max(jnp.abs(y - y_ref)))

    # loose sanity check vs. the full-f32 module math
    y_f32 = jax.block_until_ready(
        jax.jit(functools.partial(encoder_reference, match_kernel_precision=False))(params, x))
    assert bool(jnp.allclose(y, y_f32, rtol=1e-1, atol=1e-1)), \
        float(jnp.max(jnp.abs(y - y_f32)))

    print("KERNEL_OK")
</pallas_src>

<mosaic_0001>
module attributes {stable_mosaic.version = 11 : i64} {
  func.func @kernel(%arg0: i32, %arg1: memref<1x256x48xbf16, #tpu.memory_space<vmem>>, %arg2: memref<48x64xbf16, #tpu.memory_space<vmem>>, %arg3: memref<1x64xf32, #tpu.memory_space<vmem>>, %arg4: memref<16x64x256xbf16, #tpu.memory_space<vmem>>, %arg5: memref<1024x64xbf16, #tpu.memory_space<vmem>>, %arg6: memref<1x64xf32, #tpu.memory_space<vmem>>, %arg7: memref<16x16x64xbf16, #tpu.memory_space<vmem>>, %arg8: memref<1024x64xbf16, #tpu.memory_space<vmem>>, %arg9: memref<1x64xf32, #tpu.memory_space<vmem>>, %arg10: memref<1024x64xbf16, #tpu.memory_space<vmem>>, %arg11: memref<1x64xf32, #tpu.memory_space<vmem>>, %arg12: memref<64x32xbf16, #tpu.memory_space<vmem>>, %arg13: memref<1x32xf32, #tpu.memory_space<vmem>>, %arg14: memref<1x1x32xf32, #tpu.memory_space<vmem>>) attributes {dimension_semantics = [#tpu.dimension_semantics<parallel>], iteration_bounds = array<i64: 2>, scalar_prefetch = 0 : i64, scratch_operands = 0 : i64, tpu.core_type = #tpu.core_type<tc>, window_params = [{transform_indices = @transform_0, window_bounds = array<i64: 1, 256, 48>}, {pipeline_mode = #tpu.pipeline_mode<synchronous>, transform_indices = @transform_1, window_bounds = array<i64: 48, 64>}, {pipeline_mode = #tpu.pipeline_mode<synchronous>, transform_indices = @transform_2, window_bounds = array<i64: 1, 64>}, {pipeline_mode = #tpu.pipeline_mode<synchronous>, transform_indices = @transform_3, window_bounds = array<i64: 16, 64, 256>}, {pipeline_mode = #tpu.pipeline_mode<synchronous>, transform_indices = @transform_4, window_bounds = array<i64: 1024, 64>}, {pipeline_mode = #tpu.pipeline_mode<synchronous>, transform_indices = @transform_5, window_bounds = array<i64: 1, 64>}, {pipeline_mode = #tpu.pipeline_mode<synchronous>, transform_indices = @transform_6, window_bounds = array<i64: 16, 16, 64>}, {pipeline_mode = #tpu.pipeline_mode<synchronous>, transform_indices = @transform_7, window_bounds = array<i64: 1024, 64>}, {pipeline_mode = #tpu.pipeline_mode<synchronous>, transform_indices = @transform_8, window_bounds = array<i64: 1, 64>}, {pipeline_mode = #tpu.pipeline_mode<synchronous>, transform_indices = @transform_9, window_bounds = array<i64: 1024, 64>}, {pipeline_mode = #tpu.pipeline_mode<synchronous>, transform_indices = @transform_10, window_bounds = array<i64: 1, 64>}, {pipeline_mode = #tpu.pipeline_mode<synchronous>, transform_indices = @transform_11, window_bounds = array<i64: 64, 32>}, {pipeline_mode = #tpu.pipeline_mode<synchronous>, transform_indices = @transform_12, window_bounds = array<i64: 1, 32>}, {transform_indices = @transform_13, window_bounds = array<i64: 1, 1, 32>}]} {
    %c0 = arith.constant 0 : index
    %c0_0 = arith.constant 0 : index
    %c0_1 = arith.constant 0 : index
    %0 = vector.load %arg1[%c0, %c0_0, %c0_1] : memref<1x256x48xbf16, #tpu.memory_space<vmem>>, vector<1x256x48xbf16>
    %1 = vector.shape_cast %0 : vector<1x256x48xbf16> to vector<256x48xbf16>
    %c0_2 = arith.constant 0 : index
    %c0_3 = arith.constant 0 : index
    %2 = vector.load %arg2[%c0_2, %c0_3] : memref<48x64xbf16, #tpu.memory_space<vmem>>, vector<48x64xbf16>
    %cst = arith.constant dense<0.000000e+00> : vector<256x64xf32>
    %3 = tpu.matmul %1, %2, %cst {dimension_numbers = #tpu.dot_dimension_numbers<[1], [0], [0], [1], [0, 0, 1, 1], [], []>} : vector<256x48xbf16>, vector<48x64xbf16>, vector<256x64xf32> -> vector<256x64xf32>
    %c0_4 = arith.constant 0 : index
    %c0_5 = arith.constant 0 : index
    %4 = vector.load %arg3[%c0_4, %c0_5] : memref<1x64xf32, #tpu.memory_space<vmem>>, vector<1x64xf32>
    %5 = vector.broadcast %4 : vector<1x64xf32> to vector<256x64xf32>
    %6 = arith.addf %3, %5 : vector<256x64xf32>
    %cst_6 = arith.constant 0.000000e+00 : f32
    %7 = vector.broadcast %cst_6 : f32 to vector<256x64xf32>
    %8 = arith.cmpf ogt, %6, %7 : vector<256x64xf32>
    %cst_7 = arith.constant 0.000000e+00 : f32
    %9 = vector.broadcast %cst_7 : f32 to vector<256x64xf32>
    %10 = arith.minimumf %6, %9 : vector<256x64xf32>
    %11 = math.exp %10 : vector<256x64xf32>
    %cst_8 = arith.constant 1.000000e+00 : f32
    %12 = vector.broadcast %cst_8 : f32 to vector<256x64xf32>
    %13 = arith.subf %11, %12 : vector<256x64xf32>
    %14 = arith.select %8, %6, %13 : vector<256x64xi1>, vector<256x64xf32>
    %15 = arith.truncf %14 : vector<256x64xf32> to vector<256x64xbf16>
    %c0_9 = arith.constant 0 : index
    %c0_10 = arith.constant 0 : index
    %c0_11 = arith.constant 0 : index
    %16 = vector.load %arg4[%c0_9, %c0_10, %c0_11] : memref<16x64x256xbf16, #tpu.memory_space<vmem>>, vector<1x64x256xbf16>
    %17 = vector.shape_cast %16 : vector<1x64x256xbf16> to vector<64x256xbf16>
    %cst_12 = arith.constant dense<0.000000e+00> : vector<64x64xf32>
    %18 = tpu.matmul %17, %15, %cst_12 {dimension_numbers = #tpu.dot_dimension_numbers<[1], [0], [0], [1], [0, 0, 1, 1], [], []>} : vector<64x256xbf16>, vector<256x64xbf16>, vector<64x64xf32> -> vector<64x64xf32>
    %19 = arith.truncf %18 : vector<64x64xf32> to vector<64x64xbf16>
    %c1 = arith.constant 1 : index
    %c0_13 = arith.constant 0 : index
    %c0_14 = arith.constant 0 : index
    %20 = vector.load %arg4[%c1, %c0_13, %c0_14] : memref<16x64x256xbf16, #tpu.memory_space<vmem>>, vector<1x64x256xbf16>
    %21 = vector.shape_cast %20 : vector<1x64x256xbf16> to vector<64x256xbf16>
    %cst_15 = arith.constant dense<0.000000e+00> : vector<64x64xf32>
    %22 = tpu.matmul %21, %15, %cst_15 {dimension_numbers = #tpu.dot_dimension_numbers<[1], [0], [0], [1], [0, 0, 1, 1], [], []>} : vector<64x256xbf16>, vector<256x64xbf16>, vector<64x64xf32> -> vector<64x64xf32>
    %23 = arith.truncf %22 : vector<64x64xf32> to vector<64x64xbf16>
    %c2 = arith.constant 2 : index
    %c0_16 = arith.constant 0 : index
    %c0_17 = arith.constant 0 : index
    %24 = vector.load %arg4[%c2, %c0_16, %c0_17] : memref<16x64x256xbf16, #tpu.memory_space<vmem>>, vector<1x64x256xbf16>
    %25 = vector.shape_cast %24 : vector<1x64x256xbf16> to vector<64x256xbf16>
    %cst_18 = arith.constant dense<0.000000e+00> : vector<64x64xf32>
    %26 = tpu.matmul %25, %15, %cst_18 {dimension_numbers = #tpu.dot_dimension_numbers<[1], [0], [0], [1], [0, 0, 1, 1], [], []>} : vector<64x256xbf16>, vector<256x64xbf16>, vector<64x64xf32> -> vector<64x64xf32>
    %27 = arith.truncf %26 : vector<64x64xf32> to vector<64x64xbf16>
    %c3 = arith.constant 3 : index
    %c0_19 = arith.constant 0 : index
    %c0_20 = arith.constant 0 : index
    %28 = vector.load %arg4[%c3, %c0_19, %c0_20] : memref<16x64x256xbf16, #tpu.memory_space<vmem>>, vector<1x64x256xbf16>
    %29 = vector.shape_cast %28 : vector<1x64x256xbf16> to vector<64x256xbf16>
    %cst_21 = arith.constant dense<0.000000e+00> : vector<64x64xf32>
    %30 = tpu.matmul %29, %15, %cst_21 {dimension_numbers = #tpu.dot_dimension_numbers<[1], [0], [0], [1], [0, 0, 1, 1], [], []>} : vector<64x256xbf16>, vector<256x64xbf16>, vector<64x64xf32> -> vector<64x64xf32>
    %31 = arith.truncf %30 : vector<64x64xf32> to vector<64x64xbf16>
    %c4 = arith.constant 4 : index
    %c0_22 = arith.constant 0 : index
    %c0_23 = arith.constant 0 : index
    %32 = vector.load %arg4[%c4, %c0_22, %c0_23] : memref<16x64x256xbf16, #tpu.memory_space<vmem>>, vector<1x64x256xbf16>
    %33 = vector.shape_cast %32 : vector<1x64x256xbf16> to vector<64x256xbf16>
    %cst_24 = arith.constant dense<0.000000e+00> : vector<64x64xf32>
    %34 = tpu.matmul %33, %15, %cst_24 {dimension_numbers = #tpu.dot_dimension_numbers<[1], [0], [0], [1], [0, 0, 1, 1], [], []>} : vector<64x256xbf16>, vector<256x64xbf16>, vector<64x64xf32> -> vector<64x64xf32>
    %35 = arith.truncf %34 : vector<64x64xf32> to vector<64x64xbf16>
    %c5 = arith.constant 5 : index
    %c0_25 = arith.constant 0 : index
    %c0_26 = arith.constant 0 : index
    %36 = vector.load %arg4[%c5, %c0_25, %c0_26] : memref<16x64x256xbf16, #tpu.memory_space<vmem>>, vector<1x64x256xbf16>
    %37 = vector.shape_cast %36 : vector<1x64x256xbf16> to vector<64x256xbf16>
    %cst_27 = arith.constant dense<0.000000e+00> : vector<64x64xf32>
    %38 = tpu.matmul %37, %15, %cst_27 {dimension_numbers = #tpu.dot_dimension_numbers<[1], [0], [0], [1], [0, 0, 1, 1], [], []>} : vector<64x256xbf16>, vector<256x64xbf16>, vector<64x64xf32> -> vector<64x64xf32>
    %39 = arith.truncf %38 : vector<64x64xf32> to vector<64x64xbf16>
    %c6 = arith.constant 6 : index
    %c0_28 = arith.constant 0 : index
    %c0_29 = arith.constant 0 : index
    %40 = vector.load %arg4[%c6, %c0_28, %c0_29] : memref<16x64x256xbf16, #tpu.memory_space<vmem>>, vector<1x64x256xbf16>
    %41 = vector.shape_cast %40 : vector<1x64x256xbf16> to vector<64x256xbf16>
    %cst_30 = arith.constant dense<0.000000e+00> : vector<64x64xf32>
    %42 = tpu.matmul %41, %15, %cst_30 {dimension_numbers = #tpu.dot_dimension_numbers<[1], [0], [0], [1], [0, 0, 1, 1], [], []>} : vector<64x256xbf16>, vector<256x64xbf16>, vector<64x64xf32> -> vector<64x64xf32>
    %43 = arith.truncf %42 : vector<64x64xf32> to vector<64x64xbf16>
    %c7 = arith.constant 7 : index
    %c0_31 = arith.constant 0 : index
    %c0_32 = arith.constant 0 : index
    %44 = vector.load %arg4[%c7, %c0_31, %c0_32] : memref<16x64x256xbf16, #tpu.memory_space<vmem>>, vector<1x64x256xbf16>
    %45 = vector.shape_cast %44 : vector<1x64x256xbf16> to vector<64x256xbf16>
    %cst_33 = arith.constant dense<0.000000e+00> : vector<64x64xf32>
    %46 = tpu.matmul %45, %15, %cst_33 {dimension_numbers = #tpu.dot_dimension_numbers<[1], [0], [0], [1], [0, 0, 1, 1], [], []>} : vector<64x256xbf16>, vector<256x64xbf16>, vector<64x64xf32> -> vector<64x64xf32>
    %47 = arith.truncf %46 : vector<64x64xf32> to vector<64x64xbf16>
    %c8 = arith.constant 8 : index
    %c0_34 = arith.constant 0 : index
    %c0_35 = arith.constant 0 : index
    %48 = vector.load %arg4[%c8, %c0_34, %c0_35] : memref<16x64x256xbf16, #tpu.memory_space<vmem>>, vector<1x64x256xbf16>
    %49 = vector.shape_cast %48 : vector<1x64x256xbf16> to vector<64x256xbf16>
    %cst_36 = arith.constant dense<0.000000e+00> : vector<64x64xf32>
    %50 = tpu.matmul %49, %15, %cst_36 {dimension_numbers = #tpu.dot_dimension_numbers<[1], [0], [0], [1], [0, 0, 1, 1], [], []>} : vector<64x256xbf16>, vector<256x64xbf16>, vector<64x64xf32> -> vector<64x64xf32>
    %51 = arith.truncf %50 : vector<64x64xf32> to vector<64x64xbf16>
    %c9 = arith.constant 9 : index
    %c0_37 = arith.constant 0 : index
    %c0_38 = arith.constant 0 : index
    %52 = vector.load %arg4[%c9, %c0_37, %c0_38] : memref<16x64x256xbf16, #tpu.memory_space<vmem>>, vector<1x64x256xbf16>
    %53 = vector.shape_cast %52 : vector<1x64x256xbf16> to vector<64x256xbf16>
    %cst_39 = arith.constant dense<0.000000e+00> : vector<64x64xf32>
    %54 = tpu.matmul %53, %15, %cst_39 {dimension_numbers = #tpu.dot_dimension_numbers<[1], [0], [0], [1], [0, 0, 1, 1], [], []>} : vector<64x256xbf16>, vector<256x64xbf16>, vector<64x64xf32> -> vector<64x64xf32>
    %55 = arith.truncf %54 : vector<64x64xf32> to vector<64x64xbf16>
    %c10 = arith.constant 10 : index
    %c0_40 = arith.constant 0 : index
    %c0_41 = arith.constant 0 : index
    %56 = vector.load %arg4[%c10, %c0_40, %c0_41] : memref<16x64x256xbf16, #tpu.memory_space<vmem>>, vector<1x64x256xbf16>
    %57 = vector.shape_cast %56 : vector<1x64x256xbf16> to vector<64x256xbf16>
    %cst_42 = arith.constant dense<0.000000e+00> : vector<64x64xf32>
    %58 = tpu.matmul %57, %15, %cst_42 {dimension_numbers = #tpu.dot_dimension_numbers<[1], [0], [0], [1], [0, 0, 1, 1], [], []>} : vector<64x256xbf16>, vector<256x64xbf16>, vector<64x64xf32> -> vector<64x64xf32>
    %59 = arith.truncf %58 : vector<64x64xf32> to vector<64x64xbf16>
    %c11 = arith.constant 11 : index
    %c0_43 = arith.constant 0 : index
    %c0_44 = arith.constant 0 : index
    %60 = vector.load %arg4[%c11, %c0_43, %c0_44] : memref<16x64x256xbf16, #tpu.memory_space<vmem>>, vector<1x64x256xbf16>
    %61 = vector.shape_cast %60 : vector<1x64x256xbf16> to vector<64x256xbf16>
    %cst_45 = arith.constant dense<0.000000e+00> : vector<64x64xf32>
    %62 = tpu.matmul %61, %15, %cst_45 {dimension_numbers = #tpu.dot_dimension_numbers<[1], [0], [0], [1], [0, 0, 1, 1], [], []>} : vector<64x256xbf16>, vector<256x64xbf16>, vector<64x64xf32> -> vector<64x64xf32>
    %63 = arith.truncf %62 : vector<64x64xf32> to vector<64x64xbf16>
    %c12 = arith.constant 12 : index
    %c0_46 = arith.constant 0 : index
    %c0_47 = arith.constant 0 : index
    %64 = vector.load %arg4[%c12, %c0_46, %c0_47] : memref<16x64x256xbf16, #tpu.memory_space<vmem>>, vector<1x64x256xbf16>
    %65 = vector.shape_cast %64 : vector<1x64x256xbf16> to vector<64x256xbf16>
    %cst_48 = arith.constant dense<0.000000e+00> : vector<64x64xf32>
    %66 = tpu.matmul %65, %15, %cst_48 {dimension_numbers = #tpu.dot_dimension_numbers<[1], [0], [0], [1], [0, 0, 1, 1], [], []>} : vector<64x256xbf16>, vector<256x64xbf16>, vector<64x64xf32> -> vector<64x64xf32>
    %67 = arith.truncf %66 : vector<64x64xf32> to vector<64x64xbf16>
    %c13 = arith.constant 13 : index
    %c0_49 = arith.constant 0 : index
    %c0_50 = arith.constant 0 : index
    %68 = vector.load %arg4[%c13, %c0_49, %c0_50] : memref<16x64x256xbf16, #tpu.memory_space<vmem>>, vector<1x64x256xbf16>
    %69 = vector.shape_cast %68 : vector<1x64x256xbf16> to vector<64x256xbf16>
    %cst_51 = arith.constant dense<0.000000e+00> : vector<64x64xf32>
    %70 = tpu.matmul %69, %15, %cst_51 {dimension_numbers = #tpu.dot_dimension_numbers<[1], [0], [0], [1], [0, 0, 1, 1], [], []>} : vector<64x256xbf16>, vector<256x64xbf16>, vector<64x64xf32> -> vector<64x64xf32>
    %71 = arith.truncf %70 : vector<64x64xf32> to vector<64x64xbf16>
    %c14 = arith.constant 14 : index
    %c0_52 = arith.constant 0 : index
    %c0_53 = arith.constant 0 : index
    %72 = vector.load %arg4[%c14, %c0_52, %c0_53] : memref<16x64x256xbf16, #tpu.memory_space<vmem>>, vector<1x64x256xbf16>
    %73 = vector.shape_cast %72 : vector<1x64x256xbf16> to vector<64x256xbf16>
    %cst_54 = arith.constant dense<0.000000e+00> : vector<64x64xf32>
    %74 = tpu.matmul %73, %15, %cst_54 {dimension_numbers = #tpu.dot_dimension_numbers<[1], [0], [0], [1], [0, 0, 1, 1], [], []>} : vector<64x256xbf16>, vector<256x64xbf16>, vector<64x64xf32> -> vector<64x64xf32>
    %75 = arith.truncf %74 : vector<64x64xf32> to vector<64x64xbf16>
    %c15 = arith.constant 15 : index
    %c0_55 = arith.constant 0 : index
    %c0_56 = arith.constant 0 : index
    %76 = vector.load %arg4[%c15, %c0_55, %c0_56] : memref<16x64x256xbf16, #tpu.memory_space<vmem>>, vector<1x64x256xbf16>
    %77 = vector.shape_cast %76 : vector<1x64x256xbf16> to vector<64x256xbf16>
    %cst_57 = arith.constant dense<0.000000e+00> : vector<64x64xf32>
    %78 = tpu.matmul %77, %15, %cst_57 {dimension_numbers = #tpu.dot_dimension_numbers<[1], [0], [0], [1], [0, 0, 1, 1], [], []>} : vector<64x256xbf16>, vector<256x64xbf16>, vector<64x64xf32> -> vector<64x64xf32>
    %79 = arith.truncf %78 : vector<64x64xf32> to vector<64x64xbf16>
    %80 = tpu.concatenate %19, %23, %27, %31, %35, %39, %43, %47, %51, %55, %59, %63, %67, %71, %75, %79 in 1 : vector<64x64xbf16>, vector<64x64xbf16>, vector<64x64xbf16>, vector<64x64xbf16>, vector<64x64xbf16>, vector<64x64xbf16>, vector<64x64xbf16>, vector<64x64xbf16>, vector<64x64xbf16>, vector<64x64xbf16>, vector<64x64xbf16>, vector<64x64xbf16>, vector<64x64xbf16>, vector<64x64xbf16>, vector<64x64xbf16>, vector<64x64xbf16> -> vector<64x1024xbf16>
    %c0_58 = arith.constant 0 : index
    %c0_59 = arith.constant 0 : index
    %81 = vector.load %arg5[%c0_58, %c0_59] : memref<1024x64xbf16, #tpu.memory_space<vmem>>, vector<1024x64xbf16>
    %cst_60 = arith.constant dense<0.000000e+00> : vector<64x64xf32>
    %82 = tpu.matmul %80, %81, %cst_60 {dimension_numbers = #tpu.dot_dimension_numbers<[1], [0], [0], [1], [0, 0, 1, 1], [], []>} : vector<64x1024xbf16>, vector<1024x64xbf16>, vector<64x64xf32> -> vector<64x64xf32>
    %c0_61 = arith.constant 0 : index
    %c0_62 = arith.constant 0 : index
    %83 = vector.load %arg6[%c0_61, %c0_62] : memref<1x64xf32, #tpu.memory_space<vmem>>, vector<1x64xf32>
    %84 = vector.broadcast %83 : vector<1x64xf32> to vector<64x64xf32>
    %85 = arith.addf %82, %84 : vector<64x64xf32>
    %cst_63 = arith.constant 0.000000e+00 : f32
    %86 = vector.broadcast %cst_63 : f32 to vector<64x64xf32>
    %87 = arith.cmpf ogt, %85, %86 : vector<64x64xf32>
    %cst_64 = arith.constant 0.000000e+00 : f32
    %88 = vector.broadcast %cst_64 : f32 to vector<64x64xf32>
    %89 = arith.minimumf %85, %88 : vector<64x64xf32>
    %90 = math.exp %89 : vector<64x64xf32>
    %cst_65 = arith.constant 1.000000e+00 : f32
    %91 = vector.broadcast %cst_65 : f32 to vector<64x64xf32>
    %92 = arith.subf %90, %91 : vector<64x64xf32>
    %93 = arith.select %87, %85, %92 : vector<64x64xi1>, vector<64x64xf32>
    %94 = arith.truncf %93 : vector<64x64xf32> to vector<64x64xbf16>
    %c0_66 = arith.constant 0 : index
    %c0_67 = arith.constant 0 : index
    %c0_68 = arith.constant 0 : index
    %95 = vector.load %arg7[%c0_66, %c0_67, %c0_68] : memref<16x16x64xbf16, #tpu.memory_space<vmem>>, vector<1x16x64xbf16>
    %96 = vector.shape_cast %95 : vector<1x16x64xbf16> to vector<16x64xbf16>
    %cst_69 = arith.constant dense<0.000000e+00> : vector<16x64xf32>
    %97 = tpu.matmul %96, %94, %cst_69 {dimension_numbers = #tpu.dot_dimension_numbers<[1], [0], [0], [1], [0, 0, 1, 1], [], []>} : vector<16x64xbf16>, vector<64x64xbf16>, vector<16x64xf32> -> vector<16x64xf32>
    %98 = arith.truncf %97 : vector<16x64xf32> to vector<16x64xbf16>
    %c1_70 = arith.constant 1 : index
    %c0_71 = arith.constant 0 : index
    %c0_72 = arith.constant 0 : index
    %99 = vector.load %arg7[%c1_70, %c0_71, %c0_72] : memref<16x16x64xbf16, #tpu.memory_space<vmem>>, vector<1x16x64xbf16>
    %100 = vector.shape_cast %99 : vector<1x16x64xbf16> to vector<16x64xbf16>
    %cst_73 = arith.constant dense<0.000000e+00> : vector<16x64xf32>
    %101 = tpu.matmul %100, %94, %cst_73 {dimension_numbers = #tpu.dot_dimension_numbers<[1], [0], [0], [1], [0, 0, 1, 1], [], []>} : vector<16x64xbf16>, vector<64x64xbf16>, vector<16x64xf32> -> vector<16x64xf32>
    %102 = arith.truncf %101 : vector<16x64xf32> to vector<16x64xbf16>
    %c2_74 = arith.constant 2 : index
    %c0_75 = arith.constant 0 : index
    %c0_76 = arith.constant 0 : index
    %103 = vector.load %arg7[%c2_74, %c0_75, %c0_76] : memref<16x16x64xbf16, #tpu.memory_space<vmem>>, vector<1x16x64xbf16>
    %104 = vector.shape_cast %103 : vector<1x16x64xbf16> to vector<16x64xbf16>
    %cst_77 = arith.constant dense<0.000000e+00> : vector<16x64xf32>
    %105 = tpu.matmul %104, %94, %cst_77 {dimension_numbers = #tpu.dot_dimension_numbers<[1], [0], [0], [1], [0, 0, 1, 1], [], []>} : vector<16x64xbf16>, vector<64x64xbf16>, vector<16x64xf32> -> vector<16x64xf32>
    %106 = arith.truncf %105 : vector<16x64xf32> to vector<16x64xbf16>
    %c3_78 = arith.constant 3 : index
    %c0_79 = arith.constant 0 : index
    %c0_80 = arith.constant 0 : index
    %107 = vector.load %arg7[%c3_78, %c0_79, %c0_80] : memref<16x16x64xbf16, #tpu.memory_space<vmem>>, vector<1x16x64xbf16>
    %108 = vector.shape_cast %107 : vector<1x16x64xbf16> to vector<16x64xbf16>
    %cst_81 = arith.constant dense<0.000000e+00> : vector<16x64xf32>
    %109 = tpu.matmul %108, %94, %cst_81 {dimension_numbers = #tpu.dot_dimension_numbers<[1], [0], [0], [1], [0, 0, 1, 1], [], []>} : vector<16x64xbf16>, vector<64x64xbf16>, vector<16x64xf32> -> vector<16x64xf32>
    %110 = arith.truncf %109 : vector<16x64xf32> to vector<16x64xbf16>
    %c4_82 = arith.constant 4 : index
    %c0_83 = arith.constant 0 : index
    %c0_84 = arith.constant 0 : index
    %111 = vector.load %arg7[%c4_82, %c0_83, %c0_84] : memref<16x16x64xbf16, #tpu.memory_space<vmem>>, vector<1x16x64xbf16>
    %112 = vector.shape_cast %111 : vector<1x16x64xbf16> to vector<16x64xbf16>
    %cst_85 = arith.constant dense<0.000000e+00> : vector<16x64xf32>
    %113 = tpu.matmul %112, %94, %cst_85 {dimension_numbers = #tpu.dot_dimension_numbers<[1], [0], [0], [1], [0, 0, 1, 1], [], []>} : vector<16x64xbf16>, vector<64x64xbf16>, vector<16x64xf32> -> vector<16x64xf32>
    %114 = arith.truncf %113 : vector<16x64xf32> to vector<16x64xbf16>
    %c5_86 = arith.constant 5 : index
    %c0_87 = arith.constant 0 : index
    %c0_88 = arith.constant 0 : index
    %115 = vector.load %arg7[%c5_86, %c0_87, %c0_88] : memref<16x16x64xbf16, #tpu.memory_space<vmem>>, vector<1x16x64xbf16>
    %116 = vector.shape_cast %115 : vector<1x16x64xbf16> to vector<16x64xbf16>
    %cst_89 = arith.constant dense<0.000000e+00> : vector<16x64xf32>
    %117 = tpu.matmul %116, %94, %cst_89 {dimension_numbers = #tpu.dot_dimension_numbers<[1], [0], [0], [1], [0, 0, 1, 1], [], []>} : vector<16x64xbf16>, vector<64x64xbf16>, vector<16x64xf32> -> vector<16x64xf32>
    %118 = arith.truncf %117 : vector<16x64xf32> to vector<16x64xbf16>
    %c6_90 = arith.constant 6 : index
    %c0_91 = arith.constant 0 : index
    %c0_92 = arith.constant 0 : index
    %119 = vector.load %arg7[%c6_90, %c0_91, %c0_92] : memref<16x16x64xbf16, #tpu.memory_space<vmem>>, vector<1x16x64xbf16>
    %120 = vector.shape_cast %119 : vector<1x16x64xbf16> to vector<16x64xbf16>
    %cst_93 = arith.constant dense<0.000000e+00> : vector<16x64xf32>
    %121 = tpu.matmul %120, %94, %cst_93 {dimension_numbers = #tpu.dot_dimension_numbers<[1], [0], [0], [1], [0, 0, 1, 1], [], []>} : vector<16x64xbf16>, vector<64x64xbf16>, vector<16x64xf32> -> vector<16x64xf32>
    %122 = arith.truncf %121 : vector<16x64xf32> to vector<16x64xbf16>
    %c7_94 = arith.constant 7 : index
    %c0_95 = arith.constant 0 : index
    %c0_96 = arith.constant 0 : index
    %123 = vector.load %arg7[%c7_94, %c0_95, %c0_96] : memref<16x16x64xbf16, #tpu.memory_space<vmem>>, vector<1x16x64xbf16>
    %124 = vector.shape_cast %123 : vector<1x16x64xbf16> to vector<16x64xbf16>
    %cst_97 = arith.constant dense<0.000000e+00> : vector<16x64xf32>
    %125 = tpu.matmul %124, %94, %cst_97 {dimension_numbers = #tpu.dot_dimension_numbers<[1], [0], [0], [1], [0, 0, 1, 1], [], []>} : vector<16x64xbf16>, vector<64x64xbf16>, vector<16x64xf32> -> vector<16x64xf32>
    %126 = arith.truncf %125 : vector<16x64xf32> to vector<16x64xbf16>
    %c8_98 = arith.constant 8 : index
    %c0_99 = arith.constant 0 : index
    %c0_100 = arith.constant 0 : index
    %127 = vector.load %arg7[%c8_98, %c0_99, %c0_100] : memref<16x16x64xbf16, #tpu.memory_space<vmem>>, vector<1x16x64xbf16>
    %128 = vector.shape_cast %127 : vector<1x16x64xbf16> to vector<16x64xbf16>
    %cst_101 = arith.constant dense<0.000000e+00> : vector<16x64xf32>
    %129 = tpu.matmul %128, %94, %cst_101 {dimension_numbers = #tpu.dot_dimension_numbers<[1], [0], [0], [1], [0, 0, 1, 1], [], []>} : vector<16x64xbf16>, vector<64x64xbf16>, vector<16x64xf32> -> vector<16x64xf32>
    %130 = arith.truncf %129 : vector<16x64xf32> to vector<16x64xbf16>
    %c9_102 = arith.constant 9 : index
    %c0_103 = arith.constant 0 : index
    %c0_104 = arith.constant 0 : index
    %131 = vector.load %arg7[%c9_102, %c0_103, %c0_104] : memref<16x16x64xbf16, #tpu.memory_space<vmem>>, vector<1x16x64xbf16>
    %132 = vector.shape_cast %131 : vector<1x16x64xbf16> to vector<16x64xbf16>
    %cst_105 = arith.constant dense<0.000000e+00> : vector<16x64xf32>
    %133 = tpu.matmul %132, %94, %cst_105 {dimension_numbers = #tpu.dot_dimension_numbers<[1], [0], [0], [1], [0, 0, 1, 1], [], []>} : vector<16x64xbf16>, vector<64x64xbf16>, vector<16x64xf32> -> vector<16x64xf32>
    %134 = arith.truncf %133 : vector<16x64xf32> to vector<16x64xbf16>
    %c10_106 = arith.constant 10 : index
    %c0_107 = arith.constant 0 : index
    %c0_108 = arith.constant 0 : index
    %135 = vector.load %arg7[%c10_106, %c0_107, %c0_108] : memref<16x16x64xbf16, #tpu.memory_space<vmem>>, vector<1x16x64xbf16>
    %136 = vector.shape_cast %135 : vector<1x16x64xbf16> to vector<16x64xbf16>
    %cst_109 = arith.constant dense<0.000000e+00> : vector<16x64xf32>
    %137 = tpu.matmul %136, %94, %cst_109 {dimension_numbers = #tpu.dot_dimension_numbers<[1], [0], [0], [1], [0, 0, 1, 1], [], []>} : vector<16x64xbf16>, vector<64x64xbf16>, vector<16x64xf32> -> vector<16x64xf32>
    %138 = arith.truncf %137 : vector<16x64xf32> to vector<16x64xbf16>
    %c11_110 = arith.constant 11 : index
    %c0_111 = arith.constant 0 : index
    %c0_112 = arith.constant 0 : index
    %139 = vector.load %arg7[%c11_110, %c0_111, %c0_112] : memref<16x16x64xbf16, #tpu.memory_space<vmem>>, vector<1x16x64xbf16>
    %140 = vector.shape_cast %139 : vector<1x16x64xbf16> to vector<16x64xbf16>
    %cst_113 = arith.constant dense<0.000000e+00> : vector<16x64xf32>
    %141 = tpu.matmul %140, %94, %cst_113 {dimension_numbers = #tpu.dot_dimension_numbers<[1], [0], [0], [1], [0, 0, 1, 1], [], []>} : vector<16x64xbf16>, vector<64x64xbf16>, vector<16x64xf32> -> vector<16x64xf32>
    %142 = arith.truncf %141 : vector<16x64xf32> to vector<16x64xbf16>
    %c12_114 = arith.constant 12 : index
    %c0_115 = arith.constant 0 : index
    %c0_116 = arith.constant 0 : index
    %143 = vector.load %arg7[%c12_114, %c0_115, %c0_116] : memref<16x16x64xbf16, #tpu.memory_space<vmem>>, vector<1x16x64xbf16>
    %144 = vector.shape_cast %143 : vector<1x16x64xbf16> to vector<16x64xbf16>
    %cst_117 = arith.constant dense<0.000000e+00> : vector<16x64xf32>
    %145 = tpu.matmul %144, %94, %cst_117 {dimension_numbers = #tpu.dot_dimension_numbers<[1], [0], [0], [1], [0, 0, 1, 1], [], []>} : vector<16x64xbf16>, vector<64x64xbf16>, vector<16x64xf32> -> vector<16x64xf32>
    %146 = arith.truncf %145 : vector<16x64xf32> to vector<16x64xbf16>
    %c13_118 = arith.constant 13 : index
    %c0_119 = arith.constant 0 : index
    %c0_120 = arith.constant 0 : index
    %147 = vector.load %arg7[%c13_118, %c0_119, %c0_120] : memref<16x16x64xbf16, #tpu.memory_space<vmem>>, vector<1x16x64xbf16>
    %148 = vector.shape_cast %147 : vector<1x16x64xbf16> to vector<16x64xbf16>
    %cst_121 = arith.constant dense<0.000000e+00> : vector<16x64xf32>
    %149 = tpu.matmul %148, %94, %cst_121 {dimension_numbers = #tpu.dot_dimension_numbers<[1], [0], [0], [1], [0, 0, 1, 1], [], []>} : vector<16x64xbf16>, vector<64x64xbf16>, vector<16x64xf32> -> vector<16x64xf32>
    %150 = arith.truncf %149 : vector<16x64xf32> to vector<16x64xbf16>
    %c14_122 = arith.constant 14 : index
    %c0_123 = arith.constant 0 : index
    %c0_124 = arith.constant 0 : index
    %151 = vector.load %arg7[%c14_122, %c0_123, %c0_124] : memref<16x16x64xbf16, #tpu.memory_space<vmem>>, vector<1x16x64xbf16>
    %152 = vector.shape_cast %151 : vector<1x16x64xbf16> to vector<16x64xbf16>
    %cst_125 = arith.constant dense<0.000000e+00> : vector<16x64xf32>
    %153 = tpu.matmul %152, %94, %cst_125 {dimension_numbers = #tpu.dot_dimension_numbers<[1], [0], [0], [1], [0, 0, 1, 1], [], []>} : vector<16x64xbf16>, vector<64x64xbf16>, vector<16x64xf32> -> vector<16x64xf32>
    %154 = arith.truncf %153 : vector<16x64xf32> to vector<16x64xbf16>
    %c15_126 = arith.constant 15 : index
    %c0_127 = arith.constant 0 : index
    %c0_128 = arith.constant 0 : index
    %155 = vector.load %arg7[%c15_126, %c0_127, %c0_128] : memref<16x16x64xbf16, #tpu.memory_space<vmem>>, vector<1x16x64xbf16>
    %156 = vector.shape_cast %155 : vector<1x16x64xbf16> to vector<16x64xbf16>
    %cst_129 = arith.constant dense<0.000000e+00> : vector<16x64xf32>
    %157 = tpu.matmul %156, %94, %cst_129 {dimension_numbers = #tpu.dot_dimension_numbers<[1], [0], [0], [1], [0, 0, 1, 1], [], []>} : vector<16x64xbf16>, vector<64x64xbf16>, vector<16x64xf32> -> vector<16x64xf32>
    %158 = arith.truncf %157 : vector<16x64xf32> to vector<16x64xbf16>
    %159 = tpu.concatenate %98, %102, %106, %110, %114, %118, %122, %126, %130, %134, %138, %142, %146, %150, %154, %158 in 1 : vector<16x64xbf16>, vector<16x64xbf16>, vector<16x64xbf16>, vector<16x64xbf16>, vector<16x64xbf16>, vector<16x64xbf16>, vector<16x64xbf16>, vector<16x64xbf16>, vector<16x64xbf16>, vector<16x64xbf16>, vector<16x64xbf16>, vector<16x64xbf16>, vector<16x64xbf16>, vector<16x64xbf16>, vector<16x64xbf16>, vector<16x64xbf16> -> vector<16x1024xbf16>
    %c0_130 = arith.constant 0 : index
    %c0_131 = arith.constant 0 : index
    %160 = vector.load %arg8[%c0_130, %c0_131] : memref<1024x64xbf16, #tpu.memory_space<vmem>>, vector<1024x64xbf16>
    %cst_132 = arith.constant dense<0.000000e+00> : vector<16x64xf32>
    %161 = tpu.matmul %159, %160, %cst_132 {dimension_numbers = #tpu.dot_dimension_numbers<[1], [0], [0], [1], [0, 0, 1, 1], [], []>} : vector<16x1024xbf16>, vector<1024x64xbf16>, vector<16x64xf32> -> vector<16x64xf32>
    %c0_133 = arith.constant 0 : index
    %c0_134 = arith.constant 0 : index
    %162 = vector.load %arg9[%c0_133, %c0_134] : memref<1x64xf32, #tpu.memory_space<vmem>>, vector<1x64xf32>
    %163 = vector.broadcast %162 : vector<1x64xf32> to vector<16x64xf32>
    %164 = arith.addf %161, %163 : vector<16x64xf32>
    %cst_135 = arith.constant 0.000000e+00 : f32
    %165 = vector.broadcast %cst_135 : f32 to vector<16x64xf32>
    %166 = arith.cmpf ogt, %164, %165 : vector<16x64xf32>
    %cst_136 = arith.constant 0.000000e+00 : f32
    %167 = vector.broadcast %cst_136 : f32 to vector<16x64xf32>
    %168 = arith.minimumf %164, %167 : vector<16x64xf32>
    %169 = math.exp %168 : vector<16x64xf32>
    %cst_137 = arith.constant 1.000000e+00 : f32
    %170 = vector.broadcast %cst_137 : f32 to vector<16x64xf32>
    %171 = arith.subf %169, %170 : vector<16x64xf32>
    %172 = arith.select %166, %164, %171 : vector<16x64xi1>, vector<16x64xf32>
    %173 = arith.truncf %172 : vector<16x64xf32> to vector<16x64xbf16>
    %cst_138 = arith.constant 0.000000e+00 : f32
    %174 = vector.broadcast %cst_138 : f32 to vector<1x64xf32>
    %175 = vector.extract_strided_slice %173 {offsets = [0, 0], sizes = [1, 64], strides = [1, 1]} : vector<16x64xbf16> to vector<1x64xbf16>
    %c0_139 = arith.constant 0 : index
    %c0_140 = arith.constant 0 : index
    %176 = vector.load %arg10[%c0_139, %c0_140] : memref<1024x64xbf16, #tpu.memory_space<vmem>>, vector<64x64xbf16>
    %cst_141 = arith.constant dense<0.000000e+00> : vector<1x64xf32>
    %177 = tpu.matmul %175, %176, %cst_141 {dimension_numbers = #tpu.dot_dimension_numbers<[1], [0], [0], [1], [0, 0, 1, 1], [], []>} : vector<1x64xbf16>, vector<64x64xbf16>, vector<1x64xf32> -> vector<1x64xf32>
    %178 = arith.addf %174, %177 : vector<1x64xf32>
    %179 = vector.extract_strided_slice %173 {offsets = [1, 0], sizes = [1, 64], strides = [1, 1]} : vector<16x64xbf16> to vector<1x64xbf16>
    %c64 = arith.constant 64 : index
    %c0_142 = arith.constant 0 : index
    %180 = vector.load %arg10[%c64, %c0_142] : memref<1024x64xbf16, #tpu.memory_space<vmem>>, vector<64x64xbf16>
    %cst_143 = arith.constant dense<0.000000e+00> : vector<1x64xf32>
    %181 = tpu.matmul %179, %180, %cst_143 {dimension_numbers = #tpu.dot_dimension_numbers<[1], [0], [0], [1], [0, 0, 1, 1], [], []>} : vector<1x64xbf16>, vector<64x64xbf16>, vector<1x64xf32> -> vector<1x64xf32>
    %182 = arith.addf %178, %181 : vector<1x64xf32>
    %183 = vector.extract_strided_slice %173 {offsets = [2, 0], sizes = [1, 64], strides = [1, 1]} : vector<16x64xbf16> to vector<1x64xbf16>
    %c128 = arith.constant 128 : index
    %c0_144 = arith.constant 0 : index
    %184 = vector.load %arg10[%c128, %c0_144] : memref<1024x64xbf16, #tpu.memory_space<vmem>>, vector<64x64xbf16>
    %cst_145 = arith.constant dense<0.000000e+00> : vector<1x64xf32>
    %185 = tpu.matmul %183, %184, %cst_145 {dimension_numbers = #tpu.dot_dimension_numbers<[1], [0], [0], [1], [0, 0, 1, 1], [], []>} : vector<1x64xbf16>, vector<64x64xbf16>, vector<1x64xf32> -> vector<1x64xf32>
    %186 = arith.addf %182, %185 : vector<1x64xf32>
    %187 = vector.extract_strided_slice %173 {offsets = [3, 0], sizes = [1, 64], strides = [1, 1]} : vector<16x64xbf16> to vector<1x64xbf16>
    %c192 = arith.constant 192 : index
    %c0_146 = arith.constant 0 : index
    %188 = vector.load %arg10[%c192, %c0_146] : memref<1024x64xbf16, #tpu.memory_space<vmem>>, vector<64x64xbf16>
    %cst_147 = arith.constant dense<0.000000e+00> : vector<1x64xf32>
    %189 = tpu.matmul %187, %188, %cst_147 {dimension_numbers = #tpu.dot_dimension_numbers<[1], [0], [0], [1], [0, 0, 1, 1], [], []>} : vector<1x64xbf16>, vector<64x64xbf16>, vector<1x64xf32> -> vector<1x64xf32>
    %190 = arith.addf %186, %189 : vector<1x64xf32>
    %191 = vector.extract_strided_slice %173 {offsets = [4, 0], sizes = [1, 64], strides = [1, 1]} : vector<16x64xbf16> to vector<1x64xbf16>
    %c256 = arith.constant 256 : index
    %c0_148 = arith.constant 0 : index
    %192 = vector.load %arg10[%c256, %c0_148] : memref<1024x64xbf16, #tpu.memory_space<vmem>>, vector<64x64xbf16>
    %cst_149 = arith.constant dense<0.000000e+00> : vector<1x64xf32>
    %193 = tpu.matmul %191, %192, %cst_149 {dimension_numbers = #tpu.dot_dimension_numbers<[1], [0], [0], [1], [0, 0, 1, 1], [], []>} : vector<1x64xbf16>, vector<64x64xbf16>, vector<1x64xf32> -> vector<1x64xf32>
    %194 = arith.addf %190, %193 : vector<1x64xf32>
    %195 = vector.extract_strided_slice %173 {offsets = [5, 0], sizes = [1, 64], strides = [1, 1]} : vector<16x64xbf16> to vector<1x64xbf16>
    %c320 = arith.constant 320 : index
    %c0_150 = arith.constant 0 : index
    %196 = vector.load %arg10[%c320, %c0_150] : memref<1024x64xbf16, #tpu.memory_space<vmem>>, vector<64x64xbf16>
    %cst_151 = arith.constant dense<0.000000e+00> : vector<1x64xf32>
    %197 = tpu.matmul %195, %196, %cst_151 {dimension_numbers = #tpu.dot_dimension_numbers<[1], [0], [0], [1], [0, 0, 1, 1], [], []>} : vector<1x64xbf16>, vector<64x64xbf16>, vector<1x64xf32> -> vector<1x64xf32>
    %198 = arith.addf %194, %197 : vector<1x64xf32>
    %199 = vector.extract_strided_slice %173 {offsets = [6, 0], sizes = [1, 64], strides = [1, 1]} : vector<16x64xbf16> to vector<1x64xbf16>
    %c384 = arith.constant 384 : index
    %c0_152 = arith.constant 0 : index
    %200 = vector.load %arg10[%c384, %c0_152] : memref<1024x64xbf16, #tpu.memory_space<vmem>>, vector<64x64xbf16>
    %cst_153 = arith.constant dense<0.000000e+00> : vector<1x64xf32>
    %201 = tpu.matmul %199, %200, %cst_153 {dimension_numbers = #tpu.dot_dimension_numbers<[1], [0], [0], [1], [0, 0, 1, 1], [], []>} : vector<1x64xbf16>, vector<64x64xbf16>, vector<1x64xf32> -> vector<1x64xf32>
    %202 = arith.addf %198, %201 : vector<1x64xf32>
    %203 = vector.extract_strided_slice %173 {offsets = [7, 0], sizes = [1, 64], strides = [1, 1]} : vector<16x64xbf16> to vector<1x64xbf16>
    %c448 = arith.constant 448 : index
    %c0_154 = arith.constant 0 : index
    %204 = vector.load %arg10[%c448, %c0_154] : memref<1024x64xbf16, #tpu.memory_space<vmem>>, vector<64x64xbf16>
    %cst_155 = arith.constant dense<0.000000e+00> : vector<1x64xf32>
    %205 = tpu.matmul %203, %204, %cst_155 {dimension_numbers = #tpu.dot_dimension_numbers<[1], [0], [0], [1], [0, 0, 1, 1], [], []>} : vector<1x64xbf16>, vector<64x64xbf16>, vector<1x64xf32> -> vector<1x64xf32>
    %206 = arith.addf %202, %205 : vector<1x64xf32>
    %207 = vector.extract_strided_slice %173 {offsets = [8, 0], sizes = [1, 64], strides = [1, 1]} : vector<16x64xbf16> to vector<1x64xbf16>
    %c512 = arith.constant 512 : index
    %c0_156 = arith.constant 0 : index
    %208 = vector.load %arg10[%c512, %c0_156] : memref<1024x64xbf16, #tpu.memory_space<vmem>>, vector<64x64xbf16>
    %cst_157 = arith.constant dense<0.000000e+00> : vector<1x64xf32>
    %209 = tpu.matmul %207, %208, %cst_157 {dimension_numbers = #tpu.dot_dimension_numbers<[1], [0], [0], [1], [0, 0, 1, 1], [], []>} : vector<1x64xbf16>, vector<64x64xbf16>, vector<1x64xf32> -> vector<1x64xf32>
    %210 = arith.addf %206, %209 : vector<1x64xf32>
    %211 = vector.extract_strided_slice %173 {offsets = [9, 0], sizes = [1, 64], strides = [1, 1]} : vector<16x64xbf16> to vector<1x64xbf16>
    %c576 = arith.constant 576 : index
    %c0_158 = arith.constant 0 : index
    %212 = vector.load %arg10[%c576, %c0_158] : memref<1024x64xbf16, #tpu.memory_space<vmem>>, vector<64x64xbf16>
    %cst_159 = arith.constant dense<0.000000e+00> : vector<1x64xf32>
    %213 = tpu.matmul %211, %212, %cst_159 {dimension_numbers = #tpu.dot_dimension_numbers<[1], [0], [0], [1], [0, 0, 1, 1], [], []>} : vector<1x64xbf16>, vector<64x64xbf16>, vector<1x64xf32> -> vector<1x64xf32>
    %214 = arith.addf %210, %213 : vector<1x64xf32>
    %215 = vector.extract_strided_slice %173 {offsets = [10, 0], sizes = [1, 64], strides = [1, 1]} : vector<16x64xbf16> to vector<1x64xbf16>
    %c640 = arith.constant 640 : index
    %c0_160 = arith.constant 0 : index
    %216 = vector.load %arg10[%c640, %c0_160] : memref<1024x64xbf16, #tpu.memory_space<vmem>>, vector<64x64xbf16>
    %cst_161 = arith.constant dense<0.000000e+00> : vector<1x64xf32>
    %217 = tpu.matmul %215, %216, %cst_161 {dimension_numbers = #tpu.dot_dimension_numbers<[1], [0], [0], [1], [0, 0, 1, 1], [], []>} : vector<1x64xbf16>, vector<64x64xbf16>, vector<1x64xf32> -> vector<1x64xf32>
    %218 = arith.addf %214, %217 : vector<1x64xf32>
    %219 = vector.extract_strided_slice %173 {offsets = [11, 0], sizes = [1, 64], strides = [1, 1]} : vector<16x64xbf16> to vector<1x64xbf16>
    %c704 = arith.constant 704 : index
    %c0_162 = arith.constant 0 : index
    %220 = vector.load %arg10[%c704, %c0_162] : memref<1024x64xbf16, #tpu.memory_space<vmem>>, vector<64x64xbf16>
    %cst_163 = arith.constant dense<0.000000e+00> : vector<1x64xf32>
    %221 = tpu.matmul %219, %220, %cst_163 {dimension_numbers = #tpu.dot_dimension_numbers<[1], [0], [0], [1], [0, 0, 1, 1], [], []>} : vector<1x64xbf16>, vector<64x64xbf16>, vector<1x64xf32> -> vector<1x64xf32>
    %222 = arith.addf %218, %221 : vector<1x64xf32>
    %223 = vector.extract_strided_slice %173 {offsets = [12, 0], sizes = [1, 64], strides = [1, 1]} : vector<16x64xbf16> to vector<1x64xbf16>
    %c768 = arith.constant 768 : index
    %c0_164 = arith.constant 0 : index
    %224 = vector.load %arg10[%c768, %c0_164] : memref<1024x64xbf16, #tpu.memory_space<vmem>>, vector<64x64xbf16>
    %cst_165 = arith.constant dense<0.000000e+00> : vector<1x64xf32>
    %225 = tpu.matmul %223, %224, %cst_165 {dimension_numbers = #tpu.dot_dimension_numbers<[1], [0], [0], [1], [0, 0, 1, 1], [], []>} : vector<1x64xbf16>, vector<64x64xbf16>, vector<1x64xf32> -> vector<1x64xf32>
    %226 = arith.addf %222, %225 : vector<1x64xf32>
    %227 = vector.extract_strided_slice %173 {offsets = [13, 0], sizes = [1, 64], strides = [1, 1]} : vector<16x64xbf16> to vector<1x64xbf16>
    %c832 = arith.constant 832 : index
    %c0_166 = arith.constant 0 : index
    %228 = vector.load %arg10[%c832, %c0_166] : memref<1024x64xbf16, #tpu.memory_space<vmem>>, vector<64x64xbf16>
    %cst_167 = arith.constant dense<0.000000e+00> : vector<1x64xf32>
    %229 = tpu.matmul %227, %228, %cst_167 {dimension_numbers = #tpu.dot_dimension_numbers<[1], [0], [0], [1], [0, 0, 1, 1], [], []>} : vector<1x64xbf16>, vector<64x64xbf16>, vector<1x64xf32> -> vector<1x64xf32>
    %230 = arith.addf %226, %229 : vector<1x64xf32>
    %231 = vector.extract_strided_slice %173 {offsets = [14, 0], sizes = [1, 64], strides = [1, 1]} : vector<16x64xbf16> to vector<1x64xbf16>
    %c896 = arith.constant 896 : index
    %c0_168 = arith.constant 0 : index
    %232 = vector.load %arg10[%c896, %c0_168] : memref<1024x64xbf16, #tpu.memory_space<vmem>>, vector<64x64xbf16>
    %cst_169 = arith.constant dense<0.000000e+00> : vector<1x64xf32>
    %233 = tpu.matmul %231, %232, %cst_169 {dimension_numbers = #tpu.dot_dimension_numbers<[1], [0], [0], [1], [0, 0, 1, 1], [], []>} : vector<1x64xbf16>, vector<64x64xbf16>, vector<1x64xf32> -> vector<1x64xf32>
    %234 = arith.addf %230, %233 : vector<1x64xf32>
    %235 = vector.extract_strided_slice %173 {offsets = [15, 0], sizes = [1, 64], strides = [1, 1]} : vector<16x64xbf16> to vector<1x64xbf16>
    %c960 = arith.constant 960 : index
    %c0_170 = arith.constant 0 : index
    %236 = vector.load %arg10[%c960, %c0_170] : memref<1024x64xbf16, #tpu.memory_space<vmem>>, vector<64x64xbf16>
    %cst_171 = arith.constant dense<0.000000e+00> : vector<1x64xf32>
    %237 = tpu.matmul %235, %236, %cst_171 {dimension_numbers = #tpu.dot_dimension_numbers<[1], [0], [0], [1], [0, 0, 1, 1], [], []>} : vector<1x64xbf16>, vector<64x64xbf16>, vector<1x64xf32> -> vector<1x64xf32>
    %238 = arith.addf %234, %237 : vector<1x64xf32>
    %c0_172 = arith.constant 0 : index
    %c0_173 = arith.constant 0 : index
    %239 = vector.load %arg11[%c0_172, %c0_173] : memref<1x64xf32, #tpu.memory_space<vmem>>, vector<1x64xf32>
    %240 = arith.addf %238, %239 : vector<1x64xf32>
    %cst_174 = arith.constant 0.000000e+00 : f32
    %241 = vector.broadcast %cst_174 : f32 to vector<1x64xf32>
    %242 = arith.cmpf ogt, %240, %241 : vector<1x64xf32>
    %cst_175 = arith.constant 0.000000e+00 : f32
    %243 = vector.broadcast %cst_175 : f32 to vector<1x64xf32>
    %244 = arith.minimumf %240, %243 : vector<1x64xf32>
    %245 = math.exp %244 : vector<1x64xf32>
    %cst_176 = arith.constant 1.000000e+00 : f32
    %246 = vector.broadcast %cst_176 : f32 to vector<1x64xf32>
    %247 = arith.subf %245, %246 : vector<1x64xf32>
    %248 = arith.select %242, %240, %247 : vector<1x64xi1>, vector<1x64xf32>
    %249 = arith.truncf %248 : vector<1x64xf32> to vector<1x64xbf16>
    %c0_177 = arith.constant 0 : index
    %c0_178 = arith.constant 0 : index
    %250 = vector.load %arg12[%c0_177, %c0_178] : memref<64x32xbf16, #tpu.memory_space<vmem>>, vector<64x32xbf16>
    %cst_179 = arith.constant dense<0.000000e+00> : vector<1x32xf32>
    %251 = tpu.matmul %249, %250, %cst_179 {dimension_numbers = #tpu.dot_dimension_numbers<[1], [0], [0], [1], [0, 0, 1, 1], [], []>} : vector<1x64xbf16>, vector<64x32xbf16>, vector<1x32xf32> -> vector<1x32xf32>
    %c0_180 = arith.constant 0 : index
    %c0_181 = arith.constant 0 : index
    %252 = vector.load %arg13[%c0_180, %c0_181] : memref<1x32xf32, #tpu.memory_space<vmem>>, vector<1x32xf32>
    %253 = arith.addf %251, %252 : vector<1x32xf32>
    %cst_182 = arith.constant 0.000000e+00 : f32
    %254 = vector.broadcast %cst_182 : f32 to vector<1x32xf32>
    %255 = arith.cmpf ogt, %253, %254 : vector<1x32xf32>
    %cst_183 = arith.constant 0.000000e+00 : f32
    %256 = vector.broadcast %cst_183 : f32 to vector<1x32xf32>
    %257 = arith.minimumf %253, %256 : vector<1x32xf32>
    %258 = math.exp %257 : vector<1x32xf32>
    %cst_184 = arith.constant 1.000000e+00 : f32
    %259 = vector.broadcast %cst_184 : f32 to vector<1x32xf32>
    %260 = arith.subf %258, %259 : vector<1x32xf32>
    %261 = arith.select %255, %253, %260 : vector<1x32xi1>, vector<1x32xf32>
    %c0_185 = arith.constant 0 : index
    %c0_186 = arith.constant 0 : index
    %c0_187 = arith.constant 0 : index
    %262 = vector.load %arg14[%c0_185, %c0_186, %c0_187] : memref<1x1x32xf32, #tpu.memory_space<vmem>>, vector<1x1x32xf32>
    %263 = vector.shape_cast %262 : vector<1x1x32xf32> to vector<1x32xf32>
    %264 = vector.shape_cast %261 : vector<1x32xf32> to vector<1x1x32xf32>
    tpu.vector_store %arg14[%c0_185, %c0_186, %c0_187], %264 {strides = array<i32>} : memref<1x1x32xf32, #tpu.memory_space<vmem>>, vector<1x1x32xf32>,
    return
  }
  func.func @transform_0(%arg0: i32) -> (i32, i32, i32) {
    %c0_i32 = arith.constant 0 : i32
    %c0_i32_0 = arith.constant 0 : i32
    %c0_i32_1 = arith.constant 0 : i32
    return %arg0, %c0_i32, %c0_i32_0 : i32, i32, i32
  }
  func.func @transform_1(%arg0: i32) -> (i32, i32) {
    %c0_i32 = arith.constant 0 : i32
    %c0_i32_0 = arith.constant 0 : i32
    %c0_i32_1 = arith.constant 0 : i32
    return %c0_i32, %c0_i32_0 : i32, i32
  }
  func.func @transform_2(%arg0: i32) -> (i32, i32) {
    %c0_i32 = arith.constant 0 : i32
    %c0_i32_0 = arith.constant 0 : i32
    %c0_i32_1 = arith.constant 0 : i32
    return %c0_i32, %c0_i32_0 : i32, i32
  }
  func.func @transform_3(%arg0: i32) -> (i32, i32, i32) {
    %c0_i32 = arith.constant 0 : i32
    %c0_i32_0 = arith.constant 0 : i32
    %c0_i32_1 = arith.constant 0 : i32
    %c0_i32_2 = arith.constant 0 : i32
    return %c0_i32, %c0_i32_0, %c0_i32_1 : i32, i32, i32
  }
  func.func @transform_4(%arg0: i32) -> (i32, i32) {
    %c0_i32 = arith.constant 0 : i32
    %c0_i32_0 = arith.constant 0 : i32
    %c0_i32_1 = arith.constant 0 : i32
    return %c0_i32, %c0_i32_0 : i32, i32
  }
  func.func @transform_5(%arg0: i32) -> (i32, i32) {
    %c0_i32 = arith.constant 0 : i32
    %c0_i32_0 = arith.constant 0 : i32
    %c0_i32_1 = arith.constant 0 : i32
    return %c0_i32, %c0_i32_0 : i32, i32
  }
  func.func @transform_6(%arg0: i32) -> (i32, i32, i32) {
    %c0_i32 = arith.constant 0 : i32
    %c0_i32_0 = arith.constant 0 : i32
    %c0_i32_1 = arith.constant 0 : i32
    %c0_i32_2 = arith.constant 0 : i32
    return %c0_i32, %c0_i32_0, %c0_i32_1 : i32, i32, i32
  }
  func.func @transform_7(%arg0: i32) -> (i32, i32) {
    %c0_i32 = arith.constant 0 : i32
    %c0_i32_0 = arith.constant 0 : i32
    %c0_i32_1 = arith.constant 0 : i32
    return %c0_i32, %c0_i32_0 : i32, i32
  }
  func.func @transform_8(%arg0: i32) -> (i32, i32) {
    %c0_i32 = arith.constant 0 : i32
    %c0_i32_0 = arith.constant 0 : i32
    %c0_i32_1 = arith.constant 0 : i32
    return %c0_i32, %c0_i32_0 : i32, i32
  }
  func.func @transform_9(%arg0: i32) -> (i32, i32) {
    %c0_i32 = arith.constant 0 : i32
    %c0_i32_0 = arith.constant 0 : i32
    %c0_i32_1 = arith.constant 0 : i32
    return %c0_i32, %c0_i32_0 : i32, i32
  }
  func.func @transform_10(%arg0: i32) -> (i32, i32) {
    %c0_i32 = arith.constant 0 : i32
    %c0_i32_0 = arith.constant 0 : i32
    %c0_i32_1 = arith.constant 0 : i32
    return %c0_i32, %c0_i32_0 : i32, i32
  }
  func.func @transform_11(%arg0: i32) -> (i32, i32) {
    %c0_i32 = arith.constant 0 : i32
    %c0_i32_0 = arith.constant 0 : i32
    %c0_i32_1 = arith.constant 0 : i32
    return %c0_i32, %c0_i32_0 : i32, i32
  }
  func.func @transform_12(%arg0: i32) -> (i32, i32) {
    %c0_i32 = arith.constant 0 : i32
    %c0_i32_0 = arith.constant 0 : i32
    %c0_i32_1 = arith.constant 0 : i32
    return %c0_i32, %c0_i32_0 : i32, i32
  }
  func.func @transform_13(%arg0: i32) -> (i32, i32, i32) {
    %c0_i32 = arith.constant 0 : i32
    %c0_i32_0 = arith.constant 0 : i32
    %c0_i32_1 = arith.constant 0 : i32
    return %arg0, %c0_i32, %c0_i32_0 : i32, i32, i32
  }
}

</mosaic_0001>

<bundles_post_ra>
// kernel: encoder_forward.1
= control target key start
LH: loop header
LB: loop body
LE: loop exit
PB: predicated region body
PF: predicated region fallthrough
CT: control target
= control target key end

     0   :  { %s12359_s0 = inlined_call_operand.vmem [shape: bf16[2,256,48], index: 0, kind: input, shape index: {}]   ;;  %s12360_s1 = inlined_call_operand.vmem [shape: bf16[48,64], index: 1, kind: input, shape index: {}]   ;;  %s12361_s2 = inlined_call_operand.vmem [shape: f32[1,64], index: 2, kind: input, shape index: {}]   ;;  %s12362_s3 = inlined_call_operand.vmem [shape: bf16[16,64,256], index: 3, kind: input, shape index: {}]   ;;  %s12363_s4 = inlined_call_operand.vmem [shape: bf16[1024,64], index: 4, kind: input, shape index: {}]   ;;  %s12364_s5 = inlined_call_operand.vmem [shape: f32[1,64], index: 5, kind: input, shape index: {}]   ;;  %s12365_s6 = inlined_call_operand.vmem [shape: bf16[16,16,64], index: 6, kind: input, shape index: {}]   ;;  %s12366_s7 = inlined_call_operand.vmem [shape: bf16[1024,64], index: 7, kind: input, shape index: {}]   ;;  %s12367_s8 = inlined_call_operand.vmem [shape: f32[1,64], index: 8, kind: input, shape index: {}]   ;;  %s12368_s9 = inlined_call_operand.vmem [shape: bf16[1024,64], index: 9, kind: input, shape index: {}]   ;;  %s12369_s10 = inlined_call_operand.vmem [shape: f32[1,64], index: 10, kind: input, shape index: {}]   ;;  %s12370_s11 = inlined_call_operand.vmem [shape: bf16[64,32], index: 11, kind: input, shape index: {}]   ;;  %s12371_s12 = inlined_call_operand.vmem [shape: f32[1,32], index: 12, kind: input, shape index: {}]   ;;  %s12372_s13 = inlined_call_operand.hbm [shape: f32[2,1,32], index: 13, kind: output, shape index: {}]  }
   0x1   :  { %12390 = sst [smem:[#allocation21_spill]] %s12359_s0 }
   0x2   :  { %18 = vsyncpa [#allocation3], 0 }
   0x3   :  { %20 = vsyncpa [#allocation3 + $0x1], 0  ;;  %s9746_s25 = smov 0   ;;  %s9748_s26 = smov 0  }
   0x4   :  { %s9750_s27 = smov 0   ;;  %s9752_s28 = smov 0  }
   0x5 LB: > { %12391 = sst [smem:[#allocation5_spill]] %s9666_s27  ;;  %s9767_s29 = sadd.s32 4294967295, %s9670_s28   ;;  %s9670_s28 = sphi %s9752_s28, %s12472_s28   ;;  %s9666_s27 = sphi %s9750_s27, %s12469_s27   ;;  %s9662_s26 = sphi %s9748_s26, %s12471_s26   ;;  %s9658_s25 = sphi %s9746_s25, %s12470_s25  }
   0x6   : > { %s6934_s30 = sadd.s32 4294967294, %s9670_s28   ;;  %s9771_s14 = sadd.s32 1, %s9670_s28  }
   0x7   : > { %s311_s15 = sadd.s32 1, %s9666_s27  ;;  %s308_s16 = ssub.s32 %s9670_s28, %s9771_s14 }
   0x8   : > { %p321_p0 = scmp.ne.s32.totalorder %s9666_s27, %s9662_s26  ;;  %p309_p1 = scmp.eq.s32.totalorder %s308_s16, 0 }
   0x9   : > { %p322_p2 = scmp.eq.s32.totalorder %s9767_s29, 1  ;;  %p327_p3 = scmp.ne.s32.totalorder %s9662_s26, %s9658_s25 }
   0xa   : > { %p328_p4 = scmp.eq.s32.totalorder %s6934_s30, 1  ;;  %p6937_p7 = scmp.ge.s32.totalorder %s9670_s28, 1 }
   0xb   : > { %s9782_s17 = scalar_select %p309_p1, %s9666_s27, %s311_s15  }
   0xc   : > { %p9784_p5 = por %p322_p2, %p321_p0  ;;  %p9788_p6 = por %p328_p4, %p327_p3 }
   0xd   : > { %12392 = sst [smem:[#allocation6_spill]] %s9782_s17  ;;  %p390_p8 = scmp.lt.s32.totalorder %s9670_s28, 3 }
   0xf   : > { %p391_p9 = pnand %p6937_p7, %p390_p8 }
  0x11   : > { %394 = sbr.rel (%p391_p9) target bundleno = 2494 (0x9be), region = 72 }
  0x18   : > { %v9097_v0 = vld [vmem:[%s12360_s1] sm:$0xff]   ;;  %p433_p10 = scmp.lt.s32.totalorder %s9767_s29, 1  ;;  %v9098_v1 = vld [vmem:[%s12360_s1 + $0x8] sm:$0xff]   ;;  %v9099_v2 = vld [vmem:[%s12360_s1 + $0x10] sm:$0xff]   ;;  %s12395_s0 = sld [smem:[#allocation21_spill]]  ;;  %vm582_vm0 = vcmask 392192  }
  0x19   : > { %8621 = vmatprep.subr.bf16.mxu0 %v9097_v0  ;;  %v9118_v19 = vld [vmem:[%s12362_s3 + $0x4] ss:$8 sps:$4 sm:$0xff]   ;;  %v9851_v21 = vld [vmem:[%s12361_s2] ss:$0 sm:$0xff]  ;;  %s12388_s27 = smov 64   ;;  %s431_s21 = sand.u32 1, %s9662_s26  }
  0x1a   : > { %s434_s15 = scalar_select %p433_p10, %s9767_s29, 1  ;;  %8622 = vmatpush3.bf16.msra.mxu0 %v9097_v0  ;;  %v9121_v20 = vld [vmem:[%s12362_s3 + $0x84] ss:$8 sps:$4 sm:$0xff]   ;;  %1080 = vmatprep.mubr.bf16.mxu1 %v9118_v19 }
  0x1b   : > { %8623 = vmatprep.subr.bf16.mxu0 %v9098_v1 }
  0x1c   : > { %s7548_s16 = sshll.u32 %s434_s15, 7  ;;  %s6867_s15 = scalar_lea.sflag [#allocation3], %s431_s21 }
  0x1e   : > { %s9808_s20 = scalar_lea.vmem %s12395_s0, %s7548_s16  ;;  %8624 = vmatpush3.bf16.msra.mxu0 %v9098_v1  ;;  %s12467_s16 = smov 64  }
  0x1f   : > { %v9100_v3 = vld [vmem:[%s9808_s20] sm:$0xff]   ;;  %8625 = vmatprep.subr.bf16.mxu0 %v9099_v2  ;;  %v9101_v4 = vld [vmem:[%s9808_s20 + $0x8] sm:$0xff]   ;;  %v9102_v5 = vld [vmem:[%s9808_s20 + $0x10] sm:$0xff]  }
  0x20   : > { %8627 = vmatprep.mubr.msk.bf16.mxu0 %vm582_vm0, %v9100_v3  ;;  %v9103_v6 = vld [vmem:[%s9808_s20 + $0x18] sm:$0xff]   ;;  %v9104_v7 = vld [vmem:[%s9808_s20 + $0x20] sm:$0xff]   ;;  %v9105_v8 = vld [vmem:[%s9808_s20 + $0x28] sm:$0xff]  }
  0x21   : > { %v9106_v9 = vld [vmem:[%s9808_s20 + $0x30] sm:$0xff]   ;;  %v9107_v10 = vld [vmem:[%s9808_s20 + $0x38] sm:$0xff]   ;;  %v9108_v11 = vld [vmem:[%s9808_s20 + $0x40] sm:$0xff]  }
  0x22   : > { %8626 = vmatpush3.bf16.msra.mxu0 %v9099_v2  ;;  %v9109_v12 = vld [vmem:[%s9808_s20 + $0x48] sm:$0xff]   ;;  %v9110_v13 = vld [vmem:[%s9808_s20 + $0x50] sm:$0xff]   ;;  %v9111_v14 = vld [vmem:[%s9808_s20 + $0x58] sm:$0xff]  }
  0x23   : > { %v9112_v15 = vld [vmem:[%s9808_s20 + $0x60] sm:$0xff]   ;;  %v9113_v16 = vld [vmem:[%s9808_s20 + $0x68] sm:$0xff]   ;;  %v9114_v17 = vld [vmem:[%s9808_s20 + $0x70] sm:$0xff]  }
  0x24   : > { %v9115_v18 = vld [vmem:[%s9808_s20 + $0x78] sm:$0xff]   ;;  %s9675_s20 = smov [#allocation2]  }
  0x25   : > { %8628 = vmatmul.mubr.msk.bf16.vlgmr.msra.gmra.mrb[0].mxu0 %vm582_vm0, %v9101_v4  ;;  %s9612_s17 = sshll.u32 %s9675_s20, 4  ;;  %s9613_s17 = int_to_ptr.vmem [resolvable:$false] %s9612_s17 }
  0x26   : > { %8631 = vmatprep.mubr.msk.bf16.mxu0 %vm582_vm0, %v9102_v5  ;;  %s9614_s0 = scalar_lea.vmem %s9613_s17, 32 }
  0x2d   : > { %8632 = vmatmul.mubr.msk.bf16.gmra.mrb[4].mxu0 %vm582_vm0, %v9103_v6 }
  0x2e   : > { %8635 = vmatprep.mubr.msk.bf16.mxu0 %vm582_vm0, %v9104_v7 }
  0x35   : > { %8636 = vmatmul.mubr.msk.bf16.gmra.mrb[8].mxu0 %vm582_vm0, %v9105_v8 }
  0x36   : > { %8639 = vmatprep.mubr.msk.bf16.mxu0 %vm582_vm0, %v9106_v9 }
  0x3d   : > { %8640 = vmatmul.mubr.msk.bf16.gmra.mrb[12].mxu0 %vm582_vm0, %v9107_v10 }
  0x3e   : > { %8643 = vmatprep.mubr.msk.bf16.mxu0 %vm582_vm0, %v9108_v11 }
  0x45   : > { %8644 = vmatmul.mubr.msk.bf16.gmra.mrb[16].mxu0 %vm582_vm0, %v9109_v12 }
  0x46   : > { %8647 = vmatprep.mubr.msk.bf16.mxu0 %vm582_vm0, %v9110_v13 }
  0x4d   : > { %8648 = vmatmul.mubr.msk.bf16.gmra.mrb[20].mxu0 %vm582_vm0, %v9111_v14 }
  0x4e   : > { %8651 = vmatprep.mubr.msk.bf16.mxu0 %vm582_vm0, %v9112_v15 }
  0x55   : > { %8652 = vmatmul.mubr.msk.bf16.gmra.mrb[24].mxu0 %vm582_vm0, %v9113_v16 }
  0x56   : > { %8655 = vmatprep.mubr.msk.bf16.mxu0 %vm582_vm0, %v9114_v17 }
  0x5d   : > { %8656 = vmatmul.mubr.msk.bf16.gmra.mrb[28].mxu0 %vm582_vm0, %v9115_v18 }
  0x5e   : > { %1316 = vmatprep.mubr.bf16.mxu0 %v9121_v20 }
  0xf8   : > { %v8629_v22 = vpop.f32.mrb[0].mxu0 }
  0xf9   : > { %v674_v23 = vadd.f32 %v8629_v22, %v9851_v21  ;;  %v665_v24 = vpop.f32.mrb[1].mxu0 }
  0xfa   : > { %v9855_v25 = vadd.f32 %v9851_v21, %v665_v24  ;;  %v8630_v26 = vpop.f32.mrb[2].mxu0 }
  0xfb   : > { %v826_v27 = vmin.f32 %v674_v23, 0.0  ;;  %v677_v28 = vadd.f32 %v8630_v26, %v9851_v21  ;;  %v668_v29 = vpop.f32.mrb[3].mxu0  ;;  %vm794_vm1 = vcmp.gt.f32.partialorder %v674_v23, 0.0 }
  0xfc   : > { %v824_v30 = vmin.f32 %v9855_v25, 0.0  ;;  %v669_v31 = vadd.f32 %v9851_v21, %v668_v29  ;;  %vm792_vm2 = vcmp.gt.f32.partialorder %v9855_v25, 0.0 }
  0xfd   : > { %v860_v32 = vmul.f32 1.442695, %v826_v27  ;;  %v827_v33 = vmin.f32 %v677_v28, 0.0  ;;  %vm795_vm3 = vcmp.gt.f32.partialorder %v677_v28, 0.0 }
  0xfe   : > { %v856_v34 = vmul.f32 1.442695, %v824_v30  ;;  %v825_v35 = vmin.f32 %v669_v31, 0.0  ;;  %vm793_vm4 = vcmp.gt.f32.partialorder %v669_v31, 0.0 }
  0xff   : > { %9520 = vpow2.f32 %v860_v32  ;;  %v862_v36 = vmul.f32 1.442695, %v827_v33 }
 0x100   : > { %9522 = vpow2.f32 %v856_v34  ;;  %v858_v37 = vmul.f32 1.442695, %v825_v35  ;;  %v8633_v38 = vpop.f32.mrb[4].mxu0 }
 0x101   : > { %9524 = vpow2.f32 %v862_v36  ;;  %v9861_v39 = vadd.f32 %v8633_v38, %v9851_v21  ;;  %v681_v40 = vpop.f32.mrb[5].mxu0 }
 0x102   : > { %9526 = vpow2.f32 %v858_v37  ;;  %v9864_v41 = vadd.f32 %v9851_v21, %v681_v40  ;;  %v8634_v42 = vpop.f32.mrb[6].mxu0 }
 0x103   : > { %v830_v43 = vmin.f32 %v9861_v39, 0.0  ;;  %v9868_v44 = vadd.f32 %v8634_v42, %v9851_v21  ;;  %v684_v45 = vpop.f32.mrb[7].mxu0  ;;  %vm798_vm5 = vcmp.gt.f32.partialorder %v9861_v39, 0.0 }
 0x104   : > { %v828_v46 = vmin.f32 %v9864_v41, 0.0  ;;  %v9872_v47 = vadd.f32 %v9851_v21, %v684_v45  ;;  %vm796_vm6 = vcmp.gt.f32.partialorder %v9864_v41, 0.0 }
 0x105   : > { %v868_v48 = vmul.f32 1.442695, %v830_v43  ;;  %v831_v49 = vmin.f32 %v9868_v44, 0.0  ;;  %vm799_vm7 = vcmp.gt.f32.partialorder %v9868_v44, 0.0 }
 0x106   : > { %v864_v50 = vmul.f32 1.442695, %v828_v46  ;;  %v829_v51 = vmin.f32 %v9872_v47, 0.0  ;;  %vm797_vm8 = vcmp.gt.f32.partialorder %v9872_v47, 0.0 }
 0x107   : > { %9528 = vpow2.f32 %v868_v48  ;;  %v870_v52 = vmul.f32 1.442695, %v831_v49 }
 0x108   : > { %9530 = vpow2.f32 %v864_v50  ;;  %v866_v53 = vmul.f32 1.442695, %v829_v51  ;;  %v8637_v54 = vpop.f32.mrb[8].mxu0 }
 0x109   : > { %v9521_v55 = vpop.eup %9520  ;;  %9532 = vpow2.f32 %v870_v52  ;;  %v9877_v56 = vadd.f32 %v8637_v54, %v9851_v21  ;;  %v697_v57 = vpop.f32.mrb[9].mxu0 }
 0x10a   : > { %v9523_v58 = vpop.eup %9522  ;;  %v6978_v59 = vadd.f32 -1.0, %v9521_v55  ;;  %9534 = vpow2.f32 %v866_v53  ;;  %v9880_v60 = vadd.f32 %v9851_v21, %v697_v57  ;;  %v8638_v61 = vpop.f32.mrb[10].mxu0 }
 0x10b   : > { %v9525_v62 = vpop.eup %9524  ;;  %v6976_v63 = vadd.f32 -1.0, %v9523_v58  ;;  %v834_v0 = vmin.f32 %v9877_v56, 0.0  ;;  %v9884_v1 = vadd.f32 %v8638_v61, %v9851_v21  ;;  %v700_v2 = vpop.f32.mrb[11].mxu0  ;;  %vm802_vm9 = vcmp.gt.f32.partialorder %v9877_v56, 0.0 }
 0x10c   : > { %v9527_v3 = vpop.eup %9526  ;;  %v6979_v4 = vadd.f32 -1.0, %v9525_v62  ;;  %v832_v5 = vmin.f32 %v9880_v60, 0.0  ;;  %v954_v6 = vsel %vm794_vm1, %v674_v23, %v6978_v59  ;;  %v9890_v12 = vadd.f32 %v9851_v21, %v700_v2 }
 0x10d   : > { %v6977_v7 = vadd.f32 -1.0, %v9527_v3  ;;  %v876_v8 = vmul.f32 1.442695, %v834_v0  ;;  %v835_v11 = vmin.f32 %v9884_v1, 0.0  ;;  %v952_v13 = vsel %vm792_vm2, %v9855_v25, %v6976_v63 }
 0x10e   : > { %v955_v9 = vsel %vm795_vm3, %v677_v28, %v6979_v4  ;;  %v872_v10 = vmul.f32 1.442695, %v832_v5  ;;  %v833_v20 = vmin.f32 %v9890_v12, 0.0  ;;  %vm803_vm10 = vcmp.gt.f32.partialorder %v9884_v1, 0.0 }
 0x10f   : > { %v9893_v14 = vpack.c.bf16 %v955_v9, %v954_v6  ;;  %v953_v15 = vsel %vm793_vm4, %v669_v31, %v6977_v7  ;;  %9536 = vpow2.f32 %v876_v8  ;;  %v878_v17 = vmul.f32 1.442695, %v835_v11 }
 0x110   : > { %v9895_v16 = vpack.c.bf16 %v953_v15, %v952_v13  ;;  %v8641_v18 = vpop.f32.mrb[12].mxu0  ;;  %9538 = vpow2.f32 %v872_v10  ;;  %v874_v30 = vmul.f32 1.442695, %v833_v20  ;;  %vm800_vm11 = vcmp.gt.f32.partialorder %v9880_v60, 0.0 }
 0x111   : > { %v9529_v19 = vpop.eup %9528  ;;  %v9899_v22 = vadd.f32 %v8641_v18, %v9851_v21  ;;  %v713_v23 = vpop.f32.mrb[13].mxu0  ;;  %9540 = vpow2.f32 %v878_v17  ;;  %vm801_vm12 = vcmp.gt.f32.partialorder %v9890_v12, 0.0 }
 0x112   : > { %v9531_v24 = vpop.eup %9530  ;;  %v6982_v25 = vadd.f32 -1.0, %v9529_v19  ;;  %v9903_v26 = vadd.f32 %v9851_v21, %v713_v23  ;;  %v8642_v27 = vpop.f32.mrb[14].mxu0  ;;  %9542 = vpow2.f32 %v874_v30 }
 0x113   : > { %v9533_v28 = vpop.eup %9532  ;;  %v6980_v29 = vadd.f32 -1.0, %v9531_v24  ;;  %v838_v31 = vmin.f32 %v9899_v22, 0.0  ;;  %v716_v32 = vpop.f32.mrb[15].mxu0  ;;  %v9915_v43 = vadd.f32 %v8642_v27, %v9851_v21  ;;  %vm806_vm13 = vcmp.gt.f32.partialorder %v9899_v22, 0.0 }
 0x114   : > { %v9535_v33 = vpop.eup %9534  ;;  %v6983_v34 = vadd.f32 -1.0, %v9533_v28  ;;  %v836_v35 = vmin.f32 %v9903_v26, 0.0  ;;  %v958_v36 = vsel %vm798_vm5, %v9861_v39, %v6982_v25  ;;  %v9918_v45 = vadd.f32 %v9851_v21, %v716_v32 }
 0x115   : > { %v6981_v37 = vadd.f32 -1.0, %v9535_v33  ;;  %v884_v38 = vmul.f32 1.442695, %v838_v31  ;;  %v956_v46 = vsel %vm796_vm6, %v9864_v41, %v6980_v29  ;;  %vm804_vm14 = vcmp.gt.f32.partialorder %v9903_v26, 0.0 }
 0x116   : > { %v959_v40 = vsel %vm799_vm7, %v9868_v44, %v6983_v34  ;;  %v880_v42 = vmul.f32 1.442695, %v836_v35  ;;  %v839_v44 = vmin.f32 %v9915_v43, 0.0  ;;  %v837_v52 = vmin.f32 %v9918_v45, 0.0 }
 0x117   : > { %v9923_v48 = vpack.c.bf16 %v959_v40, %v958_v36  ;;  %v957_v39 = vsel %vm797_vm8, %v9872_v47, %v6981_v37  ;;  %9544 = vpow2.f32 %v884_v38  ;;  %vm807_vm15 = vcmp.gt.f32.partialorder %v9915_v43, 0.0 }
 0x118   : > { %v9926_v49 = vpack.c.bf16 %v957_v39, %v956_v46  ;;  %v8645_v50 = vpop.f32.mrb[16].mxu0  ;;  %9546 = vpow2.f32 %v880_v42  ;;  %v886_v55 = vmul.f32 1.442695, %v839_v44  ;;  %v882_v59 = vmul.f32 1.442695, %v837_v52 }
 0x119   : > { %v9537_v51 = vpop.eup %9536  ;;  %v9931_v53 = vadd.f32 %v8645_v50, %v9851_v21  ;;  %v729_v54 = vpop.f32.mrb[17].mxu0  ;;  %vm805_vm0 = vcmp.gt.f32.partialorder %v9918_v45, 0.0 }
 0x11a   : > { %v9934_v41 = vadd.f32 %v9851_v21, %v729_v54  ;;  %v8646_v57 = vpop.f32.mrb[18].mxu0  ;;  %v9539_v47 = vpop.eup %9538  ;;  %v6986_v58 = vadd.f32 -1.0, %v9537_v51  ;;  %9548 = vpow2.f32 %v886_v55 }
 0x11b   : > { %v842_v61 = vmin.f32 %v9931_v53, 0.0  ;;  %v732_v62 = vpop.f32.mrb[19].mxu0  ;;  %v9541_v63 = vpop.eup %9540  ;;  %9550 = vpow2.f32 %v882_v59  ;;  %v6984_v4 = vadd.f32 -1.0, %v9539_v47  ;;  %v9941_v6 = vadd.f32 %v8646_v57, %v9851_v21 }
 0x11c   : > { %v840_v0 = vmin.f32 %v9934_v41, 0.0  ;;  %v6987_v2 = vadd.f32 -1.0, %v9541_v63  ;;  %v9944_v7 = vadd.f32 %v9851_v21, %v732_v62  ;;  %v9543_v8 = vpop.eup %9542  ;;  %v962_v9 = vsel %vm802_vm9, %v9877_v56, %v6986_v58 }
 0x11d   : > { %v892_v3 = vmul.f32 1.442695, %v842_v61  ;;  %v6985_v13 = vadd.f32 -1.0, %v9543_v8  ;;  %v843_v18 = vmin.f32 %v9941_v6, 0.0  ;;  %vm810_vm1 = vcmp.gt.f32.partialorder %v9931_v53, 0.0 }
 0x11e   : > { %v888_v5 = vmul.f32 1.442695, %v840_v0  ;;  %v963_v10 = vsel %vm803_vm10, %v9884_v1, %v6987_v2  ;;  %v841_v19 = vmin.f32 %v9944_v7, 0.0  ;;  %v960_v1 = vsel %vm800_vm11, %v9880_v60, %v6984_v4 }
 0x11f   : > { %v9949_v11 = vpack.c.bf16 %v963_v10, %v962_v9  ;;  %9552 = vpow2.f32 %v892_v3  ;;  %v961_v23 = vsel %vm801_vm12, %v9890_v12, %v6985_v13  ;;  %v894_v29 = vmul.f32 1.442695, %v843_v18 }
 0x120   : > { %v8649_v15 = vpop.f32.mrb[20].mxu0  ;;  %9554 = vpow2.f32 %v888_v5  ;;  %v9962_v28 = vpack.c.bf16 %v961_v23, %v960_v1  ;;  %v890_v30 = vmul.f32 1.442695, %v841_v19  ;;  %vm808_vm2 = vcmp.gt.f32.partialorder %v9934_v41, 0.0 }
 0x121   : > { %v9545_v17 = vpop.eup %9544  ;;  %v9955_v20 = vadd.f32 %v8649_v15, %v9851_v21  ;;  %v745_v56 = vpop.f32.mrb[21].mxu0  ;;  %9556 = vpow2.f32 %v894_v29  ;;  %vm811_vm3 = vcmp.gt.f32.partialorder %v9941_v6, 0.0  ;;  %vm809_vm4 = vcmp.gt.f32.partialorder %v9944_v7, 0.0 }
 0x122   : > { %v9960_v24 = vadd.f32 %v9851_v21, %v745_v56  ;;  %v8650_v25 = vpop.f32.mrb[22].mxu0  ;;  %v9547_v27 = vpop.eup %9546  ;;  %v6990_v32 = vadd.f32 -1.0, %v9545_v17  ;;  %9558 = vpow2.f32 %v890_v30 }
 0x123   : > { %v748_v31 = vpop.f32.mrb[23].mxu0  ;;  %v846_v60 = vmin.f32 %v9955_v20, 0.0  ;;  %v9970_v33 = vadd.f32 %v8650_v25, %v9851_v21  ;;  %v6988_v35 = vadd.f32 -1.0, %v9547_v27  ;;  %vm814_vm5 = vcmp.gt.f32.partialorder %v9955_v20, 0.0 }
 0x124   : > { %v844_v12 = vmin.f32 %v9960_v24, 0.0  ;;  %v9549_v34 = vpop.eup %9548  ;;  %v9973_v37 = vadd.f32 %v9851_v21, %v748_v31  ;;  %v966_v39 = vsel %vm806_vm13, %v9899_v22, %v6990_v32  ;;  %vm812_vm6 = vcmp.gt.f32.partialorder %v9960_v24, 0.0 }
 0x125   : > { %v900_v36 = vmul.f32 1.442695, %v846_v60  ;;  %v9551_v38 = vpop.eup %9550  ;;  %v6991_v40 = vadd.f32 -1.0, %v9549_v34  ;;  %v847_v46 = vmin.f32 %v9970_v33, 0.0  ;;  %v964_v47 = vsel %vm804_vm14, %v9903_v26, %v6988_v35 }
 0x126   : > { %v896_v42 = vmul.f32 1.442695, %v844_v12  ;;  %v6989_v44 = vadd.f32 -1.0, %v9551_v38  ;;  %v845_v50 = vmin.f32 %v9973_v37, 0.0  ;;  %vm815_vm7 = vcmp.gt.f32.partialorder %v9970_v33, 0.0 }
 0x127   : > { %9560 = vpow2.f32 %v900_v36  ;;  %v967_v52 = vsel %vm807_vm15, %v9915_v43, %v6991_v40  ;;  %v902_v54 = vmul.f32 1.442695, %v847_v46  ;;  %vm813_vm8 = vcmp.gt.f32.partialorder %v9973_v37, 0.0 }
 0x128   : > { %v8653_v51 = vpop.f32.mrb[24].mxu0  ;;  %9562 = vpow2.f32 %v896_v42  ;;  %v9990_v22 = vpack.c.bf16 %v967_v52, %v966_v39  ;;  %v965_v58 = vsel %vm805_vm0, %v9918_v45, %v6989_v44  ;;  %v898_v59 = vmul.f32 1.442695, %v845_v50 }
 0x129   : > { %v9985_v55 = vadd.f32 %v8653_v51, %v9851_v21  ;;  %v761_v57 = vpop.f32.mrb[25].mxu0  ;;  %v9553_v62 = vpop.eup %9552  ;;  %v9993_v63 = vpack.c.bf16 %v965_v58, %v964_v47  ;;  %9564 = vpow2.f32 %v902_v54 }
 0x12a   : > { %v8654_v61 = vpop.f32.mrb[26].mxu0  ;;  %v9555_v0 = vpop.eup %9554  ;;  %9566 = vpow2.f32 %v898_v59  ;;  %v9997_v3 = vadd.f32 %v9851_v21, %v761_v57  ;;  %v6994_v4 = vadd.f32 -1.0, %v9553_v62 }
 0x12b   : > { %v764_v43 = vpop.f32.mrb[27].mxu0  ;;  %v850_v2 = vmin.f32 %v9985_v55, 0.0  ;;  %v10001_v26 = vadd.f32 %v8654_v61, %v9851_v21  ;;  %v9557_v9 = vpop.eup %9556  ;;  %v6992_v10 = vadd.f32 -1.0, %v9555_v0  ;;  %vm818_vm9 = vcmp.gt.f32.partialorder %v9985_v55, 0.0 }
 0x12c   : > { %v10004_v45 = vadd.f32 %v9851_v21, %v764_v43  ;;  %v848_v8 = vmin.f32 %v9997_v3, 0.0  ;;  %v9559_v17 = vpop.eup %9558  ;;  %v6995_v18 = vadd.f32 -1.0, %v9557_v9  ;;  %v970_v31 = vsel %vm810_vm1, %v9931_v53, %v6994_v4 }
 0x12d   : > { %v908_v5 = vmul.f32 1.442695, %v850_v2  ;;  %v851_v13 = vmin.f32 %v10001_v26, 0.0  ;;  %v6993_v1 = vadd.f32 -1.0, %v9559_v17  ;;  %v968_v35 = vsel %vm808_vm2, %v9934_v41, %v6992_v10 }
 0x12e   : > { %v849_v15 = vmin.f32 %v10004_v45, 0.0  ;;  %v904_v19 = vmul.f32 1.442695, %v848_v8  ;;  %v971_v32 = vsel %vm811_vm3, %v9941_v6, %v6995_v18  ;;  %vm819_vm10 = vcmp.gt.f32.partialorder %v10001_v26, 0.0 }
 0x12f   : > { %9568 = vpow2.f32 %v908_v5  ;;  %v910_v23 = vmul.f32 1.442695, %v851_v13  ;;  %v10027_v36 = vpack.c.bf16 %v971_v32, %v970_v31  ;;  %v969_v53 = vsel %vm809_vm4, %v9944_v7, %v6993_v1 }
 0x130   : > { %v8657_v56 = vpop.f32.mrb[28].mxu0  ;;  %v906_v25 = vmul.f32 1.442695, %v849_v15  ;;  %9570 = vpow2.f32 %v904_v19  ;;  %v10032_v40 = vpack.c.bf16 %v969_v53, %v968_v35  ;;  %vm816_vm11 = vcmp.gt.f32.partialorder %v9997_v3, 0.0  ;;  %v9122_v53 = vld [vmem:[%s12362_s3 + $0x14] ss:$8 sps:$4 sm:$0xff]  }
 0x131   : > { %v10013_v27 = vadd.f32 %v8657_v56, %v9851_v21  ;;  %v777_v29 = vpop.f32.mrb[29].mxu0  ;;  %v9561_v30 = vpop.eup %9560  ;;  %9572 = vpow2.f32 %v910_v23  ;;  %vm817_vm12 = vcmp.gt.f32.partialorder %v10004_v45, 0.0  ;;  %vm2983_vm1 = vcmask 523264  }
 0x132   : > { %v10022_v60 = vadd.f32 %v9851_v21, %v777_v29  ;;  %v8658_v12 = vpop.f32.mrb[30].mxu0  ;;  %v9563_v34 = vpop.eup %9562  ;;  %v6998_v6 = vadd.f32 -1.0, %v9561_v30  ;;  %9574 = vpow2.f32 %v906_v25  ;;  %7568 = vmatprep.subr.bf16.mxu1 %v10032_v40  ;;  %7648 = vmatprep.subr.bf16.mxu0 %v10032_v40  ;;  %vm9674_vm2 = vmmov 0  }
 0x133   : > { %v780_v38 = vpop.f32.mrb[31].mxu0  ;;  %v6996_v42 = vadd.f32 -1.0, %v9563_v34  ;;  %v9565_v46 = vpop.eup %9564  ;;  %v854_v41 = vmin.f32 %v10013_v27, 0.0  ;;  %v10040_v50 = vadd.f32 %v8658_v12, %v9851_v21  ;;  %7569 = vmatpush3.bf16.msra.mxu1 %v9895_v16  ;;  %7649 = vmatpush3.bf16.msra.mxu0 %v9895_v16  ;;  %vm822_vm13 = vcmp.gt.f32.partialorder %v10013_v27, 0.0 }
 0x134   : > { %v852_v39 = vmin.f32 %v10022_v60, 0.0  ;;  %v9567_v44 = vpop.eup %9566  ;;  %v6999_v7 = vadd.f32 -1.0, %v9565_v46  ;;  %v10045_v51 = vadd.f32 %v9851_v21, %v780_v38  ;;  %v974_v47 = vsel %vm814_vm5, %v9955_v20, %v6998_v6  ;;  %7570 = vmatprep.subr.bf16.mxu1 %v10027_v36  ;;  %7650 = vmatprep.subr.bf16.mxu0 %v10027_v36  ;;  %v9125_v38 = vld [vmem:[%s12362_s3 + $0x94] ss:$8 sps:$4 sm:$0xff]   ;;  %v9124_v6 = vld [vmem:[%s12362_s3 + $0x10] ss:$8 sps:$4 sm:$0xff]  }
 0x135   : > { %v6997_v52 = vadd.f32 -1.0, %v9567_v44  ;;  %v916_v54 = vmul.f32 1.442695, %v854_v41  ;;  %v972_v58 = vsel %vm812_vm6, %v9960_v24, %v6996_v42  ;;  %v855_v59 = vmin.f32 %v10040_v50, 0.0  ;;  %v9127_v42 = vld [vmem:[%s12362_s3 + $0x90] ss:$8 sps:$4 sm:$0xff]  }
 0x136   : > { %v912_v57 = vmul.f32 1.442695, %v852_v39  ;;  %v975_v21 = vsel %vm815_vm7, %v9970_v33, %v6999_v7  ;;  %v853_v43 = vmin.f32 %v10045_v51, 0.0  ;;  %vm823_vm14 = vcmp.gt.f32.partialorder %v10040_v50, 0.0  ;;  %v9128_v46 = vld [vmem:[%s12362_s3 + $0x24] ss:$8 sps:$4 sm:$0xff]  }
 0x137   : > { %v10060_v61 = vpack.c.bf16 %v975_v21, %v974_v47  ;;  %v973_v62 = vsel %vm813_vm8, %v9973_v37, %v6997_v52  ;;  %9576 = vpow2.f32 %v916_v54  ;;  %v918_v24 = vmul.f32 1.442695, %v855_v59  ;;  %7571 = vmatpush3.bf16.msra.mxu1 %v9893_v14  ;;  %7651 = vmatpush3.bf16.msra.mxu0 %v9893_v14  ;;  %v9131_v41 = vld [vmem:[%s12362_s3 + $0xa4] ss:$8 sps:$4 sm:$0xff]   ;;  %v9130_v39 = vld [vmem:[%s12362_s3 + $0x20] ss:$8 sps:$4 sm:$0xff]  }
 0x138   : > { %v10064_v0 = vpack.c.bf16 %v973_v62, %v972_v58  ;;  %9578 = vpow2.f32 %v912_v57  ;;  %v914_v2 = vmul.f32 1.442695, %v853_v43  ;;  %vm820_vm15 = vcmp.gt.f32.partialorder %v10022_v60, 0.0  ;;  %v9133_v44 = vld [vmem:[%s12362_s3 + $0xa0] ss:$8 sps:$4 sm:$0xff]  }
 0x139   : > { %v9569_v20 = vpop.eup %9568  ;;  %9580 = vpow2.f32 %v918_v24  ;;  %vm821_vm0 = vcmp.gt.f32.partialorder %v10045_v51, 0.0  ;;  %v9134_v7 = vld [vmem:[%s12362_s3 + $0x34] ss:$8 sps:$4 sm:$0xff]   ;;  %v9139_v52 = vld [vmem:[%s12362_s3 + $0xb0] ss:$8 sps:$4 sm:$0xff]  }
 0x13a   : > { %v9571_v33 = vpop.eup %9570  ;;  %v7002_v4 = vadd.f32 -1.0, %v9569_v20  ;;  %7572 = vmatprep.subr.bf16.mxu1 %v10064_v0  ;;  %7652 = vmatprep.subr.bf16.mxu0 %v10064_v0  ;;  %9582 = vpow2.f32 %v914_v2  ;;  %v9142_v54 = vld [vmem:[%s12362_s3 + $0x44] ss:$8 sps:$4 sm:$0xff]   ;;  %v9140_v47 = vld [vmem:[%s12362_s3 + $0x40] ss:$8 sps:$4 sm:$0xff]  }
 0x13b   : > { %v9573_v37 = vpop.eup %9572  ;;  %v7000_v5 = vadd.f32 -1.0, %v9571_v33  ;;  %7573 = vmatpush3.bf16.msra.mxu1 %v9926_v49  ;;  %7653 = vmatpush3.bf16.msra.mxu0 %v9926_v49  ;;  %v9145_v57 = vld [vmem:[%s12362_s3 + $0x104] ss:$8 sps:$4 sm:$0xff]   ;;  %v9143_v58 = vld [vmem:[%s12362_s3 + $0x100] ss:$8 sps:$4 sm:$0xff]  }
 0x13c   : > { %v9575_v8 = vpop.eup %9574  ;;  %v7003_v9 = vadd.f32 -1.0, %v9573_v37  ;;  %v978_v13 = vsel %vm818_vm9, %v9985_v55, %v7002_v4  ;;  %7574 = vmatprep.subr.bf16.mxu1 %v10060_v61  ;;  %7654 = vmatprep.subr.bf16.mxu0 %v10060_v61  ;;  %v9146_v21 = vld [vmem:[%s12362_s3 + $0x54] ss:$8 sps:$4 sm:$0xff]   ;;  %v9148_v62 = vld [vmem:[%s12362_s3 + $0x50] ss:$8 sps:$4 sm:$0xff]  }
 0x13d   : > { %v7001_v10 = vadd.f32 -1.0, %v9575_v8  ;;  %v976_v17 = vsel %vm816_vm11, %v9997_v3, %v7000_v5  ;;  %v9149_v59 = vld [vmem:[%s12362_s3 + $0x114] ss:$8 sps:$4 sm:$0xff]   ;;  %v9151_v43 = vld [vmem:[%s12362_s3 + $0x110] ss:$8 sps:$4 sm:$0xff]  }
 0x13e   : > { %v979_v15 = vsel %vm819_vm10, %v10001_v26, %v7003_v9  ;;  %v9152_v20 = vld [vmem:[%s12362_s3 + $0x64] ss:$8 sps:$4 sm:$0xff]   ;;  %v9154_v2 = vld [vmem:[%s12362_s3 + $0x60] ss:$8 sps:$4 sm:$0xff]   ;;  %v9158_v4 = vld [vmem:[%s12362_s3 + $0x74] ss:$8 sps:$4 sm:$0xff]  }
 0x13f   : > { %v10081_v18 = vpack.c.bf16 %v979_v15, %v978_v13  ;;  %v977_v19 = vsel %vm817_vm12, %v10004_v45, %v7001_v10  ;;  %7575 = vmatpush3.bf16.msra.mxu1 %v9923_v48  ;;  %7655 = vmatpush3.bf16.msra.mxu0 %v9923_v48  ;;  %v9155_v24 = vld [vmem:[%s12362_s3 + $0x124] ss:$8 sps:$4 sm:$0xff]   ;;  %v9157_v33 = vld [vmem:[%s12362_s3 + $0x120] ss:$8 sps:$4 sm:$0xff]   ;;  %v9161_v37 = vld [vmem:[%s12362_s3 + $0x134] ss:$8 sps:$4 sm:$0xff]  }
 0x140   : > { %v10084_v56 = vpack.c.bf16 %v977_v19, %v976_v17  ;;  %v9160_v5 = vld [vmem:[%s12362_s3 + $0x70] ss:$8 sps:$4 sm:$0xff]   ;;  %v9166_v9 = vld [vmem:[%s12362_s3 + $0xc4] ss:$8 sps:$4 sm:$0xff]   ;;  %v9164_v13 = vld [vmem:[%s12362_s3 + $0xc0] ss:$8 sps:$4 sm:$0xff]  }
 0x141   : > { %v9577_v1 = vpop.eup %9576  ;;  %v9163_v8 = vld [vmem:[%s12362_s3 + $0x130] ss:$8 sps:$4 sm:$0xff]   ;;  %v9169_v10 = vld [vmem:[%s12362_s3 + $0x184] ss:$8 sps:$4 sm:$0xff]   ;;  %v9167_v15 = vld [vmem:[%s12362_s3 + $0x180] ss:$8 sps:$4 sm:$0xff]  }
 0x142   : > { %v9579_v55 = vpop.eup %9578  ;;  %7576 = vmatprep.subr.bf16.mxu1 %v10084_v56  ;;  %7656 = vmatprep.subr.bf16.mxu0 %v10084_v56  ;;  %v7006_v26 = vadd.f32 -1.0, %v9577_v1  ;;  %v9170_v17 = vld [vmem:[%s12362_s3 + $0xd4] ss:$8 sps:$4 sm:$0xff]   ;;  %v9172_v1 = vld [vmem:[%s12362_s3 + $0xd0] ss:$8 sps:$4 sm:$0xff]  }
 0x143   : > { %v9581_v23 = vpop.eup %9580  ;;  %v7004_v25 = vadd.f32 -1.0, %v9579_v55  ;;  %7577 = vmatpush3.bf16.msra.mxu1 %v9962_v28  ;;  %7657 = vmatpush3.bf16.msra.mxu0 %v9962_v28  ;;  %v9173_v19 = vld [vmem:[%s12362_s3 + $0x194] ss:$8 sps:$4 sm:$0xff]   ;;  %v9175_v55 = vld [vmem:[%s12362_s3 + $0x190] ss:$8 sps:$4 sm:$0xff]  }
 0x144   : > { %v9583_v3 = vpop.eup %9582  ;;  %v7007_v29 = vadd.f32 -1.0, %v9581_v23  ;;  %7578 = vmatprep.subr.bf16.mxu1 %v10081_v18  ;;  %7658 = vmatprep.subr.bf16.mxu0 %v10081_v18  ;;  %v982_v30 = vsel %vm822_vm13, %v10013_v27, %v7006_v26  ;;  %v9116_v27 = vld [vmem:[%s12362_s3] ss:$8 sps:$4 sm:$0xff]   ;;  %v9176_v26 = vld [vmem:[%s12362_s3 + $0xe4] ss:$8 sps:$4 sm:$0xff]  }
 0x145   : > { %v7005_v45 = vadd.f32 -1.0, %v9583_v3  ;;  %v980_v32 = vsel %vm820_vm15, %v10022_v60, %v7004_v25  ;;  %v9119_v60 = vld [vmem:[%s12362_s3 + $0x80] ss:$8 sps:$4 sm:$0xff]   ;;  %v9179_v23 = vld [vmem:[%s12362_s3 + $0x1a4] ss:$8 sps:$4 sm:$0xff]  }
 0x146   : > { %v983_v31 = vsel %vm823_vm14, %v10040_v50, %v7007_v29  ;;  %v9137_v50 = vld [vmem:[%s12362_s3 + $0xb4] ss:$8 sps:$4 sm:$0xff]   ;;  %v9178_v25 = vld [vmem:[%s12362_s3 + $0xe0] ss:$8 sps:$4 sm:$0xff]   ;;  %vm6864_vm14 = vcmask 253952  }
 0x147   : > { %v10101_v12 = vpack.c.bf16 %v983_v31, %v982_v30  ;;  %v981_v34 = vsel %vm821_vm0, %v10045_v51, %v7005_v45  ;;  %7579 = vmatpush3.bf16.msra.mxu1 %v9949_v11  ;;  %7659 = vmatpush3.bf16.msra.mxu0 %v9949_v11  ;;  %v9136_v51 = vld [vmem:[%s12362_s3 + $0x30] ss:$8 sps:$4 sm:$0xff]   ;;  %v9181_v3 = vld [vmem:[%s12362_s3 + $0x1a0] ss:$8 sps:$4 sm:$0xff]   ;;  %v9182_v29 = vld [vmem:[%s12362_s3 + $0xf4] ss:$8 sps:$4 sm:$0xff]  }
 0x148   : > { %v10104_v35 = vpack.c.bf16 %v981_v34, %v980_v32  ;;  %v9185_v45 = vld [vmem:[%s12362_s3 + $0x1b4] ss:$8 sps:$4 sm:$0xff]   ;;  %v9184_v30 = vld [vmem:[%s12362_s3 + $0xf0] ss:$8 sps:$4 sm:$0xff]   ;;  %v9190_v32 = vld [vmem:[%s12362_s3 + $0x144] ss:$8 sps:$4 sm:$0xff]  }
 0x149   : > { %v9187_v31 = vld [vmem:[%s12362_s3 + $0x1b0] ss:$8 sps:$4 sm:$0xff]   ;;  %v9193_v34 = vld [vmem:[%s12362_s3 + $0x204] ss:$8 sps:$4 sm:$0xff]  }
 0x14a   : > { %7580 = vmatprep.subr.bf16.mxu1 %v10104_v35  ;;  %7660 = vmatprep.subr.bf16.mxu0 %v10104_v35 }
 0x14b   : > { %7581 = vmatpush3.bf16.msra.mxu1 %v9993_v63  ;;  %7661 = vmatpush3.bf16.msra.mxu0 %v9993_v63 }
 0x14c   : > { %7582 = vmatprep.subr.bf16.mxu1 %v10101_v12  ;;  %7662 = vmatprep.subr.bf16.mxu0 %v10101_v12 }
 0x14f   : > { %7583 = vmatpush3.bf16.msra.mxu1 %v9990_v22  ;;  %7663 = vmatpush3.bf16.msra.mxu0 %v9990_v22 }
 0x150   : > { %7608 = vmatprep.subr.bf16.mxu1 %v10032_v40  ;;  %7728 = vmatprep.subr.bf16.mxu0 %v10032_v40 }
 0x152   : > { %1081 = vmatmul.mubr.bf16.vlgmr.msra.gmra.mrb[0].mxu1 %v9116_v27  ;;  %1317 = vmatmul.mubr.bf16.vlgmr.msra.gmra.mrb[32].mxu0 %v9119_v60  ;;  %v9188_v27 = vld [vmem:[%s12362_s3 + $0x140] ss:$8 sps:$4 sm:$0xff]  }
 0x153   : > { %7609 = vmatpush3.bf16.msra.mxu1 %v9895_v16  ;;  %7729 = vmatpush3.bf16.msra.mxu0 %v9895_v16  ;;  %v9191_v60 = vld [vmem:[%s12362_s3 + $0x200] ss:$8 sps:$4 sm:$0xff]  }
 0x154   : > { %7610 = vmatprep.subr.bf16.mxu1 %v10027_v36  ;;  %7730 = vmatprep.subr.bf16.mxu0 %v10027_v36 }
 0x155   : > { %1088 = vmatprep.mubr.bf16.mxu1 %v9122_v53  ;;  %1324 = vmatprep.mubr.bf16.mxu0 %v9125_v38  ;;  %v9194_v53 = vld [vmem:[%s12362_s3 + $0x154] ss:$8 sps:$4 sm:$0xff]  }
 0x156   : > { %v9197_v38 = vld [vmem:[%s12362_s3 + $0x214] ss:$8 sps:$4 sm:$0xff]  }
 0x157   : > { %7611 = vmatpush3.bf16.msra.mxu1 %v9893_v14  ;;  %7731 = vmatpush3.bf16.msra.mxu0 %v9893_v14 }
 0x158   : > { %7612 = vmatprep.subr.bf16.mxu1 %v10064_v0  ;;  %7732 = vmatprep.subr.bf16.mxu0 %v10064_v0 }
 0x15a   : > { %1089 = vmatmul.mubr.bf16.gmra.mrb[4].mxu1 %v9124_v6  ;;  %1325 = vmatmul.mubr.bf16.gmra.mrb[36].mxu0 %v9127_v42  ;;  %v9196_v6 = vld [vmem:[%s12362_s3 + $0x150] ss:$8 sps:$4 sm:$0xff]  }
 0x15b   : > { %7613 = vmatpush3.bf16.msra.mxu1 %v9926_v49  ;;  %7733 = vmatpush3.bf16.msra.mxu0 %v9926_v49  ;;  %v9199_v42 = vld [vmem:[%s12362_s3 + $0x210] ss:$8 sps:$4 sm:$0xff]  }
 0x15c   : > { %7614 = vmatprep.subr.bf16.mxu1 %v10060_v61  ;;  %7734 = vmatprep.subr.bf16.mxu0 %v10060_v61 }
 0x15d   : > { %1096 = vmatprep.mubr.bf16.mxu1 %v9128_v46  ;;  %1332 = vmatprep.mubr.bf16.mxu0 %v9131_v41  ;;  %v9200_v46 = vld [vmem:[%s12362_s3 + $0x164] ss:$8 sps:$4 sm:$0xff]  }
 0x15e   : > { %v9203_v41 = vld [vmem:[%s12362_s3 + $0x224] ss:$8 sps:$4 sm:$0xff]  }
 0x15f   : > { %7615 = vmatpush3.bf16.msra.mxu1 %v9923_v48  ;;  %7735 = vmatpush3.bf16.msra.mxu0 %v9923_v48 }
 0x160   : > { %7616 = vmatprep.subr.bf16.mxu1 %v10084_v56  ;;  %7736 = vmatprep.subr.bf16.mxu0 %v10084_v56 }
 0x162   : > { %1097 = vmatmul.mubr.bf16.gmra.mrb[8].mxu1 %v9130_v39  ;;  %1333 = vmatmul.mubr.bf16.gmra.mrb[40].mxu0 %v9133_v44  ;;  %v9202_v39 = vld [vmem:[%s12362_s3 + $0x160] ss:$8 sps:$4 sm:$0xff]  }
 0x163   : > { %7617 = vmatpush3.bf16.msra.mxu1 %v9962_v28  ;;  %7737 = vmatpush3.bf16.msra.mxu0 %v9962_v28  ;;  %v9205_v44 = vld [vmem:[%s12362_s3 + $0x220] ss:$8 sps:$4 sm:$0xff]  }
 0x164   : > { %7618 = vmatprep.subr.bf16.mxu1 %v10081_v18  ;;  %7738 = vmatprep.subr.bf16.mxu0 %v10081_v18 }
 0x165   : > { %1104 = vmatprep.mubr.bf16.mxu1 %v9134_v7  ;;  %1340 = vmatprep.mubr.bf16.mxu0 %v9137_v50  ;;  %v9206_v7 = vld [vmem:[%s12362_s3 + $0x174] ss:$8 sps:$4 sm:$0xff]  }
 0x166   : > { %v9209_v50 = vld [vmem:[%s12362_s3 + $0x234] ss:$8 sps:$4 sm:$0xff]  }
 0x167   : > { %7619 = vmatpush3.bf16.msra.mxu1 %v9949_v11  ;;  %7739 = vmatpush3.bf16.msra.mxu0 %v9949_v11 }
 0x168   : > { %7620 = vmatprep.subr.bf16.mxu1 %v10104_v35  ;;  %7740 = vmatprep.subr.bf16.mxu0 %v10104_v35 }
 0x16a   : > { %1105 = vmatmul.mubr.bf16.gmra.mrb[12].mxu1 %v9136_v51  ;;  %1341 = vmatmul.mubr.bf16.gmra.mrb[44].mxu0 %v9139_v52  ;;  %v9208_v51 = vld [vmem:[%s12362_s3 + $0x170] ss:$8 sps:$4 sm:$0xff]  }
 0x16b   : > { %7621 = vmatpush3.bf16.msra.mxu1 %v9993_v63  ;;  %7741 = vmatpush3.bf16.msra.mxu0 %v9993_v63  ;;  %v9211_v52 = vld [vmem:[%s12362_s3 + $0x230] ss:$8 sps:$4 sm:$0xff]  }
 0x16c   : > { %7622 = vmatprep.subr.bf16.mxu1 %v10101_v12  ;;  %7742 = vmatprep.subr.bf16.mxu0 %v10101_v12 }
 0x16d   : > { %1198 = vmatprep.mubr.bf16.mxu1 %v9142_v54  ;;  %1552 = vmatprep.mubr.bf16.mxu0 %v9145_v57  ;;  %v9214_v54 = vld [vmem:[%s12362_s3 + $0x1c4] ss:$8 sps:$4 sm:$0xff]  }
 0x16e   : > { %v9217_v57 = vld [vmem:[%s12362_s3 + $0x284] ss:$8 sps:$4 sm:$0xff]  }
 0x16f   : > { %7623 = vmatpush3.bf16.msra.mxu1 %v9990_v22  ;;  %7743 = vmatpush3.bf16.msra.mxu0 %v9990_v22 }
 0x170   : > { %7688 = vmatprep.subr.bf16.mxu1 %v10032_v40  ;;  %7808 = vmatprep.subr.bf16.mxu0 %v10032_v40 }
 0x172   : > { %1199 = vmatmul.mubr.bf16.vlgmr.msra.gmra.mrb[16].mxu1 %v9140_v47  ;;  %1553 = vmatmul.mubr.bf16.vlgmr.msra.gmra.mrb[48].mxu0 %v9143_v58  ;;  %v9212_v47 = vld [vmem:[%s12362_s3 + $0x1c0] ss:$8 sps:$4 sm:$0xff]  }
 0x173   : > { %7689 = vmatpush3.bf16.msra.mxu1 %v9895_v16  ;;  %7809 = vmatpush3.bf16.msra.mxu0 %v9895_v16  ;;  %v9215_v58 = vld [vmem:[%s12362_s3 + $0x280] ss:$8 sps:$4 sm:$0xff]  }
 0x174   : > { %7690 = vmatprep.subr.bf16.mxu1 %v10027_v36  ;;  %7810 = vmatprep.subr.bf16.mxu0 %v10027_v36 }
 0x175   : > { %1206 = vmatprep.mubr.bf16.mxu1 %v9146_v21  ;;  %1560 = vmatprep.mubr.bf16.mxu0 %v9149_v59  ;;  %v9218_v21 = vld [vmem:[%s12362_s3 + $0x1d4] ss:$8 sps:$4 sm:$0xff]  }
 0x176   : > { %v9221_v59 = vld [vmem:[%s12362_s3 + $0x294] ss:$8 sps:$4 sm:$0xff]  }
 0x177   : > { %7691 = vmatpush3.bf16.msra.mxu1 %v9893_v14  ;;  %7811 = vmatpush3.bf16.msra.mxu0 %v9893_v14 }
 0x178   : > { %7692 = vmatprep.subr.bf16.mxu1 %v10064_v0  ;;  %7812 = vmatprep.subr.bf16.mxu0 %v10064_v0 }
 0x17a   : > { %1207 = vmatmul.mubr.bf16.gmra.mrb[20].mxu1 %v9148_v62  ;;  %1561 = vmatmul.mubr.bf16.gmra.mrb[52].mxu0 %v9151_v43  ;;  %v9220_v62 = vld [vmem:[%s12362_s3 + $0x1d0] ss:$8 sps:$4 sm:$0xff]  }
 0x17b   : > { %7693 = vmatpush3.bf16.msra.mxu1 %v9926_v49  ;;  %7813 = vmatpush3.bf16.msra.mxu0 %v9926_v49  ;;  %v9223_v43 = vld [vmem:[%s12362_s3 + $0x290] ss:$8 sps:$4 sm:$0xff]  }
 0x17c   : > { %7694 = vmatprep.subr.bf16.mxu1 %v10060_v61  ;;  %7814 = vmatprep.subr.bf16.mxu0 %v10060_v61 }
 0x17d   : > { %1214 = vmatprep.mubr.bf16.mxu1 %v9152_v20  ;;  %1568 = vmatprep.mubr.bf16.mxu0 %v9155_v24  ;;  %v9224_v20 = vld [vmem:[%s12362_s3 + $0x1e4] ss:$8 sps:$4 sm:$0xff]  }
 0x17e   : > { %v9227_v24 = vld [vmem:[%s12362_s3 + $0x2a4] ss:$8 sps:$4 sm:$0xff]  }
 0x17f   : > { %7695 = vmatpush3.bf16.msra.mxu1 %v9923_v48  ;;  %7815 = vmatpush3.bf16.msra.mxu0 %v9923_v48 }
 0x180   : > { %7696 = vmatprep.subr.bf16.mxu1 %v10084_v56  ;;  %7816 = vmatprep.subr.bf16.mxu0 %v10084_v56 }
 0x182   : > { %1215 = vmatmul.mubr.bf16.gmra.mrb[24].mxu1 %v9154_v2  ;;  %1569 = vmatmul.mubr.bf16.gmra.mrb[56].mxu0 %v9157_v33  ;;  %v9226_v2 = vld [vmem:[%s12362_s3 + $0x1e0] ss:$8 sps:$4 sm:$0xff]  }
 0x183   : > { %7697 = vmatpush3.bf16.msra.mxu1 %v9962_v28  ;;  %7817 = vmatpush3.bf16.msra.mxu0 %v9962_v28  ;;  %v9229_v33 = vld [vmem:[%s12362_s3 + $0x2a0] ss:$8 sps:$4 sm:$0xff]  }
 0x184   : > { %7698 = vmatprep.subr.bf16.mxu1 %v10081_v18  ;;  %7818 = vmatprep.subr.bf16.mxu0 %v10081_v18 }
 0x185   : > { %1222 = vmatprep.mubr.bf16.mxu1 %v9158_v4  ;;  %1576 = vmatprep.mubr.bf16.mxu0 %v9161_v37  ;;  %v9230_v4 = vld [vmem:[%s12362_s3 + $0x1f4] ss:$8 sps:$4 sm:$0xff]  }
 0x186   : > { %v9233_v37 = vld [vmem:[%s12362_s3 + $0x2b4] ss:$8 sps:$4 sm:$0xff]  }
 0x187   : > { %7699 = vmatpush3.bf16.msra.mxu1 %v9949_v11  ;;  %7819 = vmatpush3.bf16.msra.mxu0 %v9949_v11 }
 0x188   : > { %7700 = vmatprep.subr.bf16.mxu1 %v10104_v35  ;;  %7820 = vmatprep.subr.bf16.mxu0 %v10104_v35 }
 0x18a   : > { %1223 = vmatmul.mubr.bf16.gmra.mrb[28].mxu1 %v9160_v5  ;;  %1577 = vmatmul.mubr.bf16.gmra.mrb[60].mxu0 %v9163_v8  ;;  %v9232_v5 = vld [vmem:[%s12362_s3 + $0x1f0] ss:$8 sps:$4 sm:$0xff]  }
 0x18b   : > { %7701 = vmatpush3.bf16.msra.mxu1 %v9993_v63  ;;  %7821 = vmatpush3.bf16.msra.mxu0 %v9993_v63  ;;  %v9235_v8 = vld [vmem:[%s12362_s3 + $0x2b0] ss:$8 sps:$4 sm:$0xff]  }
 0x18c   : > { %7702 = vmatprep.subr.bf16.mxu1 %v10101_v12  ;;  %7822 = vmatprep.subr.bf16.mxu0 %v10101_v12 }
 0x18d   : > { %1434 = vmatprep.mubr.bf16.mxu1 %v9166_v9  ;;  %1788 = vmatprep.mubr.bf16.mxu0 %v9169_v10  ;;  %v9238_v9 = vld [vmem:[%s12362_s3 + $0x244] ss:$8 sps:$4 sm:$0xff]  }
 0x18e   : > { %v9241_v10 = vld [vmem:[%s12362_s3 + $0x304] ss:$8 sps:$4 sm:$0xff]  }
 0x18f   : > { %7703 = vmatpush3.bf16.msra.mxu1 %v9990_v22  ;;  %7823 = vmatpush3.bf16.msra.mxu0 %v9990_v22 }
 0x190   : > { %7768 = vmatprep.subr.bf16.mxu1 %v10032_v40  ;;  %7888 = vmatprep.subr.bf16.mxu0 %v10032_v40 }
 0x192   : > { %1435 = vmatmul.mubr.bf16.vlgmr.msra.gmra.mrb[32].mxu1 %v9164_v13  ;;  %1789 = vmatmul.mubr.bf16.vlgmr.msra.gmra.mrb[64].mxu0 %v9167_v15  ;;  %v9236_v13 = vld [vmem:[%s12362_s3 + $0x240] ss:$8 sps:$4 sm:$0xff]  }
 0x193   : > { %7769 = vmatpush3.bf16.msra.mxu1 %v9895_v16  ;;  %7889 = vmatpush3.bf16.msra.mxu0 %v9895_v16  ;;  %v9239_v15 = vld [vmem:[%s12362_s3 + $0x300] ss:$8 sps:$4 sm:$0xff]  }
 0x194   : > { %7770 = vmatprep.subr.bf16.mxu1 %v10027_v36  ;;  %7890 = vmatprep.subr.bf16.mxu0 %v10027_v36 }
 0x195   : > { %1442 = vmatprep.mubr.bf16.mxu1 %v9170_v17  ;;  %1796 = vmatprep.mubr.bf16.mxu0 %v9173_v19  ;;  %v9242_v17 = vld [vmem:[%s12362_s3 + $0x254] ss:$8 sps:$4 sm:$0xff]   ;;  %v9244_v19 = vld [vmem:[%s12362_s3 + $0x250] ss:$8 sps:$4 sm:$0xff]  }
 0x197   : > { %7771 = vmatpush3.bf16.msra.mxu1 %v9893_v14  ;;  %7891 = vmatpush3.bf16.msra.mxu0 %v9893_v14 }
 0x198   : > { %7772 = vmatprep.subr.bf16.mxu1 %v10064_v0  ;;  %7892 = vmatprep.subr.bf16.mxu0 %v10064_v0 }
 0x19a   : > { %1443 = vmatmul.mubr.bf16.gmra.mrb[36].mxu1 %v9172_v1  ;;  %1797 = vmatmul.mubr.bf16.gmra.mrb[68].mxu0 %v9175_v55  ;;  %v9245_v1 = vld [vmem:[%s12362_s3 + $0x264] ss:$8 sps:$4 sm:$0xff]   ;;  %v9247_v55 = vld [vmem:[%s12362_s3 + $0x260] ss:$8 sps:$4 sm:$0xff]  }
 0x19b   : > { %7773 = vmatpush3.bf16.msra.mxu1 %v9926_v49  ;;  %7893 = vmatpush3.bf16.msra.mxu0 %v9926_v49 }
 0x19c   : > { %7774 = vmatprep.subr.bf16.mxu1 %v10060_v61  ;;  %7894 = vmatprep.subr.bf16.mxu0 %v10060_v61 }
 0x19d   : > { %1450 = vmatprep.mubr.bf16.mxu1 %v9176_v26  ;;  %1804 = vmatprep.mubr.bf16.mxu0 %v9179_v23  ;;  %v9248_v26 = vld [vmem:[%s12362_s3 + $0x274] ss:$8 sps:$4 sm:$0xff]   ;;  %v9250_v23 = vld [vmem:[%s12362_s3 + $0x270] ss:$8 sps:$4 sm:$0xff]  }
 0x19f   : > { %7775 = vmatpush3.bf16.msra.mxu1 %v9923_v48  ;;  %7895 = vmatpush3.bf16.msra.mxu0 %v9923_v48 }
 0x1a0   : > { %7776 = vmatprep.subr.bf16.mxu1 %v10084_v56  ;;  %7896 = vmatprep.subr.bf16.mxu0 %v10084_v56 }
 0x1a2   : > { %1451 = vmatmul.mubr.bf16.gmra.mrb[40].mxu1 %v9178_v25  ;;  %1805 = vmatmul.mubr.bf16.gmra.mrb[72].mxu0 %v9181_v3  ;;  %v9253_v25 = vld [vmem:[%s12362_s3 + $0x2c4] ss:$8 sps:$4 sm:$0xff]   ;;  %v9251_v3 = vld [vmem:[%s12362_s3 + $0x2c0] ss:$8 sps:$4 sm:$0xff]  }
 0x1a3   : > { %7777 = vmatpush3.bf16.msra.mxu1 %v9962_v28  ;;  %7897 = vmatpush3.bf16.msra.mxu0 %v9962_v28 }
 0x1a4   : > { %7778 = vmatprep.subr.bf16.mxu1 %v10081_v18  ;;  %7898 = vmatprep.subr.bf16.mxu0 %v10081_v18 }
 0x1a5   : > { %1458 = vmatprep.mubr.bf16.mxu1 %v9182_v29  ;;  %1812 = vmatprep.mubr.bf16.mxu0 %v9185_v45  ;;  %v9254_v29 = vld [vmem:[%s12362_s3 + $0x2d4] ss:$8 sps:$4 sm:$0xff]   ;;  %v9256_v45 = vld [vmem:[%s12362_s3 + $0x2d0] ss:$8 sps:$4 sm:$0xff]  }
 0x1a7   : > { %7779 = vmatpush3.bf16.msra.mxu1 %v9949_v11  ;;  %7899 = vmatpush3.bf16.msra.mxu0 %v9949_v11 }
 0x1a8   : > { %7780 = vmatprep.subr.bf16.mxu1 %v10104_v35  ;;  %7900 = vmatprep.subr.bf16.mxu0 %v10104_v35 }
 0x1aa   : > { %1459 = vmatmul.mubr.bf16.gmra.mrb[44].mxu1 %v9184_v30  ;;  %1813 = vmatmul.mubr.bf16.gmra.mrb[76].mxu0 %v9187_v31  ;;  %v9257_v30 = vld [vmem:[%s12362_s3 + $0x2e4] ss:$8 sps:$4 sm:$0xff]   ;;  %v9259_v31 = vld [vmem:[%s12362_s3 + $0x2e0] ss:$8 sps:$4 sm:$0xff]  }
 0x1ab   : > { %7781 = vmatpush3.bf16.msra.mxu1 %v9993_v63  ;;  %7901 = vmatpush3.bf16.msra.mxu0 %v9993_v63 }
 0x1ac   : > { %7782 = vmatprep.subr.bf16.mxu1 %v10101_v12  ;;  %7902 = vmatprep.subr.bf16.mxu0 %v10101_v12 }
 0x1ad   : > { %1670 = vmatprep.mubr.bf16.mxu1 %v9190_v32  ;;  %2024 = vmatprep.mubr.bf16.mxu0 %v9193_v34  ;;  %v9260_v32 = vld [vmem:[%s12362_s3 + $0x2f4] ss:$8 sps:$4 sm:$0xff]  }
 0x1af   : > { %7783 = vmatpush3.bf16.msra.mxu1 %v9990_v22  ;;  %7903 = vmatpush3.bf16.msra.mxu0 %v9990_v22 }
 0x1b0   : > { %7848 = vmatprep.subr.bf16.mxu1 %v10032_v40  ;;  %7968 = vmatprep.subr.bf16.mxu0 %v10032_v40 }
 0x1b2   : > { %1671 = vmatmul.mubr.bf16.vlgmr.msra.gmra.mrb[48].mxu1 %v9188_v27  ;;  %2025 = vmatmul.mubr.bf16.vlgmr.msra.gmra.mrb[80].mxu0 %v9191_v60  ;;  %v9262_v60 = vld [vmem:[%s12362_s3 + $0x2f0] ss:$8 sps:$4 sm:$0xff]  }
 0x1b3   : > { %7849 = vmatpush3.bf16.msra.mxu1 %v9895_v16  ;;  %7969 = vmatpush3.bf16.msra.mxu0 %v9895_v16 }
 0x1b4   : > { %7850 = vmatprep.subr.bf16.mxu1 %v10027_v36  ;;  %7970 = vmatprep.subr.bf16.mxu0 %v10027_v36 }
 0x1b5   : > { %1678 = vmatprep.mubr.bf16.mxu1 %v9194_v53  ;;  %2032 = vmatprep.mubr.bf16.mxu0 %v9197_v38 }
 0x1b7   : > { %7851 = vmatpush3.bf16.msra.mxu1 %v9893_v14  ;;  %7971 = vmatpush3.bf16.msra.mxu0 %v9893_v14 }
 0x1b8   : > { %7852 = vmatprep.subr.bf16.mxu1 %v10064_v0  ;;  %7972 = vmatprep.subr.bf16.mxu0 %v10064_v0 }
 0x1ba   : > { %1679 = vmatmul.mubr.bf16.gmra.mrb[52].mxu1 %v9196_v6  ;;  %2033 = vmatmul.mubr.bf16.gmra.mrb[84].mxu0 %v9199_v42  ;;  %v9265_v6 = vld [vmem:[%s12362_s3 + $0x344] ss:$8 sps:$4 sm:$0xff]   ;;  %v9287_v42 = vld [vmem:[%s12362_s3 + $0x314] ss:$8 sps:$4 sm:$0xff]  }
 0x1bb   : > { %7853 = vmatpush3.bf16.msra.mxu1 %v9926_v49  ;;  %7973 = vmatpush3.bf16.msra.mxu0 %v9926_v49 }
 0x1bc   : > { %7854 = vmatprep.subr.bf16.mxu1 %v10060_v61  ;;  %7974 = vmatprep.subr.bf16.mxu0 %v10060_v61 }
 0x1bd   : > { %1686 = vmatprep.mubr.bf16.mxu1 %v9200_v46  ;;  %2040 = vmatprep.mubr.bf16.mxu0 %v9203_v41  ;;  %v9289_v41 = vld [vmem:[%s12362_s3 + $0x310] ss:$8 sps:$4 sm:$0xff]  }
 0x1bf   : > { %7855 = vmatpush3.bf16.msra.mxu1 %v9923_v48  ;;  %7975 = vmatpush3.bf16.msra.mxu0 %v9923_v48 }
 0x1c0   : > { %7856 = vmatprep.subr.bf16.mxu1 %v10084_v56  ;;  %7976 = vmatprep.subr.bf16.mxu0 %v10084_v56 }
 0x1c2   : > { %1687 = vmatmul.mubr.bf16.gmra.mrb[56].mxu1 %v9202_v39  ;;  %2041 = vmatmul.mubr.bf16.gmra.mrb[88].mxu0 %v9205_v44 }
 0x1c3   : > { %7857 = vmatpush3.bf16.msra.mxu1 %v9962_v28  ;;  %7977 = vmatpush3.bf16.msra.mxu0 %v9962_v28 }
 0x1c4   : > { %7858 = vmatprep.subr.bf16.mxu1 %v10081_v18  ;;  %7978 = vmatprep.subr.bf16.mxu0 %v10081_v18 }
 0x1c5   : > { %1694 = vmatprep.mubr.bf16.mxu1 %v9206_v7  ;;  %2048 = vmatprep.mubr.bf16.mxu0 %v9209_v50 }
 0x1c7   : > { %7859 = vmatpush3.bf16.msra.mxu1 %v9949_v11  ;;  %7979 = vmatpush3.bf16.msra.mxu0 %v9949_v11 }
 0x1c8   : > { %7860 = vmatprep.subr.bf16.mxu1 %v10104_v35  ;;  %7980 = vmatprep.subr.bf16.mxu0 %v10104_v35 }
 0x1ca   : > { %1695 = vmatmul.mubr.bf16.gmra.mrb[60].mxu1 %v9208_v51  ;;  %2049 = vmatmul.mubr.bf16.gmra.mrb[92].mxu0 %v9211_v52  ;;  %v9263_v51 = vld [vmem:[%s12362_s3 + $0x340] ss:$8 sps:$4 sm:$0xff]  }
 0x1cb   : > { %7861 = vmatpush3.bf16.msra.mxu1 %v9993_v63  ;;  %7981 = vmatpush3.bf16.msra.mxu0 %v9993_v63 }
 0x1cc   : > { %7862 = vmatprep.subr.bf16.mxu1 %v10101_v12  ;;  %7982 = vmatprep.subr.bf16.mxu0 %v10101_v12 }
 0x1cd   : > { %1906 = vmatprep.mubr.bf16.mxu1 %v9214_v54  ;;  %2260 = vmatprep.mubr.bf16.mxu0 %v9217_v57  ;;  %v9266_v57 = vld [vmem:[%s12362_s3 + $0x354] ss:$8 sps:$4 sm:$0xff]  }
 0x1cf   : > { %7863 = vmatpush3.bf16.msra.mxu1 %v9990_v22  ;;  %7983 = vmatpush3.bf16.msra.mxu0 %v9990_v22 }
 0x1d0   : > { %7928 = vmatprep.subr.bf16.mxu1 %v10032_v40  ;;  %8048 = vmatprep.subr.bf16.mxu0 %v10032_v40 }
 0x1d2   : > { %1907 = vmatmul.mubr.bf16.vlgmr.msra.gmra.mrb[64].mxu1 %v9212_v47  ;;  %2261 = vmatmul.mubr.bf16.vlgmr.msra.gmra.mrb[96].mxu0 %v9215_v58  ;;  %v9290_v47 = vld [vmem:[%s12362_s3 + $0x324] ss:$8 sps:$4 sm:$0xff]  }
 0x1d3   : > { %7929 = vmatpush3.bf16.msra.mxu1 %v9895_v16  ;;  %8049 = vmatpush3.bf16.msra.mxu0 %v9895_v16 }
 0x1d4   : > { %7930 = vmatprep.subr.bf16.mxu1 %v10027_v36  ;;  %8050 = vmatprep.subr.bf16.mxu0 %v10027_v36 }
 0x1d5   : > { %1914 = vmatprep.mubr.bf16.mxu1 %v9218_v21  ;;  %2268 = vmatprep.mubr.bf16.mxu0 %v9221_v59  ;;  %v9292_v21 = vld [vmem:[%s12362_s3 + $0x320] ss:$8 sps:$4 sm:$0xff]  }
 0x1d7   : > { %7931 = vmatpush3.bf16.msra.mxu1 %v9893_v14  ;;  %8051 = vmatpush3.bf16.msra.mxu0 %v9893_v14 }
 0x1d8   : > { %7932 = vmatprep.subr.bf16.mxu1 %v10064_v0  ;;  %8052 = vmatprep.subr.bf16.mxu0 %v10064_v0 }
 0x1da   : > { %1915 = vmatmul.mubr.bf16.gmra.mrb[68].mxu1 %v9220_v62  ;;  %2269 = vmatmul.mubr.bf16.gmra.mrb[100].mxu0 %v9223_v43 }
 0x1db   : > { %7933 = vmatpush3.bf16.msra.mxu1 %v9926_v49  ;;  %8053 = vmatpush3.bf16.msra.mxu0 %v9926_v49 }
 0x1dc   : > { %7934 = vmatprep.subr.bf16.mxu1 %v10060_v61  ;;  %8054 = vmatprep.subr.bf16.mxu0 %v10060_v61 }
 0x1dd   : > { %1922 = vmatprep.mubr.bf16.mxu1 %v9224_v20  ;;  %2276 = vmatprep.mubr.bf16.mxu0 %v9227_v24 }
 0x1df   : > { %7935 = vmatpush3.bf16.msra.mxu1 %v9923_v48  ;;  %8055 = vmatpush3.bf16.msra.mxu0 %v9923_v48 }
 0x1e0   : > { %7936 = vmatprep.subr.bf16.mxu1 %v10084_v56  ;;  %8056 = vmatprep.subr.bf16.mxu0 %v10084_v56 }
 0x1e2   : > { %1923 = vmatmul.mubr.bf16.gmra.mrb[72].mxu1 %v9226_v2  ;;  %2277 = vmatmul.mubr.bf16.gmra.mrb[104].mxu0 %v9229_v33  ;;  %v9269_v33 = vld [vmem:[%s12362_s3 + $0x364] ss:$8 sps:$4 sm:$0xff]  }
 0x1e3   : > { %7937 = vmatpush3.bf16.msra.mxu1 %v9962_v28  ;;  %8057 = vmatpush3.bf16.msra.mxu0 %v9962_v28 }
 0x1e4   : > { %7938 = vmatprep.subr.bf16.mxu1 %v10081_v18  ;;  %8058 = vmatprep.subr.bf16.mxu0 %v10081_v18 }
 0x1e5   : > { %1930 = vmatprep.mubr.bf16.mxu1 %v9230_v4  ;;  %2284 = vmatprep.mubr.bf16.mxu0 %v9233_v37  ;;  %v9295_v4 = vld [vmem:[%s12362_s3 + $0x330] ss:$8 sps:$4 sm:$0xff]  }
 0x1e7   : > { %7939 = vmatpush3.bf16.msra.mxu1 %v9949_v11  ;;  %8059 = vmatpush3.bf16.msra.mxu0 %v9949_v11 }
 0x1e8   : > { %7940 = vmatprep.subr.bf16.mxu1 %v10104_v35  ;;  %8060 = vmatprep.subr.bf16.mxu0 %v10104_v35 }
 0x1ea   : > { %1931 = vmatmul.mubr.bf16.gmra.mrb[76].mxu1 %v9232_v5  ;;  %2285 = vmatmul.mubr.bf16.gmra.mrb[108].mxu0 %v9235_v8 }
 0x1eb   : > { %7941 = vmatpush3.bf16.msra.mxu1 %v9993_v63  ;;  %8061 = vmatpush3.bf16.msra.mxu0 %v9993_v63 }
 0x1ec   : > { %7942 = vmatprep.subr.bf16.mxu1 %v10101_v12  ;;  %8062 = vmatprep.subr.bf16.mxu0 %v10101_v12 }
 0x1ed   : > { %2142 = vmatprep.mubr.bf16.mxu1 %v9238_v9  ;;  %2496 = vmatprep.mubr.bf16.mxu0 %v9241_v10 }
 0x1ef   : > { %7943 = vmatpush3.bf16.msra.mxu1 %v9990_v22  ;;  %8063 = vmatpush3.bf16.msra.mxu0 %v9990_v22 }
 0x1f0   : > { %8008 = vmatprep.subr.bf16.mxu1 %v10032_v40  ;;  %8128 = vmatprep.subr.bf16.mxu0 %v10032_v40 }
 0x1f2   : > { %2143 = vmatmul.mubr.bf16.vlgmr.msra.gmra.mrb[80].mxu1 %v9236_v13  ;;  %2497 = vmatmul.mubr.bf16.vlgmr.msra.gmra.mrb[112].mxu0 %v9239_v15  ;;  %v9272_v13 = vld [vmem:[%s12362_s3 + $0x374] ss:$8 sps:$4 sm:$0xff]   ;;  %v9296_v15 = vld [vmem:[%s12362_s3 + $0x380] ss:$8 sps:$4 sm:$0xff]  }
 0x1f3   : > { %8009 = vmatpush3.bf16.msra.mxu1 %v9895_v16  ;;  %8129 = vmatpush3.bf16.msra.mxu0 %v9895_v16 }
 0x1f4   : > { %8010 = vmatprep.subr.bf16.mxu1 %v10027_v36  ;;  %8130 = vmatprep.subr.bf16.mxu0 %v10027_v36 }
 0x1f5   : > { %2150 = vmatprep.mubr.bf16.mxu1 %v9242_v17  ;;  %2504 = vmatprep.mubr.bf16.mxu0 %v9287_v42  ;;  %v9310_v42 = vld [vmem:[%s12363_s4 + $0x58] sm:$0xff]  }
 0x1f7   : > { %8011 = vmatpush3.bf16.msra.mxu1 %v9893_v14  ;;  %8131 = vmatpush3.bf16.msra.mxu0 %v9893_v14 }
 0x1f8   : > { %8012 = vmatprep.subr.bf16.mxu1 %v10064_v0  ;;  %8132 = vmatprep.subr.bf16.mxu0 %v10064_v0 }
 0x1fa   : > { %2151 = vmatmul.mubr.bf16.gmra.mrb[84].mxu1 %v9244_v19  ;;  %2505 = vmatmul.mubr.bf16.gmra.mrb[116].mxu0 %v9289_v41  ;;  %v9299_v19 = vld [vmem:[%s12363_s4 + $0x40] sm:$0xff]  }
 0x1fb   : > { %8013 = vmatpush3.bf16.msra.mxu1 %v9926_v49  ;;  %8133 = vmatpush3.bf16.msra.mxu0 %v9926_v49  ;;  %v9311_v41 = vld [vmem:[%s12362_s3 + $0x3a0] ss:$8 sps:$4 sm:$0xff]  }
 0x1fc   : > { %8014 = vmatprep.subr.bf16.mxu1 %v10060_v61  ;;  %8134 = vmatprep.subr.bf16.mxu0 %v10060_v61 }
 0x1fd   : > { %2158 = vmatprep.mubr.bf16.mxu1 %v9245_v1  ;;  %2512 = vmatprep.mubr.bf16.mxu0 %v9290_v47 }
 0x1ff   : > { %8015 = vmatpush3.bf16.msra.mxu1 %v9923_v48  ;;  %8135 = vmatpush3.bf16.msra.mxu0 %v9923_v48 }
 0x200   : > { %8016 = vmatprep.subr.bf16.mxu1 %v10084_v56  ;;  %8136 = vmatprep.subr.bf16.mxu0 %v10084_v56 }
 0x202   : > { %2159 = vmatmul.mubr.bf16.gmra.mrb[88].mxu1 %v9247_v55  ;;  %2513 = vmatmul.mubr.bf16.gmra.mrb[120].mxu0 %v9292_v21 }
 0x203   : > { %8017 = vmatpush3.bf16.msra.mxu1 %v9962_v28  ;;  %8137 = vmatpush3.bf16.msra.mxu0 %v9962_v28 }
 0x204   : > { %8018 = vmatprep.subr.bf16.mxu1 %v10081_v18  ;;  %8138 = vmatprep.subr.bf16.mxu0 %v10081_v18 }
 0x205   : > { %2166 = vmatprep.mubr.bf16.mxu1 %v9248_v26  ;;  %v9274_v26 = vld [vmem:[%s12362_s3 + $0x370] ss:$8 sps:$4 sm:$0xff]  }
 0x207   : > { %8019 = vmatpush3.bf16.msra.mxu1 %v9949_v11  ;;  %8139 = vmatpush3.bf16.msra.mxu0 %v9949_v11 }
 0x208   : > { %8020 = vmatprep.subr.bf16.mxu1 %v10104_v35  ;;  %8140 = vmatprep.subr.bf16.mxu0 %v10104_v35 }
 0x20a   : > { %2167 = vmatmul.mubr.bf16.gmra.mrb[92].mxu1 %v9250_v23 }
 0x20b   : > { %8021 = vmatpush3.bf16.msra.mxu1 %v9993_v63  ;;  %8141 = vmatpush3.bf16.msra.mxu0 %v9993_v63 }
 0x20c   : > { %8022 = vmatprep.subr.bf16.mxu1 %v10101_v12  ;;  %8142 = vmatprep.subr.bf16.mxu0 %v10101_v12 }
 0x20d   : > { %2378 = vmatprep.mubr.bf16.mxu1 %v9253_v25  ;;  %v9301_v25 = vld [vmem:[%s12362_s3 + $0x394] ss:$8 sps:$4 sm:$0xff]  }
 0x20f   : > { %8023 = vmatpush3.bf16.msra.mxu1 %v9990_v22  ;;  %8143 = vmatpush3.bf16.msra.mxu0 %v9990_v22 }
 0x210   : > { %8088 = vmatprep.subr.bf16.mxu1 %v10032_v40  ;;  %8208 = vmatprep.subr.bf16.mxu0 %v9299_v19 }
 0x212   : > { %2379 = vmatmul.mubr.bf16.vlgmr.msra.gmra.mrb[96].mxu1 %v9251_v3  ;;  %v9303_v3 = vld [vmem:[%s12363_s4 + $0x48] sm:$0xff]  }
 0x213   : > { %8089 = vmatpush3.bf16.msra.mxu1 %v9895_v16  ;;  %2386 = vmatprep.mubr.bf16.mxu1 %v9254_v29 }
 0x214   : > { %8090 = vmatprep.subr.bf16.mxu1 %v10027_v36 }
 0x217   : > { %8091 = vmatpush3.bf16.msra.mxu1 %v9893_v14 }
 0x218   : > { %8092 = vmatprep.subr.bf16.mxu1 %v10064_v0 }
 0x21a   : > { %2387 = vmatmul.mubr.bf16.gmra.mrb[100].mxu1 %v9256_v45  ;;  %v9304_v45 = vld [vmem:[%s12362_s3 + $0x390] ss:$8 sps:$4 sm:$0xff]  }
 0x21b   : > { %8093 = vmatpush3.bf16.msra.mxu1 %v9926_v49  ;;  %2394 = vmatprep.mubr.bf16.mxu1 %v9257_v30 }
 0x21c   : > { %8094 = vmatprep.subr.bf16.mxu1 %v10060_v61 }
 0x21f   : > { %8095 = vmatpush3.bf16.msra.mxu1 %v9923_v48 }
 0x220   : > { %8096 = vmatprep.subr.bf16.mxu1 %v10084_v56 }
 0x222   : > { %2395 = vmatmul.mubr.bf16.gmra.mrb[104].mxu1 %v9259_v31 }
 0x223   : > { %8097 = vmatpush3.bf16.msra.mxu1 %v9962_v28  ;;  %2402 = vmatprep.mubr.bf16.mxu1 %v9260_v32  ;;  %v9307_v32 = vld [vmem:[%s12363_s4 + $0x10] sm:$0xff]  }
 0x224   : > { %8098 = vmatprep.subr.bf16.mxu1 %v10081_v18 }
 0x225   : > { %v7584_v34 = vpop.f32.mrb[0].mxu1 }
 0x226   : > { %v7585_v27 = vpop.f32.mrb[1].mxu1 }
 0x227   : > { %v10607_v53 = vadd.f32 %v7585_v27, %v7584_v34  ;;  %v7587_v38 = vpop.f32.mrb[2].mxu1  ;;  %8099 = vmatpush3.bf16.msra.mxu1 %v9949_v11 }
 0x228   : > { %v7588_v46 = vpop.f32.mrb[3].mxu1  ;;  %8100 = vmatprep.subr.bf16.mxu1 %v10104_v35 }
 0x229   : > { %v10620_v39 = vadd.f32 %v7588_v46, %v7587_v38 }
 0x22a   : > { %2403 = vmatmul.mubr.bf16.gmra.mrb[108].mxu1 %v9262_v60  ;;  %v9275_v60 = vld [vmem:[%s12362_s3 + $0x3c0] ss:$8 sps:$4 sm:$0xff]  }
 0x22b   : > { %8101 = vmatpush3.bf16.msra.mxu1 %v9993_v63  ;;  %2614 = vmatprep.mubr.bf16.mxu1 %v9265_v6  ;;  %v9308_v6 = vld [vmem:[%s12362_s3 + $0x3a4] ss:$8 sps:$4 sm:$0xff]  }
 0x22c   : > { %8102 = vmatprep.subr.bf16.mxu1 %v10101_v12 }
 0x22d   : > { %v7590_v7 = vpop.f32.mrb[4].mxu1 }
 0x22e   : > { %v7591_v50 = vpop.f32.mrb[5].mxu1 }
 0x22f   : > { %v10629_v52 = vadd.f32 %v7591_v50, %v7590_v7  ;;  %v7593_v54 = vpop.f32.mrb[6].mxu1  ;;  %8103 = vmatpush3.bf16.msra.mxu1 %v9990_v22 }
 0x230   : > { %v7594_v58 = vpop.f32.mrb[7].mxu1  ;;  %8168 = vmatprep.subr.bf16.mxu1 %v10032_v40  ;;  %v9268_v40 = vld [vmem:[%s12362_s3 + $0x350] ss:$8 sps:$4 sm:$0xff]  }
 0x231   : > { %v10642_v59 = vadd.f32 %v7594_v58, %v7593_v54  ;;  %v9313_v54 = vld [vmem:[%s12363_s4 + $0x60] sm:$0xff]  }
 0x232   : > { %2615 = vmatmul.mubr.bf16.vlgmr.msra.gmra.mrb[112].mxu1 %v9263_v51  ;;  %v7664_v51 = vpop.f32.mrb[32].mxu0 }
 0x233   : > { %8169 = vmatpush3.bf16.msra.mxu1 %v9895_v16  ;;  %2622 = vmatprep.mubr.bf16.mxu1 %v9266_v57  ;;  %v9293_v16 = vld [vmem:[%s12362_s3 + $0x334] ss:$8 sps:$4 sm:$0xff]   ;;  %v9314_v57 = vld [vmem:[%s12363_s4 + $0x20] sm:$0xff]   ;;  %v7665_v58 = vpop.f32.mrb[33].mxu0 }
 0x234   : > { %8170 = vmatprep.subr.bf16.mxu1 %v10027_v36  ;;  %2520 = vmatprep.mubr.bf16.mxu0 %v9293_v16  ;;  %v7667_v16 = vpop.f32.mrb[34].mxu0 }
 0x235   : > { %v7596_v43 = vpop.f32.mrb[8].mxu1  ;;  %2521 = vmatmul.mubr.bf16.gmra.mrb[124].mxu0 %v9295_v4  ;;  %v9317_v4 = vld [vmem:[%s12363_s4 + $0x68] sm:$0xff]  }
 0x236   : > { %v7597_v20 = vpop.f32.mrb[9].mxu1 }
 0x237   : > { %v10651_v24 = vadd.f32 %v7597_v20, %v7596_v43  ;;  %v7599_v2 = vpop.f32.mrb[10].mxu1  ;;  %8171 = vmatpush3.bf16.msra.mxu1 %v9893_v14  ;;  %v9280_v43 = vld [vmem:[%s12362_s3 + $0x3d0] ss:$8 sps:$4 sm:$0xff]   ;;  %v9281_v20 = vld [vmem:[%s12362_s3 + $0x3e4] ss:$8 sps:$4 sm:$0xff]  }
 0x238   : > { %v7600_v36 = vpop.f32.mrb[11].mxu1  ;;  %8172 = vmatprep.subr.bf16.mxu1 %v10064_v0  ;;  %v9271_v0 = vld [vmem:[%s12362_s3 + $0x360] ss:$8 sps:$4 sm:$0xff]  }
 0x239   : > { %v10664_v37 = vadd.f32 %v7600_v36, %v7599_v2  ;;  %v9315_v36 = vld [vmem:[%s12362_s3 + $0x3b4] ss:$8 sps:$4 sm:$0xff]  }
 0x23a   : > { %2623 = vmatmul.mubr.bf16.gmra.mrb[116].mxu1 %v9268_v40  ;;  %v10769_v40 = vadd.f32 %v7665_v58, %v7664_v51  ;;  %v9286_v51 = vld [vmem:[%s12362_s3 + $0x3f0] ss:$8 sps:$4 sm:$0xff]  }
 0x23b   : > { %8173 = vmatpush3.bf16.msra.mxu1 %v9926_v49  ;;  %2630 = vmatprep.mubr.bf16.mxu1 %v9269_v33  ;;  %v9298_v49 = vld [vmem:[%s12362_s3 + $0x384] ss:$8 sps:$4 sm:$0xff]  }
 0x23c   : > { %8174 = vmatprep.subr.bf16.mxu1 %v10060_v61  ;;  %2732 = vmatprep.mubr.bf16.mxu0 %v9298_v49 }
 0x23d   : > { %v7602_v5 = vpop.f32.mrb[12].mxu1  ;;  %2733 = vmatmul.mubr.bf16.vlgmr.msra.gmra.mrb[128].mxu0 %v9296_v15  ;;  %v9339_v15 = vld [vmem:[%s12363_s4 + $0xb8] sm:$0xff]  }
 0x23e   : > { %v7603_v8 = vpop.f32.mrb[13].mxu1  ;;  %2740 = vmatprep.mubr.bf16.mxu0 %v9301_v25 }
 0x23f   : > { %v10673_v9 = vadd.f32 %v7603_v8, %v7602_v5  ;;  %v7605_v10 = vpop.f32.mrb[14].mxu1  ;;  %8175 = vmatpush3.bf16.msra.mxu1 %v9923_v48  ;;  %v7668_v8 = vpop.f32.mrb[35].mxu0  ;;  %v9331_v48 = vld [vmem:[%s12363_s4 + $0x98] sm:$0xff]  }
 0x240   : > { %v7606_v61 = vpop.f32.mrb[15].mxu1  ;;  %8176 = vmatprep.subr.bf16.mxu1 %v10084_v56  ;;  %v9300_v56 = vld [vmem:[%s12363_s4] sm:$0xff]   ;;  %v10787_v49 = vadd.f32 %v7668_v8, %v7667_v16  ;;  %v7670_v19 = vpop.f32.mrb[36].mxu0 }
 0x241   : > { %v10686_v17 = vadd.f32 %v7606_v61, %v7605_v10  ;;  %8209 = vmatpush3.bf16.msra.mxu0 %v9300_v56  ;;  %v9319_v10 = vld [vmem:[%s12363_s4 + $0x28] sm:$0xff]   ;;  %v9320_v56 = vld [vmem:[%s12363_s4 + $0x70] sm:$0xff]  }
 0x242   : > { %2631 = vmatmul.mubr.bf16.gmra.mrb[120].mxu1 %v9271_v0  ;;  %8210 = vmatprep.subr.bf16.mxu0 %v9303_v3  ;;  %v9318_v0 = vld [vmem:[%s12362_s3 + $0x3b0] ss:$8 sps:$4 sm:$0xff]  }
 0x243   : > { %8177 = vmatpush3.bf16.msra.mxu1 %v9962_v28  ;;  %2638 = vmatprep.mubr.bf16.mxu1 %v9272_v13 }
 0x244   : > { %8178 = vmatprep.subr.bf16.mxu1 %v10081_v18  ;;  %v9277_v18 = vld [vmem:[%s12362_s3 + $0x3c4] ss:$8 sps:$4 sm:$0xff]  }
 0x245   : > { %v7624_v1 = vpop.f32.mrb[16].mxu1  ;;  %2741 = vmatmul.mubr.bf16.gmra.mrb[132].mxu0 %v9304_v45  ;;  %v9284_v45 = vld [vmem:[%s12362_s3 + $0x3f4] ss:$8 sps:$4 sm:$0xff]  }
 0x246   : > { %v7625_v55 = vpop.f32.mrb[17].mxu1  ;;  %2748 = vmatprep.mubr.bf16.mxu0 %v9308_v6 }
 0x247   : > { %v10701_v28 = vadd.f32 %v7625_v55, %v7624_v1  ;;  %v7627_v23 = vpop.f32.mrb[18].mxu1  ;;  %8179 = vmatpush3.bf16.msra.mxu1 %v9949_v11  ;;  %v9305_v11 = vld [vmem:[%s12363_s4 + $0x8] sm:$0xff]   ;;  %v9321_v1 = vld [vmem:[%s12363_s4 + $0x30] sm:$0xff]  }
 0x248   : > { %v7628_v29 = vpop.f32.mrb[19].mxu1  ;;  %8180 = vmatprep.subr.bf16.mxu1 %v10104_v35  ;;  %v9306_v35 = vld [vmem:[%s12363_s4 + $0x50] sm:$0xff]   ;;  %8211 = vmatpush3.bf16.msra.mxu0 %v9305_v11 }
 0x249   : > { %v10720_v30 = vadd.f32 %v7628_v29, %v7627_v23  ;;  %8212 = vmatprep.subr.bf16.mxu0 %v9306_v35  ;;  %v9322_v35 = vld [vmem:[%s12363_s4 + $0x78] sm:$0xff]  }
 0x24a   : > { %2639 = vmatmul.mubr.bf16.gmra.mrb[124].mxu1 %v9274_v26  ;;  %v7671_v26 = vpop.f32.mrb[37].mxu0 }
 0x24b   : > { %v1231_v31 = vpack.c.bf16 %v10720_v30, %v10701_v28  ;;  %8181 = vmatpush3.bf16.msra.mxu1 %v9993_v63  ;;  %2850 = vmatprep.mubr.bf16.mxu1 %v9277_v18  ;;  %v9283_v18 = vld [vmem:[%s12362_s3 + $0x3e0] ss:$8 sps:$4 sm:$0xff]   ;;  %v10802_v25 = vadd.f32 %v7671_v26, %v7670_v19  ;;  %v7673_v11 = vpop.f32.mrb[38].mxu0 }
 0x24c   : > { %8182 = vmatprep.subr.bf16.mxu1 %v10101_v12  ;;  %v9278_v12 = vld [vmem:[%s12362_s3 + $0x3d4] ss:$8 sps:$4 sm:$0xff]   ;;  %8213 = vmatpush3.bf16.msra.mxu0 %v9307_v32 }
 0x24d   : > { %v7630_v34 = vpop.f32.mrb[20].mxu1  ;;  %8214 = vmatprep.subr.bf16.mxu0 %v9310_v42  ;;  %2749 = vmatmul.mubr.bf16.gmra.mrb[136].mxu0 %v9311_v41 }
 0x24e   : > { %v7631_v27 = vpop.f32.mrb[21].mxu1  ;;  %2756 = vmatprep.mubr.bf16.mxu0 %v9315_v36 }
 0x24f   : > { %v10735_v63 = vadd.f32 %v7631_v27, %v7630_v34  ;;  %v7633_v38 = vpop.f32.mrb[22].mxu1  ;;  %8183 = vmatpush3.bf16.msra.mxu1 %v9990_v22  ;;  %v9312_v22 = vld [vmem:[%s12363_s4 + $0x18] sm:$0xff]   ;;  %v7674_v34 = vpop.f32.mrb[39].mxu0 }
 0x250   : > { %v7634_v46 = vpop.f32.mrb[23].mxu1  ;;  %8215 = vmatpush3.bf16.msra.mxu0 %v9312_v22  ;;  %v9323_v27 = vld [vmem:[%s12363_s4 + $0x38] sm:$0xff]   ;;  %v7676_v42 = vpop.f32.mrb[40].mxu0 }
 0x251   : > { %v10753_v7 = vadd.f32 %v7634_v46, %v7633_v38  ;;  %8216 = vmatprep.subr.bf16.mxu0 %v9313_v54  ;;  %v10817_v38 = vadd.f32 %v7674_v34, %v7673_v11  ;;  %v7677_v41 = vpop.f32.mrb[41].mxu0 }
 0x252   : > { %2851 = vmatmul.mubr.bf16.vlgmr.msra.gmra.mrb[128].mxu1 %v9275_v60  ;;  %v10826_v54 = vadd.f32 %v7677_v41, %v7676_v42  ;;  %v7679_v58 = vpop.f32.mrb[42].mxu0 }
 0x253   : > { %2858 = vmatprep.mubr.bf16.mxu1 %v9278_v12 }
 0x254   : > { %8217 = vmatpush3.bf16.msra.mxu0 %v9314_v57 }
 0x255   : > { %v7636_v47 = vpop.f32.mrb[24].mxu1  ;;  %8218 = vmatprep.subr.bf16.mxu0 %v9317_v4  ;;  %2757 = vmatmul.mubr.bf16.gmra.mrb[140].mxu0 %v9318_v0 }
 0x256   : > { %v7637_v21 = vpop.f32.mrb[25].mxu1 }
 0x257   : > { %v10771_v2 = vadd.f32 %v7637_v21, %v7636_v47  ;;  %v7639_v33 = vpop.f32.mrb[26].mxu1 }
 0x258   : > { %v7640_v5 = vpop.f32.mrb[27].mxu1  ;;  %8219 = vmatpush3.bf16.msra.mxu0 %v9319_v10 }
 0x259   : > { %v10785_v13 = vadd.f32 %v7640_v5, %v7639_v33  ;;  %8220 = vmatprep.subr.bf16.mxu0 %v9320_v56 }
 0x25a   : > { %2859 = vmatmul.mubr.bf16.gmra.mrb[132].mxu1 %v9280_v43  ;;  %v7680_v43 = vpop.f32.mrb[43].mxu0 }
 0x25b   : > { %2866 = vmatprep.mubr.bf16.mxu1 %v9281_v20  ;;  %v10828_v33 = vadd.f32 %v7680_v43, %v7679_v58  ;;  %v7682_v4 = vpop.f32.mrb[44].mxu0 }
 0x25c   : > { %8221 = vmatpush3.bf16.msra.mxu0 %v9321_v1  ;;  %v7683_v8 = vpop.f32.mrb[45].mxu0 }
 0x25d   : > { %v7642_v55 = vpop.f32.mrb[28].mxu1  ;;  %8222 = vmatprep.subr.bf16.mxu0 %v9322_v35  ;;  %v10833_v10 = vadd.f32 %v7683_v8, %v7682_v4  ;;  %v7685_v1 = vpop.f32.mrb[46].mxu0 }
 0x25e   : > { %v7643_v23 = vpop.f32.mrb[29].mxu1  ;;  %v7686_v26 = vpop.f32.mrb[47].mxu0 }
 0x25f   : > { %v10804_v3 = vadd.f32 %v7643_v23, %v7642_v55  ;;  %v7645_v29 = vpop.f32.mrb[30].mxu1  ;;  %v7744_v11 = vpop.f32.mrb[48].mxu0 }
 0x260   : > { %v7646_v32 = vpop.f32.mrb[31].mxu1  ;;  %8223 = vmatpush3.bf16.msra.mxu0 %v9323_v27 }
 0x261   : > { %v10815_v60 = vadd.f32 %v7646_v32, %v7645_v29  ;;  %v7745_v32 = vpop.f32.mrb[49].mxu0 }
 0x262   : > { %2867 = vmatmul.mubr.bf16.gmra.mrb[136].mxu1 %v9283_v18  ;;  %v10839_v18 = vadd.f32 %v7686_v26, %v7685_v1  ;;  %v10844_v27 = vadd.f32 %v7745_v32, %v7744_v11  ;;  %v7747_v41 = vpop.f32.mrb[50].mxu0 }
 0x263   : > { %2874 = vmatprep.mubr.bf16.mxu1 %v9284_v45  ;;  %v7748_v30 = vpop.f32.mrb[51].mxu0 }
 0x265   : > { %v7704_v46 = vpop.f32.mrb[32].mxu1 }
 0x266   : > { %v7705_v22 = vpop.f32.mrb[33].mxu1 }
 0x267   : > { %v7706_v57 = vadd.f32 %v7705_v22, %v7704_v46  ;;  %v7707_v47 = vpop.f32.mrb[34].mxu1  ;;  %v10850_v22 = vadd.f32 %v7748_v30, %v7747_v41  ;;  %v9326_v30 = vld [vmem:[%s12363_s4 + $0xc8] sm:$0xff]  }
 0x268   : > { %v7708_v21 = vpop.f32.mrb[35].mxu1 }
 0x269   : > { %v7709_v20 = vadd.f32 %v7708_v21, %v7707_v47  ;;  %v7750_v47 = vpop.f32.mrb[52].mxu0 }
 0x26a   : > { %2875 = vmatmul.mubr.bf16.gmra.mrb[140].mxu1 %v9286_v51  ;;  %v7751_v21 = vpop.f32.mrb[53].mxu0 }
 0x26b   : > { %v1467_v16 = vpack.c.bf16 %v7709_v20, %v7706_v57  ;;  %v10856_v20 = vadd.f32 %v7751_v21, %v7750_v47  ;;  %v9327_v21 = vld [vmem:[%s12363_s4 + $0x88] sm:$0xff]  }
 0x26d   : > { %v7710_v5 = vpop.f32.mrb[36].mxu1  ;;  %2903 = vrot.lane.b32.xlu0 %v1467_v16, %s12388_s27 }
 0x26e   : > { %v7711_v0 = vpop.f32.mrb[37].mxu1 }
 0x26f   : > { %v7712_v19 = vadd.f32 %v7711_v0, %v7710_v5  ;;  %v7713_v56 = vpop.f32.mrb[38].mxu1  ;;  %v7753_v5 = vpop.f32.mrb[54].mxu0 }
 0x270   : > { %v7714_v55 = vpop.f32.mrb[39].mxu1  ;;  %v7754_v0 = vpop.f32.mrb[55].mxu0 }
 0x271   : > { %v7715_v23 = vadd.f32 %v7714_v55, %v7713_v56  ;;  %2891 = vrot.lane.b32.xlu0 %v1231_v31, %s12388_s27  ;;  %v10862_v56 = vadd.f32 %v7754_v0, %v7753_v5  ;;  %v7756_v26 = vpop.f32.mrb[56].mxu0  ;;  %v9335_v55 = vld [vmem:[%s12363_s4 + $0xa8] sm:$0xff]  }
 0x273   : > { %v1468_v29 = vpack.c.bf16 %v7715_v23, %v7712_v19  ;;  %v9324_v23 = vld [vmem:[%s12363_s4 + $0xc0] sm:$0xff]  }
 0x274   : > { %8248 = vmatprep.subr.bf16.mxu1 %v9324_v23  ;;  %v9329_v23 = vld [vmem:[%s12363_s4 + $0x90] sm:$0xff]  }
 0x275   : > { %v7716_v35 = vpop.f32.mrb[40].mxu1  ;;  %2905 = vrot.lane.b32.xlu0 %v1468_v29, %s12388_s27  ;;  %v9325_v29 = vld [vmem:[%s12363_s4 + $0x80] sm:$0xff]  }
 0x276   : > { %v7717_v34 = vpop.f32.mrb[41].mxu1  ;;  %8249 = vmatpush3.bf16.msra.mxu1 %v9325_v29 }
 0x277   : > { %v10846_v42 = vadd.f32 %v7717_v34, %v7716_v35  ;;  %v7719_v46 = vpop.f32.mrb[42].mxu1  ;;  %v7757_v35 = vpop.f32.mrb[57].mxu0  ;;  %8250 = vmatprep.subr.bf16.mxu1 %v9326_v30 }
 0x278   : > { %v7720_v28 = vpop.f32.mrb[43].mxu1  ;;  %v10874_v34 = vadd.f32 %v7757_v35, %v7756_v26  ;;  %v9328_v26 = vld [vmem:[%s12363_s4 + $0xd0] sm:$0xff]  }
 0x279   : > { %v10848_v31 = vadd.f32 %v7720_v28, %v7719_v46  ;;  %v7759_v28 = vpop.f32.mrb[58].mxu0 }
 0x27a   : > { %8251 = vmatpush3.bf16.msra.mxu1 %v9327_v21 }
 0x27b   : > { %8252 = vmatprep.subr.bf16.mxu1 %v9328_v26 }
 0x27d   : > { %v7722_v58 = vpop.f32.mrb[44].mxu1 }
 0x27e   : > { %v7723_v43 = vpop.f32.mrb[45].mxu1  ;;  %8253 = vmatpush3.bf16.msra.mxu1 %v9329_v23 }
 0x27f   : > { %v10858_v16 = vadd.f32 %v7723_v43, %v7722_v58  ;;  %v7725_v4 = vpop.f32.mrb[46].mxu1  ;;  %v7760_v58 = vpop.f32.mrb[59].mxu0 }
 0x280   : > { %v7726_v8 = vpop.f32.mrb[47].mxu1  ;;  %v7762_v0 = vpop.f32.mrb[60].mxu0 }
 0x281   : > { %v10860_v19 = vadd.f32 %v7726_v8, %v7725_v4  ;;  %v10886_v4 = vadd.f32 %v7760_v58, %v7759_v28  ;;  %v9334_v8 = vld [vmem:[%s12363_s4 + $0xe8] sm:$0xff]  }
 0x285   : > { %v7784_v11 = vpop.f32.mrb[48].mxu1 }
 0x286   : > { %v7785_v32 = vpop.f32.mrb[49].mxu1 }
 0x287   : > { %v10876_v46 = vadd.f32 %v7785_v32, %v7784_v11  ;;  %v7787_v41 = vpop.f32.mrb[50].mxu1  ;;  %v7763_v11 = vpop.f32.mrb[61].mxu0 }
 0x288   : > { %v7788_v47 = vpop.f32.mrb[51].mxu1  ;;  %v10898_v32 = vadd.f32 %v7763_v11, %v7762_v0  ;;  %v7765_v30 = vpop.f32.mrb[62].mxu0  ;;  %v9332_v11 = vld [vmem:[%s12363_s4 + $0xe0] sm:$0xff]  }
 0x289   : > { %v10884_v43 = vadd.f32 %v7788_v47, %v7787_v41  ;;  %v9330_v47 = vld [vmem:[%s12363_s4 + $0xd8] sm:$0xff]   ;;  %v7766_v21 = vpop.f32.mrb[63].mxu0 }
 0x28a   : > { %12396 = vst [vmem:[#allocation7_spill] sm:$0xff] %v10898_v32  ;;  %v10910_v45 = vadd.f32 %v7766_v21, %v7765_v30  ;;  %8254 = vmatprep.subr.bf16.mxu1 %v9330_v47 }
 0x28b   : > { %8255 = vmatpush3.bf16.msra.mxu1 %v9331_v48 }
 0x28c   : > { %12397 = vst [vmem:[#allocation8_spill] sm:$0xff] %v10910_v45  ;;  %8256 = vmatprep.subr.bf16.mxu1 %v9332_v11 }
 0x28d   : > { %v7790_v29 = vpop.f32.mrb[52].mxu1 }
 0x28e   : > { %v7791_v35 = vpop.f32.mrb[53].mxu1 }
 0x28f   : > { %v10900_v41 = vadd.f32 %v7791_v35, %v7790_v29  ;;  %v7793_v28 = vpop.f32.mrb[54].mxu1  ;;  %v7824_v29 = vpop.f32.mrb[64].mxu0  ;;  %v9333_v35 = vld [vmem:[%s12363_s4 + $0xa0] sm:$0xff]  }
 0x290   : > { %v7794_v58 = vpop.f32.mrb[55].mxu1  ;;  %v7825_v30 = vpop.f32.mrb[65].mxu0  ;;  %8257 = vmatpush3.bf16.msra.mxu1 %v9333_v35  ;;  %v9338_v35 = vld [vmem:[%s12363_s4 + $0xf8] sm:$0xff]  }
 0x291   : > { %v10908_v26 = vadd.f32 %v7794_v58, %v7793_v28  ;;  %v10922_v48 = vadd.f32 %v7825_v30, %v7824_v29  ;;  %v7827_v23 = vpop.f32.mrb[66].mxu0  ;;  %8258 = vmatprep.subr.bf16.mxu1 %v9334_v8  ;;  %v9336_v30 = vld [vmem:[%s12363_s4 + $0xf0] sm:$0xff]  }
 0x292   : > { %v7828_v36 = vpop.f32.mrb[67].mxu0 }
 0x293   : > { %v10934_v62 = vadd.f32 %v7828_v36, %v7827_v23 }
 0x294   : > { %8259 = vmatpush3.bf16.msra.mxu1 %v9335_v55 }
 0x295   : > { %v7796_v28 = vpop.f32.mrb[56].mxu1  ;;  %8260 = vmatprep.subr.bf16.mxu1 %v9336_v30 }
 0x296   : > { %v7797_v47 = vpop.f32.mrb[57].mxu1 }
 0x297   : > { %v10924_v58 = vadd.f32 %v7797_v47, %v7796_v28  ;;  %v7799_v21 = vpop.f32.mrb[58].mxu1  ;;  %v7830_v28 = vpop.f32.mrb[68].mxu0 }
 0x298   : > { %v7800_v14 = vpop.f32.mrb[59].mxu1  ;;  %v7831_v36 = vpop.f32.mrb[69].mxu0 }
 0x299   : > { %v10932_v11 = vadd.f32 %v7800_v14, %v7799_v21  ;;  %v9337_v14 = vld [vmem:[%s12363_s4 + $0xb0] sm:$0xff]   ;;  %v10946_v55 = vadd.f32 %v7831_v36, %v7830_v28  ;;  %v7833_v57 = vpop.f32.mrb[70].mxu0 }
 0x29a   : > { %8261 = vmatpush3.bf16.msra.mxu1 %v9337_v14  ;;  %v7834_v44 = vpop.f32.mrb[71].mxu0 }
 0x29b   : > { %v10958_v12 = vadd.f32 %v7834_v44, %v7833_v57  ;;  %8262 = vmatprep.subr.bf16.mxu1 %v9338_v35 }
 0x29d   : > { %v7802_v47 = vpop.f32.mrb[60].mxu1 }
 0x29e   : > { %v7803_v8 = vpop.f32.mrb[61].mxu1  ;;  %8263 = vmatpush3.bf16.msra.mxu1 %v9339_v15 }
 0x29f   : > { %v10948_v23 = vadd.f32 %v7803_v8, %v7802_v47  ;;  %v7805_v21 = vpop.f32.mrb[62].mxu1  ;;  %v7836_v47 = vpop.f32.mrb[72].mxu0 }
 0x2a0   : > { %v7806_v6 = vpop.f32.mrb[63].mxu1  ;;  %v7837_v8 = vpop.f32.mrb[73].mxu0 }
 0x2a1   : > { %v10956_v30 = vadd.f32 %v7806_v6, %v7805_v21  ;;  %v10964_v29 = vadd.f32 %v7837_v8, %v7836_v47  ;;  %v7839_v6 = vpop.f32.mrb[74].mxu0 }
 0x2a2   : > { %v7840_v44 = vpop.f32.mrb[75].mxu0 }
 0x2a3   : > { %v10966_v35 = vadd.f32 %v7840_v44, %v7839_v6  ;;  %v7842_v0 = vpop.f32.mrb[76].mxu0  ;;  %v9343_v44 = vld [vmem:[%s12363_s4 + $0x108] sm:$0xff]  }
 0x2a4   : > { %v7843_v5 = vpop.f32.mrb[77].mxu0 }
 0x2a5   : > { %v7864_v36 = vpop.f32.mrb[64].mxu1 }
 0x2a6   : > { %v7865_v1 = vpop.f32.mrb[65].mxu1 }
 0x2a7   : > { %v7866_v61 = vadd.f32 %v7865_v1, %v7864_v36  ;;  %v7867_v51 = vpop.f32.mrb[66].mxu1  ;;  %v10971_v1 = vadd.f32 %v7843_v5, %v7842_v0  ;;  %v7845_v36 = vpop.f32.mrb[78].mxu0  ;;  %v12399_v5 = vpack.c.bf16 %v10753_v7, %v10735_v63  ;;  %v12401_v63 = vpack.c.bf16 %v10848_v31, %v10846_v42 }
 0x2a8   : > { %v7868_v21 = vpop.f32.mrb[67].mxu1  ;;  %v7846_v45 = vpop.f32.mrb[79].mxu0 }
 0x2a9   : > { %v7869_v57 = vadd.f32 %v7868_v21, %v7867_v51  ;;  %v10977_v6 = vadd.f32 %v7846_v45, %v7845_v36  ;;  %v12400_v36 = vpack.c.bf16 %v10908_v26, %v10900_v41 }
 0x2ab   : > { %v1939_v15 = vpack.c.bf16 %v7869_v57, %v7866_v61  ;;  %v12398_v61 = vpack.c.bf16 %v10884_v43, %v10876_v46  ;;  %v7904_v57 = vpop.f32.mrb[80].mxu0 }
 0x2ac   : > { %v7905_v0 = vpop.f32.mrb[81].mxu0 }
 0x2ad   : > { %v7870_v14 = vpop.f32.mrb[68].mxu1  ;;  %2927 = vrot.lane.b32.xlu1 %v1939_v15, %s12388_s27  ;;  %v10986_v43 = vadd.f32 %v7905_v0, %v7904_v57  ;;  %v7907_v45 = vpop.f32.mrb[82].mxu0 }
 0x2ae   : > { %v7871_v50 = vpop.f32.mrb[69].mxu1 }
 0x2af   : > { %v7872_v47 = vadd.f32 %v7871_v50, %v7870_v14  ;;  %v7873_v8 = vpop.f32.mrb[70].mxu1 }
 0x2b0   : > { %v7874_v32 = vpop.f32.mrb[71].mxu1 }
 0x2b1   : > { %v7875_v51 = vadd.f32 %v7874_v32, %v7873_v8  ;;  %2915 = vrot.lane.b32.xlu1 %v12398_v61, %s12388_s27 }
 0x2b3   : > { %v1940_v21 = vpack.c.bf16 %v7875_v51, %v7872_v47  ;;  %v7908_v47 = vpop.f32.mrb[83].mxu0 }
 0x2b4   : > { %v10996_v7 = vadd.f32 %v7908_v47, %v7907_v45  ;;  %v12404_v45 = vpack.c.bf16 %v10932_v11, %v10924_v58  ;;  %v12407_v58 = vpack.c.bf16 %v10815_v60, %v10804_v3  ;;  %v12410_v3 = vpack.c.bf16 %v10956_v30, %v10948_v23 }
 0x2b5   : > { %v7876_v50 = vpop.f32.mrb[72].mxu1  ;;  %2893 = vrot.lane.b32.xlu1 %v12399_v5, %s12388_s27  ;;  %2929 = vrot.lane.b32.xlu0 %v1940_v21, %s12388_s27  ;;  %v7910_v21 = vpop.f32.mrb[84].mxu0 }
 0x2b6   : > { %v7877_v32 = vpop.f32.mrb[73].mxu1  ;;  %v7911_v41 = vpop.f32.mrb[85].mxu0 }
 0x2b7   : > { %v7878_v14 = vadd.f32 %v7877_v32, %v7876_v50  ;;  %v7879_v46 = vpop.f32.mrb[74].mxu1  ;;  %v12402_v50 = vpack.c.bf16 %v10785_v13, %v10771_v2  ;;  %v11005_v5 = vadd.f32 %v7911_v41, %v7910_v21  ;;  %v7913_v32 = vpop.f32.mrb[86].mxu0  ;;  %v12405_v2 = vpack.c.bf16 %v10860_v19, %v10858_v16 }
 0x2b8   : > { %v7880_v15 = vpop.f32.mrb[75].mxu1 }
 0x2b9   : > { %v7881_v8 = vadd.f32 %v7880_v15, %v7879_v46  ;;  %2917 = vrot.lane.b32.xlu1 %v12400_v36, %s12388_s27  ;;  %2907 = vrot.lane.b32.xlu0 %v12401_v63, %s12388_s27  ;;  %12403 = vst [vmem:[#allocation9_spill] sm:$0xff] %v11005_v5  ;;  %v9340_v15 = vld [vmem:[%s12363_s4 + $0x140] sm:$0xff]  }
 0x2ba   : > { %8288 = vmatprep.subr.bf16.mxu0 %v9340_v15 }
 0x2bb   : > { %v1941_v51 = vpack.c.bf16 %v7881_v8, %v7878_v14  ;;  %v7914_v14 = vpop.f32.mrb[87].mxu0 }
 0x2bc   : > { %v11015_v13 = vadd.f32 %v7914_v14, %v7913_v32  ;;  %v7916_v36 = vpop.f32.mrb[88].mxu0  ;;  %v12413_v32 = vpack.c.bf16 %v10787_v49, %v10769_v40  ;;  %v9342_v40 = vld [vmem:[%s12363_s4 + $0x148] sm:$0xff]  }
 0x2bd   : > { %v7882_v57 = vpop.f32.mrb[76].mxu1  ;;  %2895 = vrot.lane.b32.xlu1 %v12402_v50, %s12388_s27  ;;  %2931 = vrot.lane.b32.xlu0 %v1941_v51, %s12388_s27  ;;  %v7917_v16 = vpop.f32.mrb[89].mxu0 }
 0x2be   : > { %v7883_v26 = vpop.f32.mrb[77].mxu1  ;;  %12406 = vst [vmem:[#allocation10_spill] sm:$0xff] %v11015_v13  ;;  %v11027_v11 = vadd.f32 %v7917_v16, %v7916_v36  ;;  %v7919_v51 = vpop.f32.mrb[90].mxu0 }
 0x2bf   : > { %v7884_v42 = vadd.f32 %v7883_v26, %v7882_v57  ;;  %v7885_v31 = vpop.f32.mrb[78].mxu1  ;;  %v7920_v50 = vpop.f32.mrb[91].mxu0 }
 0x2c0   : > { %v7886_v0 = vpop.f32.mrb[79].mxu1  ;;  %12408 = vst [vmem:[#allocation11_spill] sm:$0xff] %v11027_v11  ;;  %v11029_v26 = vadd.f32 %v7920_v50, %v7919_v51 }
 0x2c1   : > { %v7887_v46 = vadd.f32 %v7886_v0, %v7885_v31  ;;  %2919 = vrot.lane.b32.xlu1 %v12404_v45, %s12388_s27  ;;  %2909 = vrot.lane.b32.xlu0 %v12405_v2, %s12388_s27 }
 0x2c2   : > { %12409 = vst [vmem:[#allocation12_spill] sm:$0xff] %v11029_v26 }
 0x2c3   : > { %v1942_v47 = vpack.c.bf16 %v7887_v46, %v7884_v42  ;;  %v7922_v42 = vpop.f32.mrb[92].mxu0 }
 0x2c4   : > { %v7923_v60 = vpop.f32.mrb[93].mxu0 }
 0x2c5   : > { %v7944_v63 = vpop.f32.mrb[80].mxu1  ;;  %2897 = vrot.lane.b32.xlu1 %v12407_v58, %s12388_s27  ;;  %2933 = vrot.lane.b32.xlu0 %v1942_v47, %s12388_s27  ;;  %v11037_v0 = vadd.f32 %v7923_v60, %v7922_v42  ;;  %v7925_v14 = vpop.f32.mrb[94].mxu0 }
 0x2c6   : > { %v7945_v19 = vpop.f32.mrb[81].mxu1  ;;  %v7926_v45 = vpop.f32.mrb[95].mxu0 }
 0x2c7   : > { %v7946_v21 = vadd.f32 %v7945_v19, %v7944_v63  ;;  %v7947_v57 = vpop.f32.mrb[82].mxu1  ;;  %12411 = vst [vmem:[#allocation13_spill] sm:$0xff] %v11037_v0  ;;  %v11039_v2 = vadd.f32 %v7926_v45, %v7925_v14  ;;  %v7984_v15 = vpop.f32.mrb[96].mxu0 }
 0x2c8   : > { %v7948_v41 = vpop.f32.mrb[83].mxu1  ;;  %v7985_v36 = vpop.f32.mrb[97].mxu0 }
 0x2c9   : > { %v7949_v31 = vadd.f32 %v7948_v41, %v7947_v57  ;;  %2921 = vrot.lane.b32.xlu1 %v12410_v3, %s12388_s27  ;;  %12412 = vst [vmem:[#allocation14_spill] sm:$0xff] %v11039_v2  ;;  %v11044_v30 = vadd.f32 %v7985_v36, %v7984_v15  ;;  %v7987_v58 = vpop.f32.mrb[98].mxu0  ;;  %v9356_v2 = vld [vmem:[%s12363_s4 + $0x1c0] sm:$0xff]  }
 0x2ca   : > { %v7988_v51 = vpop.f32.mrb[99].mxu0  ;;  %8328 = vmatprep.subr.bf16.mxu1 %v9356_v2 }
 0x2cb   : > { %v2175_v46 = vpack.c.bf16 %v7949_v31, %v7946_v21  ;;  %v11048_v57 = vadd.f32 %v7988_v51, %v7987_v58  ;;  %v7990_v50 = vpop.f32.mrb[100].mxu0 }
 0x2cc   : > { %v7991_v42 = vpop.f32.mrb[101].mxu0 }
 0x2cd   : > { %v7950_v47 = vpop.f32.mrb[84].mxu1  ;;  %2939 = vrot.lane.b32.xlu1 %v2175_v46, %s12388_s27  ;;  %v11054_v3 = vadd.f32 %v7991_v42, %v7990_v50  ;;  %v7993_v60 = vpop.f32.mrb[102].mxu0 }
 0x2ce   : > { %v7951_v63 = vpop.f32.mrb[85].mxu1 }
 0x2cf   : > { %v11046_v16 = vadd.f32 %v7951_v63, %v7950_v47  ;;  %v7953_v19 = vpop.f32.mrb[86].mxu1 }
 0x2d0   : > { %v7954_v21 = vpop.f32.mrb[87].mxu1 }
 0x2d1   : > { %v11050_v41 = vadd.f32 %v7954_v21, %v7953_v19 }
 0x2d5   : > { %v7956_v46 = vpop.f32.mrb[88].mxu1 }
 0x2d6   : > { %v7957_v45 = vpop.f32.mrb[89].mxu1 }
 0x2d7   : > { %v11058_v15 = vadd.f32 %v7957_v45, %v7956_v46  ;;  %v7959_v47 = vpop.f32.mrb[90].mxu1  ;;  %v7994_v45 = vpop.f32.mrb[103].mxu0 }
 0x2d8   : > { %v7960_v36 = vpop.f32.mrb[91].mxu1 }
 0x2d9   : > { %v11060_v63 = vadd.f32 %v7960_v36, %v7959_v47  ;;  %v11072_v47 = vadd.f32 %v7994_v45, %v7993_v60  ;;  %v9341_v36 = vld [vmem:[%s12363_s4 + $0x100] sm:$0xff]  }
 0x2dd   : > { %v7962_v19 = vpop.f32.mrb[92].mxu1 }
 0x2de   : > { %v7963_v51 = vpop.f32.mrb[93].mxu1 }
 0x2df   : > { %v11064_v21 = vadd.f32 %v7963_v51, %v7962_v19  ;;  %v7965_v50 = vpop.f32.mrb[94].mxu1  ;;  %v2904_v42 = vpop.permute.xlu0 %2903 }
 0x2e0   : > { %v7966_v23 = vpop.f32.mrb[95].mxu1  ;;  %v3002_v46 = vsel %vm2983_vm1, %v12413_v32, %v2904_v42  ;;  %v7996_v19 = vpop.f32.mrb[104].mxu0 }
 0x2e1   : > { %v11070_v8 = vadd.f32 %v7966_v23, %v7965_v50  ;;  %3663 = vmatprep.mubr.bf16.mxu0 %v3002_v46  ;;  %v7997_v32 = vpop.f32.mrb[105].mxu0  ;;  %v12414_v23 = vpack.c.bf16 %v10620_v39, %v10607_v53  ;;  %v9344_v39 = vld [vmem:[%s12363_s4 + $0x150] sm:$0xff]  }
 0x2e2   : > { %v11088_v50 = vadd.f32 %v7997_v32, %v7996_v19  ;;  %v7999_v42 = vpop.f32.mrb[106].mxu0  ;;  %v12417_v19 = vpack.c.bf16 %v10817_v38, %v10802_v25  ;;  %v9346_v25 = vld [vmem:[%s12363_s4 + $0x158] sm:$0xff]  }
 0x2e3   : > { %v2892_v61 = vpop.permute.xlu0 %2891  ;;  %v8000_v45 = vpop.f32.mrb[107].mxu0 }
 0x2e4   : > { %v2986_v60 = vsel %vm2983_vm1, %v12414_v23, %v2892_v61  ;;  %12415 = vst [vmem:[#allocation15_spill] sm:$0xff] %v11088_v50  ;;  %v11093_v28 = vadd.f32 %v8000_v45, %v7999_v42  ;;  %v8002_v49 = vpop.f32.mrb[108].mxu0 }
 0x2e5   : > { %v8024_v46 = vpop.f32.mrb[96].mxu1  ;;  %3664 = vmatmul.mubr.bf16.vlgmr.msra.gmra.mrb[144].mxu0 %v2986_v60  ;;  %v8003_v23 = vpop.f32.mrb[109].mxu0 }
 0x2e6   : > { %v8025_v31 = vpop.f32.mrb[97].mxu1  ;;  %8289 = vmatpush3.bf16.msra.mxu0 %v9341_v36  ;;  %12416 = vst [vmem:[#allocation16_spill] sm:$0xff] %v11093_v28  ;;  %v8005_v42 = vpop.f32.mrb[110].mxu0 }
 0x2e7   : > { %v8026_v51 = vadd.f32 %v8025_v31, %v8024_v46  ;;  %v8027_v58 = vpop.f32.mrb[98].mxu1  ;;  %v2906_v53 = vpop.permute.xlu0 %2905  ;;  %8290 = vmatprep.subr.bf16.mxu0 %v9342_v40  ;;  %v11104_v31 = vadd.f32 %v8003_v23, %v8002_v49  ;;  %v9345_v40 = vld [vmem:[%s12363_s4 + $0x110] sm:$0xff]  }
 0x2e8   : > { %v8028_v61 = vpop.f32.mrb[99].mxu1  ;;  %v3006_v36 = vsel %vm2983_vm1, %v12417_v19, %v2906_v53  ;;  %v8006_v46 = vpop.f32.mrb[111].mxu0 }
 0x2e9   : > { %v8029_v60 = vadd.f32 %v8028_v61, %v8027_v58  ;;  %3671 = vmatprep.mubr.bf16.mxu0 %v3006_v36  ;;  %12418 = vst [vmem:[#allocation17_spill] sm:$0xff] %v11104_v31  ;;  %v11112_v38 = vadd.f32 %v8006_v46, %v8005_v42  ;;  %v8064_v53 = vpop.f32.mrb[112].mxu0  ;;  %v9348_v42 = vld [vmem:[%s12363_s4 + $0x160] sm:$0xff]  }
 0x2ea   : > { %8291 = vmatpush3.bf16.msra.mxu0 %v9343_v44  ;;  %v8065_v58 = vpop.f32.mrb[113].mxu0 }
 0x2eb   : > { %v2411_v45 = vpack.c.bf16 %v8029_v60, %v8026_v51  ;;  %8292 = vmatprep.subr.bf16.mxu0 %v9344_v39  ;;  %12419 = vst [vmem:[#allocation18_spill] sm:$0xff] %v11112_v38  ;;  %v11117_v49 = vadd.f32 %v8065_v58, %v8064_v53  ;;  %v8067_v19 = vpop.f32.mrb[114].mxu0  ;;  %v9347_v51 = vld [vmem:[%s12363_s4 + $0x118] sm:$0xff]   ;;  %v9349_v58 = vld [vmem:[%s12363_s4 + $0x120] sm:$0xff]  }
 0x2ec   : > { %v8068_v39 = vpop.f32.mrb[115].mxu0 }
 0x2ed   : > { %v8030_v61 = vpop.f32.mrb[100].mxu1  ;;  %2951 = vrot.lane.b32.xlu0 %v2411_v45, %s12388_s27  ;;  %v11127_v46 = vadd.f32 %v8068_v39, %v8067_v19  ;;  %v9351_v39 = vld [vmem:[%s12363_s4 + $0x128] sm:$0xff]  }
 0x2ee   : > { %v8031_v36 = vpop.f32.mrb[101].mxu1  ;;  %8293 = vmatpush3.bf16.msra.mxu0 %v9345_v40 }
 0x2ef   : > { %v11122_v23 = vadd.f32 %v8031_v36, %v8030_v61  ;;  %v8033_v60 = vpop.f32.mrb[102].mxu1  ;;  %8294 = vmatprep.subr.bf16.mxu0 %v9346_v25  ;;  %v9350_v61 = vld [vmem:[%s12363_s4 + $0x168] sm:$0xff]  }
 0x2f0   : > { %v8034_v45 = vpop.f32.mrb[103].mxu1 }
 0x2f1   : > { %v11129_v53 = vadd.f32 %v8034_v45, %v8033_v60  ;;  %v9352_v45 = vld [vmem:[%s12363_s4 + $0x170] sm:$0xff]  }
 0x2f2   : > { %8295 = vmatpush3.bf16.msra.mxu0 %v9347_v51 }
 0x2f3   : > { %8296 = vmatprep.subr.bf16.mxu0 %v9348_v42 }
 0x2f5   : > { %v8036_v19 = vpop.f32.mrb[104].mxu1 }
 0x2f6   : > { %v8037_v36 = vpop.f32.mrb[105].mxu1  ;;  %8297 = vmatpush3.bf16.msra.mxu0 %v9349_v58  ;;  %v9353_v58 = vld [vmem:[%s12363_s4 + $0x130] sm:$0xff]  }
 0x2f7   : > { %v11144_v51 = vadd.f32 %v8037_v36, %v8036_v19  ;;  %v8039_v60 = vpop.f32.mrb[106].mxu1  ;;  %8298 = vmatprep.subr.bf16.mxu0 %v9350_v61  ;;  %v9354_v61 = vld [vmem:[%s12363_s4 + $0x178] sm:$0xff]   ;;  %v8070_v36 = vpop.f32.mrb[116].mxu0 }
 0x2f8   : > { %v8040_v42 = vpop.f32.mrb[107].mxu1 }
 0x2f9   : > { %v11149_v44 = vadd.f32 %v8040_v42, %v8039_v60  ;;  %v8071_v60 = vpop.f32.mrb[117].mxu0 }
 0x2fa   : > { %8299 = vmatpush3.bf16.msra.mxu0 %v9351_v39  ;;  %v9355_v39 = vld [vmem:[%s12363_s4 + $0x138] sm:$0xff]   ;;  %v11164_v14 = vadd.f32 %v8071_v60, %v8070_v36 }
 0x2fb   : > { %8300 = vmatprep.subr.bf16.mxu0 %v9352_v45  ;;  %v8073_v45 = vpop.f32.mrb[118].mxu0 }
 0x2fc   : > { %12420 = vst [vmem:[#allocation19_spill] sm:$0xff] %v11164_v14  ;;  %v8074_v0 = vpop.f32.mrb[119].mxu0 }
 0x2fd   : > { %v8042_v19 = vpop.f32.mrb[108].mxu1  ;;  %v8076_v36 = vpop.f32.mrb[120].mxu0 }
 0x2fe   : > { %v8043_v40 = vpop.f32.mrb[109].mxu1  ;;  %8301 = vmatpush3.bf16.msra.mxu0 %v9353_v58  ;;  %v11171_v58 = vadd.f32 %v8074_v0, %v8073_v45  ;;  %v8077_v38 = vpop.f32.mrb[121].mxu0 }
 0x2ff   : > { %v11162_v42 = vadd.f32 %v8043_v40, %v8042_v19  ;;  %v8045_v25 = vpop.f32.mrb[110].mxu1  ;;  %8302 = vmatprep.subr.bf16.mxu0 %v9354_v61  ;;  %v11177_v50 = vadd.f32 %v8077_v38, %v8076_v36 }
 0x300   : > { %v8046_v32 = vpop.f32.mrb[111].mxu1  ;;  %12421 = vst [vmem:[#allocation20_spill] sm:$0xff] %v11171_v58 }
 0x301   : > { %v11169_v31 = vadd.f32 %v8046_v32, %v8045_v25  ;;  %v8079_v32 = vpop.f32.mrb[122].mxu0 }
 0x302   : > { %8303 = vmatpush3.bf16.msra.mxu0 %v9355_v39  ;;  %v8080_v0 = vpop.f32.mrb[123].mxu0 }
 0x303   : > { %v11179_v39 = vadd.f32 %v8080_v0, %v8079_v32 }
 0x305   : > { %v8104_v19 = vpop.f32.mrb[112].mxu1 }
 0x306   : > { %v8105_v60 = vpop.f32.mrb[113].mxu1 }
 0x307   : > { %v8106_v11 = vadd.f32 %v8105_v60, %v8104_v19  ;;  %v8107_v26 = vpop.f32.mrb[114].mxu1 }
 0x308   : > { %v8108_v25 = vpop.f32.mrb[115].mxu1  ;;  %v8082_v61 = vpop.f32.mrb[124].mxu0 }
 0x309   : > { %v8109_v45 = vadd.f32 %v8108_v25, %v8107_v26  ;;  %v8083_v58 = vpop.f32.mrb[125].mxu0 }
 0x30a   : > { %v11184_v38 = vadd.f32 %v8083_v58, %v8082_v61  ;;  %v8085_v36 = vpop.f32.mrb[126].mxu0 }
 0x30b   : > { %v2647_v2 = vpack.c.bf16 %v8109_v45, %v8106_v11  ;;  %v8086_v13 = vpop.f32.mrb[127].mxu0  ;;  %v12422_v11 = vpack.c.bf16 %v11050_v41, %v11046_v16 }
 0x30c   : > { %v11190_v32 = vadd.f32 %v8086_v13, %v8085_v36  ;;  %v12423_v13 = vpack.c.bf16 %v11060_v63, %v11058_v15  ;;  %v12424_v15 = vpack.c.bf16 %v10934_v62, %v10922_v48  ;;  %v9358_v62 = vld [vmem:[%s12363_s4 + $0x1c8] sm:$0xff]   ;;  %v12426_v48 = vpack.c.bf16 %v10850_v22, %v10844_v27  ;;  %v9360_v22 = vld [vmem:[%s12363_s4 + $0x1d0] sm:$0xff]  }
 0x30d   : > { %v8110_v28 = vpop.f32.mrb[116].mxu1  ;;  %2963 = vrot.lane.b32.xlu1 %v2647_v2, %s12388_s27 }
 0x30e   : > { %v8111_v14 = vpop.f32.mrb[117].mxu1 }
 0x30f   : > { %v8112_v19 = vadd.f32 %v8111_v14, %v8110_v28  ;;  %v8113_v60 = vpop.f32.mrb[118].mxu1 }
 0x310   : > { %v8114_v5 = vpop.f32.mrb[119].mxu1  ;;  %v8144_v28 = vpop.f32.mrb[128].mxu0 }
 0x311   : > { %v8115_v26 = vadd.f32 %v8114_v5, %v8113_v60  ;;  %2941 = vrot.lane.b32.xlu1 %v12422_v11, %s12388_s27  ;;  %v8145_v58 = vpop.f32.mrb[129].mxu0 }
 0x312   : > { %v11195_v5 = vadd.f32 %v8145_v58, %v8144_v28  ;;  %v8147_v60 = vpop.f32.mrb[130].mxu0 }
 0x313   : > { %v2648_v25 = vpack.c.bf16 %v8115_v26, %v8112_v19  ;;  %v8148_v16 = vpop.f32.mrb[131].mxu0 }
 0x314   : > { %v11201_v19 = vadd.f32 %v8148_v16, %v8147_v60  ;;  %v12425_v16 = vpack.c.bf16 %v11070_v8, %v11064_v21 }
 0x315   : > { %v8116_v45 = vpop.f32.mrb[120].mxu1  ;;  %2965 = vrot.lane.b32.xlu1 %v2648_v25, %s12388_s27 }
 0x316   : > { %v8117_v14 = vpop.f32.mrb[121].mxu1  ;;  %v2765_v26 = vpack.c.bf16 %v11201_v19, %v11195_v5 }
 0x317   : > { %v8118_v61 = vadd.f32 %v8117_v14, %v8116_v45  ;;  %v8119_v2 = vpop.f32.mrb[122].mxu1 }
 0x318   : > { %v8120_v40 = vpop.f32.mrb[123].mxu1  ;;  %v8150_v25 = vpop.f32.mrb[132].mxu0 }
 0x319   : > { %v8121_v41 = vadd.f32 %v8120_v40, %v8119_v2  ;;  %2943 = vrot.lane.b32.xlu1 %v12423_v13, %s12388_s27  ;;  %v8151_v28 = vpop.f32.mrb[133].mxu0  ;;  %v9357_v13 = vld [vmem:[%s12363_s4 + $0x180] sm:$0xff]  }
 0x31a   : > { %v11206_v2 = vadd.f32 %v8151_v28, %v8150_v25 }
 0x31b   : > { %v2649_v36 = vpack.c.bf16 %v8121_v41, %v8118_v61  ;;  %v8153_v61 = vpop.f32.mrb[134].mxu0 }
 0x31c   : > { %v8154_v41 = vpop.f32.mrb[135].mxu0 }
 0x31d   : > { %v8122_v11 = vpop.f32.mrb[124].mxu1  ;;  %2967 = vrot.lane.b32.xlu1 %v2649_v36, %s12388_s27  ;;  %v11219_v36 = vadd.f32 %v8154_v41, %v8153_v61 }
 0x31e   : > { %v8123_v45 = vpop.f32.mrb[125].mxu1 }
 0x31f   : > { %v8124_v14 = vadd.f32 %v8123_v45, %v8122_v11  ;;  %v8125_v58 = vpop.f32.mrb[126].mxu1  ;;  %v2928_v40 = vpop.permute.xlu1 %2927  ;;  %v2766_v8 = vpack.c.bf16 %v11219_v36, %v11206_v2 }
 0x320   : > { %v8126_v0 = vpop.f32.mrb[127].mxu1  ;;  %v3034_v63 = vsel %vm2983_vm1, %v12424_v15, %v2928_v40  ;;  %v8156_v45 = vpop.f32.mrb[136].mxu0 }
 0x321   : > { %v8127_v60 = vadd.f32 %v8126_v0, %v8125_v58  ;;  %3728 = vmatprep.mubr.bf16.mxu1 %v3034_v63  ;;  %2945 = vrot.lane.b32.xlu1 %v12425_v16, %s12388_s27  ;;  %v8157_v58 = vpop.f32.mrb[137].mxu0  ;;  %v12427_v16 = vpack.c.bf16 %v10642_v59, %v10629_v52  ;;  %v9362_v52 = vld [vmem:[%s12363_s4 + $0x1d8] sm:$0xff]  }
 0x322   : > { %v11237_v63 = vadd.f32 %v8157_v58, %v8156_v45  ;;  %v12430_v58 = vpack.c.bf16 %v10828_v33, %v10826_v54  ;;  %v9364_v54 = vld [vmem:[%s12363_s4 + $0x1e0] sm:$0xff]  }
 0x323   : > { %v2650_v11 = vpack.c.bf16 %v8127_v60, %v8124_v14  ;;  %v2916_v25 = vpop.permute.xlu1 %2915  ;;  %v9359_v14 = vld [vmem:[%s12363_s4 + $0x188] sm:$0xff]  }
 0x324   : > { %v3018_v0 = vsel %vm2983_vm1, %v12426_v48, %v2916_v25  ;;  %v9361_v48 = vld [vmem:[%s12363_s4 + $0x190] sm:$0xff]  }
 0x325   : > { %v8184_v21 = vpop.f32.mrb[128].mxu1  ;;  %3729 = vmatmul.mubr.bf16.vlgmr.msra.gmra.mrb[144].mxu1 %v3018_v0  ;;  %2969 = vrot.lane.b32.xlu1 %v2650_v11, %s12388_s27  ;;  %v12428_v11 = vpack.c.bf16 %v10958_v12, %v10946_v55  ;;  %v12429_v55 = vpack.c.bf16 %v10862_v56, %v10856_v20  ;;  %v9363_v20 = vld [vmem:[%s12363_s4 + $0x198] sm:$0xff]  }
 0x326   : > { %v8185_v28 = vpop.f32.mrb[129].mxu1  ;;  %8329 = vmatpush3.bf16.msra.mxu1 %v9357_v13 }
 0x327   : > { %v8186_v40 = vadd.f32 %v8185_v28, %v8184_v21  ;;  %v8187_v15 = vpop.f32.mrb[130].mxu1  ;;  %v2894_v27 = vpop.permute.xlu1 %2893  ;;  %8330 = vmatprep.subr.bf16.mxu1 %v9358_v62 }
 0x328   : > { %v2930_v61 = vpop.permute.xlu0 %2929  ;;  %v8188_v60 = vpop.f32.mrb[131].mxu1  ;;  %v2990_v41 = vsel %vm2983_vm1, %v12427_v16, %v2894_v27 }
 0x329   : > { %v8189_v13 = vadd.f32 %v8188_v60, %v8187_v15  ;;  %3672 = vmatmul.mubr.bf16.gmra.mrb[148].mxu0 %v2990_v41  ;;  %v3038_v25 = vsel %vm2983_vm1, %v12428_v11, %v2930_v61  ;;  %v8159_v62 = vpop.f32.mrb[138].mxu0  ;;  %v12431_v11 = vpack.c.bf16 %v10664_v37, %v10651_v24  ;;  %v9365_v24 = vld [vmem:[%s12363_s4 + $0x1a0] sm:$0xff]  }
 0x32a   : > { %3736 = vmatprep.mubr.bf16.mxu1 %v3038_v25  ;;  %8331 = vmatpush3.bf16.msra.mxu1 %v9359_v14  ;;  %v8160_v0 = vpop.f32.mrb[139].mxu0 }
 0x32b   : > { %v2883_v21 = vpack.c.bf16 %v8189_v13, %v8186_v40  ;;  %v2918_v45 = vpop.permute.xlu1 %2917  ;;  %8332 = vmatprep.subr.bf16.mxu1 %v9360_v22  ;;  %v11253_v59 = vadd.f32 %v8160_v0, %v8159_v62  ;;  %v8162_v27 = vpop.f32.mrb[140].mxu0  ;;  %v12433_v0 = vpack.c.bf16 %v10966_v35, %v10964_v29  ;;  %v12434_v35 = vpack.c.bf16 %v10886_v4, %v10874_v34  ;;  %v9367_v34 = vld [vmem:[%s12363_s4 + $0x1a8] sm:$0xff]  }
 0x32c   : > { %v2908_v12 = vpop.permute.xlu0 %2907  ;;  %v3022_v28 = vsel %vm2983_vm1, %v12429_v55, %v2918_v45  ;;  %v8163_v56 = vpop.f32.mrb[141].mxu0 }
 0x32d   : > { %v8190_v14 = vpop.f32.mrb[132].mxu1  ;;  %2975 = vrot.lane.b32.xlu0 %v2883_v21, %s12388_s27  ;;  %v3010_v40 = vsel %vm2983_vm1, %v12430_v58, %v2908_v12  ;;  %3737 = vmatmul.mubr.bf16.gmra.mrb[148].mxu1 %v3022_v28  ;;  %v2767_v15 = vpack.c.bf16 %v11253_v59, %v11237_v63  ;;  %v11272_v33 = vadd.f32 %v8163_v56, %v8162_v27  ;;  %v8165_v45 = vpop.f32.mrb[142].mxu0 }
 0x32e   : > { %3679 = vmatprep.mubr.bf16.mxu0 %v3010_v40  ;;  %v8191_v22 = vpop.f32.mrb[133].mxu1  ;;  %8333 = vmatpush3.bf16.msra.mxu1 %v9361_v48  ;;  %v12432_v48 = vpack.c.bf16 %v11129_v53, %v11122_v23  ;;  %v8166_v37 = vpop.f32.mrb[143].mxu0  ;;  %v9366_v23 = vld [vmem:[%s12363_s4 + $0x1e8] sm:$0xff]  }
 0x32f   : > { %v8192_v61 = vadd.f32 %v8191_v22, %v8190_v14  ;;  %v8193_v60 = vpop.f32.mrb[134].mxu1  ;;  %v2896_v16 = vpop.permute.xlu1 %2895  ;;  %8334 = vmatprep.subr.bf16.mxu1 %v9362_v52  ;;  %v11292_v53 = vadd.f32 %v8166_v37, %v8165_v45  ;;  %v12435_v14 = vpack.c.bf16 %v10839_v18, %v10833_v10  ;;  %v9368_v10 = vld [vmem:[%s12363_s4 + $0x1f0] sm:$0xff]  }
 0x330   : > { %v2932_v41 = vpop.permute.xlu0 %2931  ;;  %v8194_v13 = vpop.f32.mrb[135].mxu1  ;;  %v2994_v25 = vsel %vm2983_vm1, %v12431_v11, %v2896_v16 }
 0x331   : > { %v8195_v62 = vadd.f32 %v8194_v13, %v8193_v60  ;;  %2953 = vrot.lane.b32.xlu0 %v12432_v48, %s12388_s27  ;;  %3680 = vmatmul.mubr.bf16.gmra.mrb[152].mxu0 %v2994_v25  ;;  %v3042_v21 = vsel %vm2983_vm1, %v12433_v0, %v2932_v41  ;;  %v2768_v40 = vpack.c.bf16 %v11292_v53, %v11272_v33  ;;  %v12440_v25 = vld [vmem:[#allocation7_spill] sm:$0xff]  ;;  %v9371_v0 = vld [vmem:[%s12363_s4 + $0x1b8] sm:$0xff]  }
 0x332   : > { %3744 = vmatprep.mubr.bf16.mxu1 %v3042_v21  ;;  %8335 = vmatpush3.bf16.msra.mxu1 %v9363_v20  ;;  %v12438_v41 = vpack.c.bf16 %v10977_v6, %v10971_v1 }
 0x333   : > { %v2884_v52 = vpack.c.bf16 %v8195_v62, %v8192_v61  ;;  %v2920_v12 = vpop.permute.xlu1 %2919  ;;  %8336 = vmatprep.subr.bf16.mxu1 %v9364_v54  ;;  %v12436_v61 = vpack.c.bf16 %v10686_v17, %v10673_v9  ;;  %v12437_v54 = vpack.c.bf16 %v11149_v44, %v11144_v51  ;;  %v9369_v9 = vld [vmem:[%s12363_s4 + $0x1b0] sm:$0xff]   ;;  %v9370_v44 = vld [vmem:[%s12363_s4 + $0x1f8] sm:$0xff]  }
 0x334   : > { %v2910_v29 = vpop.permute.xlu0 %2909  ;;  %v3026_v55 = vsel %vm2983_vm1, %v12434_v35, %v2920_v12  ;;  %v12439_v51 = vld [vmem:[#allocation8_spill] sm:$0xff]  ;;  %v12443_v35 = vpack.c.bf16 %v11048_v57, %v11044_v30  ;;  %v12445_v30 = vpack.c.bf16 %v11127_v46, %v11117_v49 }
 0x335   : > { %v8196_v28 = vpop.f32.mrb[136].mxu1  ;;  %2977 = vrot.lane.b32.xlu0 %v2884_v52, %s12388_s27  ;;  %v3014_v58 = vsel %vm2983_vm1, %v12435_v14, %v2910_v29  ;;  %3745 = vmatmul.mubr.bf16.gmra.mrb[152].mxu1 %v3026_v55  ;;  %v12441_v62 = vpack.c.bf16 %v12439_v51, %v12440_v25  ;;  %v12442_v52 = vpack.c.bf16 %v11169_v31, %v11162_v42  ;;  %v12450_v46 = vld [vmem:[#allocation20_spill] sm:$0xff] }
 0x336   : > { %3687 = vmatprep.mubr.bf16.mxu0 %v3014_v58  ;;  %v8197_v27 = vpop.f32.mrb[137].mxu1  ;;  %8337 = vmatpush3.bf16.msra.mxu1 %v9365_v24 }
 0x337   : > { %v8198_v4 = vadd.f32 %v8197_v27, %v8196_v28  ;;  %v8199_v22 = vpop.f32.mrb[138].mxu1  ;;  %v2898_v20 = vpop.permute.xlu1 %2897  ;;  %8338 = vmatprep.subr.bf16.mxu1 %v9366_v23  ;;  %v12444_v28 = vpack.c.bf16 %v10996_v7, %v10986_v43 }
 0x338   : > { %v2934_v18 = vpop.permute.xlu0 %2933  ;;  %v8200_v56 = vpop.f32.mrb[139].mxu1  ;;  %v2998_v60 = vsel %vm2983_vm1, %v12436_v61, %v2898_v20  ;;  %v12447_v20 = vld [vmem:[#allocation10_spill] sm:$0xff] }
 0x339   : > { %v8201_v16 = vadd.f32 %v8200_v56, %v8199_v22  ;;  %2955 = vrot.lane.b32.xlu0 %v12437_v54, %s12388_s27  ;;  %3688 = vmatmul.mubr.bf16.gmra.mrb[156].mxu0 %v2998_v60  ;;  %v3046_v13 = vsel %vm2983_vm1, %v12438_v41, %v2934_v18  ;;  %v12451_v18 = vld [vmem:[#allocation19_spill] sm:$0xff]  ;;  %v12453_v60 = vld [vmem:[#allocation16_spill] sm:$0xff] }
 0x33a   : > { %3752 = vmatprep.mubr.bf16.mxu1 %v3046_v13  ;;  %8339 = vmatpush3.bf16.msra.mxu1 %v9367_v34  ;;  %v12452_v56 = vpack.c.bf16 %v12450_v46, %v12451_v18  ;;  %v12456_v13 = vld [vmem:[#allocation12_spill] sm:$0xff] }
 0x33b   : > { %v2885_v17 = vpack.c.bf16 %v8201_v16, %v8198_v4  ;;  %v2922_v11 = vpop.permute.xlu1 %2921  ;;  %8340 = vmatprep.subr.bf16.mxu1 %v9368_v10  ;;  %v12446_v4 = vpack.c.bf16 %v11072_v47, %v11054_v3  ;;  %v12448_v10 = vld [vmem:[#allocation9_spill] sm:$0xff]  ;;  %v12454_v16 = vld [vmem:[#allocation15_spill] sm:$0xff] }
 0x33c   : > { %v3030_v1 = vsel %vm2983_vm1, %v12441_v62, %v2922_v11  ;;  %v12449_v5 = vpack.c.bf16 %v12447_v20, %v12448_v10  ;;  %v12455_v54 = vpack.c.bf16 %v12453_v60, %v12454_v16  ;;  %v12460_v62 = vld [vmem:[#allocation18_spill] sm:$0xff] }
 0x33d   : > { %v8202_v6 = vpop.f32.mrb[140].mxu1  ;;  %2979 = vrot.lane.b32.xlu0 %v2885_v17, %s12388_s27  ;;  %3753 = vmatmul.mubr.bf16.gmra.mrb[156].mxu1 %v3030_v1  ;;  %v12461_v1 = vld [vmem:[#allocation17_spill] sm:$0xff] }
 0x33e   : > { %v8203_v48 = vpop.f32.mrb[141].mxu1  ;;  %8341 = vmatpush3.bf16.msra.mxu1 %v9369_v9  ;;  %v12457_v9 = vld [vmem:[#allocation11_spill] sm:$0xff] }
 0x33f   : > { %v8204_v21 = vadd.f32 %v8203_v48, %v8202_v6  ;;  %v8205_v45 = vpop.f32.mrb[142].mxu1  ;;  %8342 = vmatprep.subr.bf16.mxu1 %v9370_v44  ;;  %v2940_v23 = vpop.permute.xlu1 %2939  ;;  %v12458_v2 = vpack.c.bf16 %v12456_v13, %v12457_v9  ;;  %v12459_v44 = vpack.c.bf16 %v11179_v39, %v11177_v50  ;;  %v12462_v6 = vpack.c.bf16 %v12460_v62, %v12461_v1 }
 0x340   : > { %v8206_v24 = vpop.f32.mrb[143].mxu1  ;;  %v3050_v14 = vsel %vm2983_vm1, %v12444_v28, %v2940_v23 }
 0x341   : > { %v8207_v37 = vadd.f32 %v8206_v24, %v8205_v45  ;;  %2957 = vrot.lane.b32.xlu0 %v12442_v52, %s12388_s27 }
 0x342   : > { %8343 = vmatpush3.bf16.msra.mxu1 %v9371_v0  ;;  %v12463_v0 = vld [vmem:[#allocation14_spill] sm:$0xff] }
 0x343   : > { %v2886_v12 = vpack.c.bf16 %v8207_v37, %v8204_v21  ;;  %v12464_v21 = vld [vmem:[#allocation13_spill] sm:$0xff]  ;;  %v12466_v37 = vpack.c.bf16 %v11190_v32, %v11184_v38 }
 0x344   : > { %v12465_v45 = vpack.c.bf16 %v12463_v0, %v12464_v21 }
 0x345   : > { %2981 = vrot.lane.b32.xlu0 %v2886_v12, %s12388_s27  ;;  %s7545_s27 = sshll.u32 %s9767_s29, 4 }
 0x346   : > { %s12317_s30 = scalar_lea.hbm %s12372_s13, %s7545_s27 }
 0x35f   : > { %v2952_v29 = vpop.permute.xlu0 %2951 }
 0x360   : > { %v3066_v55 = vsel %vm2983_vm1, %v12443_v35, %v2952_v29 }
 0x361   : > { %3793 = vmatprep.mubr.bf16.mxu0 %v3066_v55  ;;  %v7256_v55 = vld [vmem:[%s12364_s5] ss:$0 sm:$0xff] }
 0x362   : > { %3794 = vmatmul.mubr.bf16.vlgmr.msra.gmra.mrb[160].mxu0 %v3050_v14 }
 0x37f   : > { %v2964_v31 = vpop.permute.xlu1 %2963 }
 0x380   : > { %v3082_v57 = vsel %vm2983_vm1, %v12445_v30, %v2964_v31 }
 0x383   : > { %v2942_v42 = vpop.permute.xlu1 %2941 }
 0x384   : > { %v3054_v19 = vsel %vm2983_vm1, %v12449_v5, %v2942_v42 }
 0x387   : > { %v2966_v58 = vpop.permute.xlu1 %2965 }
 0x388   : > { %v3086_v3 = vsel %vm2983_vm1, %v12452_v56, %v2966_v58 }
 0x38b   : > { %v2944_v7 = vpop.permute.xlu1 %2943 }
 0x38c   : > { %v3058_v36 = vsel %vm2983_vm1, %v12458_v2, %v2944_v7 }
 0x38f   : > { %v2968_v47 = vpop.permute.xlu1 %2967 }
 0x390   : > { %v3090_v51 = vsel %vm2983_vm1, %v12459_v44, %v2968_v47 }
 0x393   : > { %v2946_v17 = vpop.permute.xlu1 %2945 }
 0x394   : > { %v3062_v63 = vsel %vm2983_vm1, %v12465_v45, %v2946_v17  ;;  %v9673_v45 = vmov 0.0  }
 0x395   : > { %8659 = vmatprep.subr.bf16.mxu0 %v9673_v45  ;;  %8683 = vmatprep.subr.bf16.mxu1 %v9673_v45 }
 0x397   : > { %v2970_v59 = vpop.permute.xlu1 %2969 }
 0x398   : > { %v3094_v52 = vsel %vm2983_vm1, %v12466_v37, %v2970_v59 }
 0x39f   : > { %v2976_v27 = vpop.permute.xlu0 %2975 }
 0x3a0   : > { %v3098_v34 = vsel %vm2983_vm1, %v2765_v26, %v2976_v27 }
 0x3a1   : > { %3858 = vmatprep.mubr.bf16.mxu1 %v3098_v34 }
 0x3a2   : > { %3859 = vmatmul.mubr.bf16.vlgmr.msra.gmra.mrb[160].mxu1 %v3082_v57 }
 0x3a3   : > { %v2954_v43 = vpop.permute.xlu0 %2953 }
 0x3a4   : > { %v3070_v22 = vsel %vm2983_vm1, %v12446_v4, %v2954_v43 }
 0x3a5   : > { %3801 = vmatprep.mubr.bf16.mxu0 %v3070_v22 }
 0x3a6   : > { %3802 = vmatmul.mubr.bf16.gmra.mrb[164].mxu0 %v3054_v19 }
 0x3a7   : > { %v2978_v26 = vpop.permute.xlu0 %2977 }
 0x3a8   : > { %v3102_v49 = vsel %vm2983_vm1, %v2766_v8, %v2978_v26 }
 0x3a9   : > { %3866 = vmatprep.mubr.bf16.mxu1 %v3102_v49 }
 0x3aa   : > { %3867 = vmatmul.mubr.bf16.gmra.mrb[164].mxu1 %v3086_v3 }
 0x3ab   : > { %v2956_v61 = vpop.permute.xlu0 %2955 }
 0x3ac   : > { %v3074_v41 = vsel %vm2983_vm1, %v12455_v54, %v2956_v61 }
 0x3ad   : > { %3809 = vmatprep.mubr.bf16.mxu0 %v3074_v41 }
 0x3ae   : > { %3810 = vmatmul.mubr.bf16.gmra.mrb[168].mxu0 %v3058_v36 }
 0x3af   : > { %v2980_v8 = vpop.permute.xlu0 %2979 }
 0x3b0   : > { %v3106_v11 = vsel %vm2983_vm1, %v2767_v15, %v2980_v8 }
 0x3b1   : > { %3874 = vmatprep.mubr.bf16.mxu1 %v3106_v11 }
 0x3b2   : > { %3875 = vmatmul.mubr.bf16.gmra.mrb[168].mxu1 %v3090_v51 }
 0x3b3   : > { %v2958_v25 = vpop.permute.xlu0 %2957 }
 0x3b4   : > { %v3078_v48 = vsel %vm2983_vm1, %v12462_v6, %v2958_v25 }
 0x3b5   : > { %3817 = vmatprep.mubr.bf16.mxu0 %v3078_v48 }
 0x3b6   : > { %3818 = vmatmul.mubr.bf16.gmra.mrb[172].mxu0 %v3062_v63 }
 0x3b7   : > { %v2982_v15 = vpop.permute.xlu0 %2981  ;;  %8667 = vmatprep.mubr.msk.bf16.mxu0 %vm9674_vm2, %v9673_v45 }
 0x3b8   : > { %v8224_v24 = vpop.f32.mrb[144].mxu0  ;;  %v3110_v50 = vsel %vm2983_vm1, %v2768_v40, %v2982_v15 }
 0x3b9   : > { %v8225_v39 = vpop.f32.mrb[145].mxu0  ;;  %3882 = vmatprep.mubr.bf16.mxu1 %v3110_v50 }
 0x3ba   : > { %v8226_v12 = vadd.f32 %v8225_v39, %v8224_v24  ;;  %v8227_v23 = vpop.f32.mrb[146].mxu0  ;;  %3883 = vmatmul.mubr.bf16.gmra.mrb[172].mxu1 %v3094_v52 }
 0x3bb   : > { %v8228_v29 = vpop.f32.mrb[147].mxu0  ;;  %8691 = vmatprep.mubr.msk.bf16.mxu1 %vm9674_vm2, %v9673_v45 }
 0x3bc   : > { %v8229_v35 = vadd.f32 %v8228_v29, %v8227_v23  ;;  %v3666_v53 = vadd.f32 %v8226_v12, %v7256_v55 }
 0x3be   : > { %v3669_v42 = vadd.f32 %v8229_v35, %v7256_v55 }
 0x3f8   : > { %v8264_v28 = vpop.f32.mrb[144].mxu1 }
 0x3f9   : > { %v8265_v33 = vpop.f32.mrb[145].mxu1 }
 0x3fa   : > { %v8266_v40 = vadd.f32 %v8265_v33, %v8264_v28  ;;  %v8267_v14 = vpop.f32.mrb[146].mxu1 }
 0x3fb   : > { %v8268_v31 = vpop.f32.mrb[147].mxu1 }
 0x3fc   : > { %v3731_v58 = vadd.f32 %v8266_v40, %v3666_v53  ;;  %v8269_v38 = vadd.f32 %v8268_v31, %v8267_v14  ;;  %v8230_v32 = vpop.f32.mrb[148].mxu0 }
 0x3fd   : > { %v8231_v27 = vpop.f32.mrb[149].mxu0 }
 0x3fe   : > { %v3734_v34 = vadd.f32 %v8269_v38, %v3669_v42  ;;  %v8232_v30 = vadd.f32 %v8231_v27, %v8230_v32  ;;  %v8233_v57 = vpop.f32.mrb[150].mxu0 }
 0x3ff   : > { %v8234_v43 = vpop.f32.mrb[151].mxu0 }
 0x400   : > { %v8235_v7 = vadd.f32 %v8234_v43, %v8233_v57  ;;  %v8270_v4 = vpop.f32.mrb[148].mxu1  ;;  %v3674_v20 = vadd.f32 %v8232_v30, %v7256_v55 }
 0x401   : > { %v8271_v22 = vpop.f32.mrb[149].mxu1 }
 0x402   : > { %v8272_v10 = vadd.f32 %v8271_v22, %v8270_v4  ;;  %v8273_v5 = vpop.f32.mrb[150].mxu1  ;;  %v3677_v26 = vadd.f32 %v8235_v7, %v7256_v55 }
 0x403   : > { %v8274_v19 = vpop.f32.mrb[151].mxu1 }
 0x404   : > { %v11409_v49 = vadd.f32 %v8272_v10, %v3674_v20  ;;  %v8275_v46 = vadd.f32 %v8274_v19, %v8273_v5  ;;  %v8236_v18 = vpop.f32.mrb[152].mxu0 }
 0x405   : > { %v8237_v56 = vpop.f32.mrb[153].mxu0 }
 0x406   : > { %v11411_v3 = vadd.f32 %v8275_v46, %v3677_v26  ;;  %v8238_v47 = vadd.f32 %v8237_v56, %v8236_v18  ;;  %v8239_v61 = vpop.f32.mrb[154].mxu0 }
 0x407   : > { %v8240_v60 = vpop.f32.mrb[155].mxu0 }
 0x408   : > { %v8241_v16 = vadd.f32 %v8240_v60, %v8239_v61  ;;  %v8276_v54 = vpop.f32.mrb[152].mxu1  ;;  %v3682_v13 = vadd.f32 %v8238_v47, %v7256_v55 }
 0x409   : > { %v8277_v41 = vpop.f32.mrb[153].mxu1 }
 0x40a   : > { %v8278_v9 = vadd.f32 %v8277_v41, %v8276_v54  ;;  %v8279_v2 = vpop.f32.mrb[154].mxu1  ;;  %v3685_v8 = vadd.f32 %v8241_v16, %v7256_v55 }
 0x40b   : > { %v8280_v36 = vpop.f32.mrb[155].mxu1 }
 0x40c   : > { %v11413_v17 = vadd.f32 %v8278_v9, %v3682_v13  ;;  %v8281_v11 = vadd.f32 %v8280_v36, %v8279_v2  ;;  %v8242_v44 = vpop.f32.mrb[156].mxu0 }
 0x40d   : > { %v8243_v51 = vpop.f32.mrb[157].mxu0 }
 0x40e   : > { %v11415_v25 = vadd.f32 %v8281_v11, %v3685_v8  ;;  %v8244_v62 = vadd.f32 %v8243_v51, %v8242_v44  ;;  %v8245_v1 = vpop.f32.mrb[158].mxu0 }
 0x40f   : > { %v8246_v6 = vpop.f32.mrb[159].mxu0 }
 0x410   : > { %v8247_v48 = vadd.f32 %v8246_v6, %v8245_v1  ;;  %v8282_v0 = vpop.f32.mrb[156].mxu1  ;;  %v3690_v63 = vadd.f32 %v8244_v62, %v7256_v55 }
 0x411   : > { %v8283_v21 = vpop.f32.mrb[157].mxu1 }
 0x412   : > { %v8284_v59 = vadd.f32 %v8283_v21, %v8282_v0  ;;  %v8285_v15 = vpop.f32.mrb[158].mxu1  ;;  %v3693_v50 = vadd.f32 %v8247_v48, %v7256_v55 }
 0x413   : > { %v8286_v24 = vpop.f32.mrb[159].mxu1 }
 0x414   : > { %v11419_v39 = vadd.f32 %v8284_v59, %v3690_v63  ;;  %v8287_v37 = vadd.f32 %v8286_v24, %v8285_v15 }
 0x416   : > { %v11421_v52 = vadd.f32 %v8287_v37, %v3693_v50 }
 0x435   : > { %v8304_v12 = vpop.f32.mrb[160].mxu0 }
 0x436   : > { %v8305_v23 = vpop.f32.mrb[161].mxu0 }
 0x437   : > { %v8306_v29 = vadd.f32 %v8305_v23, %v8304_v12  ;;  %v8307_v35 = vpop.f32.mrb[162].mxu0 }
 0x438   : > { %v8308_v28 = vpop.f32.mrb[163].mxu0 }
 0x439   : > { %v3796_v33 = vadd.f32 %v8306_v29, %v3731_v58  ;;  %v8309_v53 = vadd.f32 %v8308_v28, %v8307_v35 }
 0x43b   : > { %v3799_v55 = vadd.f32 %v8309_v53, %v3734_v34 }
 0x475   : > { %v8344_v40 = vpop.f32.mrb[160].mxu1 }
 0x476   : > { %v8345_v14 = vpop.f32.mrb[161].mxu1 }
 0x477   : > { %v8346_v31 = vadd.f32 %v8345_v14, %v8344_v40  ;;  %v8347_v42 = vpop.f32.mrb[162].mxu1 }
 0x478   : > { %v8348_v38 = vpop.f32.mrb[163].mxu1 }
 0x479   : > { %v11427_v32 = vadd.f32 %v8346_v31, %v3796_v33  ;;  %v8349_v27 = vadd.f32 %v8348_v38, %v8347_v42  ;;  %v8310_v30 = vpop.f32.mrb[164].mxu0 }
 0x47a   : > { %v8311_v57 = vpop.f32.mrb[165].mxu0 }
 0x47b   : > { %v3899_v43 = vmin.f32 %v11427_v32, 0.0  ;;  %v3864_v7 = vadd.f32 %v8349_v27, %v3799_v55  ;;  %v8312_v4 = vadd.f32 %v8311_v57, %v8310_v30  ;;  %v8313_v22 = vpop.f32.mrb[166].mxu0  ;;  %vm3891_vm3 = vcmp.gt.f32.partialorder %v11427_v32, 0.0 }
 0x47c   : > { %v8314_v20 = vpop.f32.mrb[167].mxu0 }
 0x47d   : > { %v3907_v10 = vmul.f32 1.442695, %v3899_v43  ;;  %v3900_v58 = vmin.f32 %v3864_v7, 0.0  ;;  %v3804_v34 = vadd.f32 %v8312_v4, %v11409_v49  ;;  %v8350_v5 = vpop.f32.mrb[164].mxu1  ;;  %v8315_v19 = vadd.f32 %v8314_v20, %v8313_v22 }
 0x47e   : > { %v8351_v26 = vpop.f32.mrb[165].mxu1  ;;  %vm3892_vm4 = vcmp.gt.f32.partialorder %v3864_v7, 0.0 }
 0x47f   : > { %9584 = vpow2.f32 %v3907_v10  ;;  %v3909_v46 = vmul.f32 1.442695, %v3900_v58  ;;  %v8352_v18 = vadd.f32 %v8351_v26, %v8350_v5  ;;  %v8353_v56 = vpop.f32.mrb[166].mxu1  ;;  %v3807_v47 = vadd.f32 %v8315_v19, %v11411_v3 }
 0x480   : > { %v8354_v61 = vpop.f32.mrb[167].mxu1 }
 0x481   : > { %9586 = vpow2.f32 %v3909_v46  ;;  %v11432_v60 = vadd.f32 %v8352_v18, %v3804_v34  ;;  %v8355_v16 = vadd.f32 %v8354_v61, %v8353_v56  ;;  %v8316_v54 = vpop.f32.mrb[168].mxu0 }
 0x482   : > { %v8317_v41 = vpop.f32.mrb[169].mxu0 }
 0x483   : > { %v3901_v13 = vmin.f32 %v11432_v60, 0.0  ;;  %v11435_v9 = vadd.f32 %v8355_v16, %v3807_v47  ;;  %v8318_v49 = vadd.f32 %v8317_v41, %v8316_v54  ;;  %v8319_v2 = vpop.f32.mrb[170].mxu0  ;;  %vm3893_vm5 = vcmp.gt.f32.partialorder %v11432_v60, 0.0 }
 0x484   : > { %v8320_v36 = vpop.f32.mrb[171].mxu0 }
 0x485   : > { %v3911_v8 = vmul.f32 1.442695, %v3901_v13  ;;  %v3902_v11 = vmin.f32 %v11435_v9, 0.0  ;;  %v3812_v44 = vadd.f32 %v8318_v49, %v11413_v17  ;;  %v8356_v3 = vpop.f32.mrb[168].mxu1  ;;  %v8321_v51 = vadd.f32 %v8320_v36, %v8319_v2 }
 0x486   : > { %v8357_v62 = vpop.f32.mrb[169].mxu1  ;;  %vm3894_vm6 = vcmp.gt.f32.partialorder %v11435_v9, 0.0 }
 0x487   : > { %9588 = vpow2.f32 %v3911_v8  ;;  %v3913_v1 = vmul.f32 1.442695, %v3902_v11  ;;  %v8358_v6 = vadd.f32 %v8357_v62, %v8356_v3  ;;  %v8359_v48 = vpop.f32.mrb[170].mxu1  ;;  %v3815_v0 = vadd.f32 %v8321_v51, %v11415_v25  ;;  %v9372_v3 = vld [vmem:[%s12365_s6] sm:$0xff]   ;;  %v9373_v51 = vld [vmem:[%s12365_s6 + $0x10] sm:$0xff]   ;;  %v9374_v62 = vld [vmem:[%s12365_s6 + $0x8] sm:$0xff]  }
 0x488   : > { %v8360_v21 = vpop.f32.mrb[171].mxu1 }
 0x489   : > { %v9585_v63 = vpop.eup %9584  ;;  %9590 = vpow2.f32 %v3913_v1  ;;  %v11440_v59 = vadd.f32 %v8358_v6, %v3812_v44  ;;  %v8361_v15 = vadd.f32 %v8360_v21, %v8359_v48  ;;  %v8322_v24 = vpop.f32.mrb[172].mxu0  ;;  %v9375_v1 = vld [vmem:[%s12365_s6 + $0x20] sm:$0xff]   ;;  %v9376_v6 = vld [vmem:[%s12365_s6 + $0x18] sm:$0xff]   ;;  %v9377_v48 = vld [vmem:[%s12365_s6 + $0x30] sm:$0xff]  }
 0x48a   : > { %v7321_v50 = vadd.f32 -1.0, %v9585_v63  ;;  %v8323_v37 = vpop.f32.mrb[173].mxu0  ;;  %v9379_v21 = vld [vmem:[%s12365_s6 + $0x40] sm:$0xff]   ;;  %v9380_v63 = vld [vmem:[%s12365_s6 + $0x38] sm:$0xff]  }
 0x48b   : > { %v9587_v12 = vpop.eup %9586  ;;  %v3903_v17 = vmin.f32 %v11440_v59, 0.0  ;;  %v3880_v23 = vadd.f32 %v8361_v15, %v3815_v0  ;;  %v8324_v29 = vadd.f32 %v8323_v37, %v8322_v24  ;;  %v8325_v35 = vpop.f32.mrb[174].mxu0  ;;  %vm3895_vm7 = vcmp.gt.f32.partialorder %v11440_v59, 0.0  ;;  %v9378_v0 = vld [vmem:[%s12365_s6 + $0x28] sm:$0xff]   ;;  %v9383_v24 = vld [vmem:[%s12365_s6 + $0x60] sm:$0xff]  }
 0x48c   : > { %v7322_v28 = vadd.f32 -1.0, %v9587_v12  ;;  %v8326_v33 = vpop.f32.mrb[175].mxu0  ;;  %v3931_v14 = vsel %vm3891_vm3, %v11427_v32, %v7321_v50  ;;  %v9382_v15 = vld [vmem:[%s12365_s6 + $0x48] sm:$0xff]   ;;  %v9384_v50 = vld [vmem:[%s12365_s6 + $0x58] sm:$0xff]   ;;  %v9387_v12 = vld [vmem:[%s12365_s6 + $0x70] sm:$0xff]  }
 0x48d   : > { %v3915_v25 = vmul.f32 1.442695, %v3903_v17  ;;  %v3904_v53 = vmin.f32 %v3880_v23, 0.0  ;;  %v3820_v55 = vadd.f32 %v8324_v29, %v11419_v39  ;;  %v8362_v40 = vpop.f32.mrb[172].mxu1  ;;  %v8327_v42 = vadd.f32 %v8326_v33, %v8325_v35  ;;  %v9385_v37 = vld [vmem:[%s12365_s6 + $0x68] sm:$0xff]   ;;  %v9386_v17 = vld [vmem:[%s12365_s6 + $0x78] sm:$0xff]  }
 0x48e   : > { %v3932_v31 = vsel %vm3892_vm4, %v3864_v7, %v7322_v28  ;;  %v8363_v38 = vpop.f32.mrb[173].mxu1  ;;  %vm3896_vm8 = vcmp.gt.f32.partialorder %v3880_v23, 0.0  ;;  %v9389_v29 = vld [vmem:[%s12366_s7] sm:$0xff]   ;;  %v9390_v35 = vld [vmem:[%s12366_s7 + $0x48] sm:$0xff]  }
 0x48f   : > { %v11446_v27 = vpack.c.bf16 %v3932_v31, %v3931_v14  ;;  %9592 = vpow2.f32 %v3915_v25  ;;  %v3917_v30 = vmul.f32 1.442695, %v3904_v53  ;;  %v8364_v57 = vadd.f32 %v8363_v38, %v8362_v40  ;;  %v8365_v43 = vpop.f32.mrb[174].mxu1  ;;  %v9391_v28 = vld [vmem:[%s12366_s7 + $0x8] sm:$0xff]   ;;  %v9392_v53 = vld [vmem:[%s12366_s7 + $0x50] sm:$0xff]   ;;  %v9395_v38 = vld [vmem:[%s12366_s7 + $0x18] sm:$0xff]  }
 0x490   : > { %v3823_v4 = vadd.f32 %v8327_v42, %v11421_v52  ;;  %v8366_v22 = vpop.f32.mrb[175].mxu1  ;;  %v9393_v40 = vld [vmem:[%s12366_s7 + $0x10] sm:$0xff]   ;;  %v9394_v42 = vld [vmem:[%s12366_s7 + $0x58] sm:$0xff]  }
 0x491   : > { %v9589_v20 = vpop.eup %9588  ;;  %9594 = vpow2.f32 %v3917_v30  ;;  %v3885_v10 = vadd.f32 %v8364_v57, %v3820_v55  ;;  %v8367_v58 = vadd.f32 %v8366_v22, %v8365_v43  ;;  %8660 = vmatpush3.bf16.msra.mxu0 %v11446_v27  ;;  %8684 = vmatpush3.bf16.msra.mxu1 %v11446_v27  ;;  %v9397_v30 = vld [vmem:[%s12366_s7 + $0x20] sm:$0xff]   ;;  %v9398_v43 = vld [vmem:[%s12366_s7 + $0x68] sm:$0xff]  }
 0x492   : > { %v7323_v39 = vadd.f32 -1.0, %v9589_v20  ;;  %8661 = vmatprep.subr.bf16.mxu0 %v9673_v45  ;;  %8685 = vmatprep.subr.bf16.mxu1 %v9673_v45 }
 0x493   : > { %v9591_v32 = vpop.eup %9590  ;;  %v3905_v7 = vmin.f32 %v3885_v10, 0.0  ;;  %v3888_v34 = vadd.f32 %v8367_v58, %v3823_v4  ;;  %vm3897_vm9 = vcmp.gt.f32.partialorder %v3885_v10, 0.0  ;;  %v9399_v58 = vld [vmem:[%s12366_s7 + $0x28] sm:$0xff]  }
 0x494   : > { %v7324_v5 = vadd.f32 -1.0, %v9591_v32  ;;  %v3933_v26 = vsel %vm3893_vm5, %v11432_v60, %v7323_v39  ;;  %v9400_v39 = vld [vmem:[%s12366_s7 + $0x70] sm:$0xff]  }
 0x495   : > { %v3919_v52 = vmul.f32 1.442695, %v3905_v7  ;;  %v3906_v19 = vmin.f32 %v3888_v34, 0.0  ;;  %vm3898_vm10 = vcmp.gt.f32.partialorder %v3888_v34, 0.0  ;;  %v9401_v7 = vld [vmem:[%s12366_s7 + $0x30] sm:$0xff]  }
 0x496   : > { %v3934_v46 = vsel %vm3894_vm6, %v11435_v9, %v7324_v5  ;;  %v9402_v5 = vld [vmem:[%s12366_s7 + $0x78] sm:$0xff]  }
 0x497   : > { %v11457_v18 = vpack.c.bf16 %v3934_v46, %v3933_v26  ;;  %9596 = vpow2.f32 %v3919_v52  ;;  %v3921_v56 = vmul.f32 1.442695, %v3906_v19  ;;  %v9403_v46 = vld [vmem:[%s12366_s7 + $0x38] sm:$0xff]  }
 0x499   : > { %v9593_v47 = vpop.eup %9592  ;;  %9598 = vpow2.f32 %v3921_v56  ;;  %8662 = vmatpush3.bf16.msra.mxu0 %v11457_v18  ;;  %8686 = vmatpush3.bf16.msra.mxu1 %v11457_v18  ;;  %v9405_v56 = vld [vmem:[%s12366_s7 + $0x80] sm:$0xff]  }
 0x49a   : > { %v7325_v61 = vadd.f32 -1.0, %v9593_v47  ;;  %8663 = vmatprep.subr.bf16.mxu0 %v9673_v45  ;;  %8687 = vmatprep.subr.bf16.mxu1 %v9673_v45  ;;  %v9406_v47 = vld [vmem:[%s12366_s7 + $0xc8] sm:$0xff]  }
 0x49b   : > { %v9595_v16 = vpop.eup %9594 }
 0x49c   : > { %v7326_v54 = vadd.f32 -1.0, %v9595_v16  ;;  %v3935_v60 = vsel %vm3895_vm7, %v11440_v59, %v7325_v61  ;;  %v9381_v59 = vld [vmem:[%s12365_s6 + $0x50] sm:$0xff]  }
 0x49e   : > { %v3936_v41 = vsel %vm3896_vm8, %v3880_v23, %v7326_v54  ;;  %v9388_v23 = vld [vmem:[%s12366_s7 + $0x40] sm:$0xff]   ;;  %v9407_v54 = vld [vmem:[%s12366_s7 + $0x88] sm:$0xff]  }
 0x49f   : > { %v11465_v13 = vpack.c.bf16 %v3936_v41, %v3935_v60  ;;  %v9408_v41 = vld [vmem:[%s12366_s7 + $0xd0] sm:$0xff]  }
 0x4a1   : > { %v9597_v9 = vpop.eup %9596  ;;  %8664 = vmatpush3.bf16.msra.mxu0 %v11465_v13  ;;  %8688 = vmatpush3.bf16.msra.mxu1 %v11465_v13 }
 0x4a2   : > { %v7327_v49 = vadd.f32 -1.0, %v9597_v9  ;;  %8665 = vmatprep.subr.bf16.mxu0 %v9673_v45  ;;  %8689 = vmatprep.subr.bf16.mxu1 %v9673_v45 }
 0x4a3   : > { %v9599_v2 = vpop.eup %9598 }
 0x4a4   : > { %v7328_v36 = vadd.f32 -1.0, %v9599_v2  ;;  %v3937_v8 = vsel %vm3897_vm9, %v3885_v10, %v7327_v49  ;;  %v9409_v2 = vld [vmem:[%s12366_s7 + $0x90] sm:$0xff]  }
 0x4a6   : > { %v3938_v11 = vsel %vm3898_vm10, %v3888_v34, %v7328_v36 }
 0x4a7   : > { %v11471_v44 = vpack.c.bf16 %v3938_v11, %v3937_v8  ;;  %v9410_v8 = vld [vmem:[%s12366_s7 + $0xd8] sm:$0xff]  }
 0x4a9   : > { %8666 = vmatpush3.bf16.msra.mxu0 %v11471_v44  ;;  %8690 = vmatpush3.bf16.msra.mxu1 %v11471_v44 }
 0x4aa   : > { %8671 = vmatprep.subr.bf16.mxu0 %v9673_v45  ;;  %8707 = vmatprep.subr.bf16.mxu1 %v9673_v45 }
 0x4ac   : > { %8668 = vmatmul.mubr.msk.bf16.vlgmr.msra.gmra.mrb[176].mxu0 %vm2983_vm1, %v9372_v3  ;;  %8692 = vmatmul.mubr.msk.bf16.vlgmr.msra.gmra.mrb[176].mxu1 %vm2983_vm1, %v9373_v51  ;;  %v9411_v51 = vld [vmem:[%s12366_s7 + $0x98] sm:$0xff]  }
 0x4ad   : > { %8672 = vmatpush3.bf16.msra.mxu0 %v11446_v27  ;;  %8708 = vmatpush3.bf16.msra.mxu1 %v11446_v27 }
 0x4ae   : > { %8673 = vmatprep.subr.bf16.mxu0 %v9673_v45  ;;  %8709 = vmatprep.subr.bf16.mxu1 %v9673_v45 }
 0x4af   : > { %8679 = vmatprep.mubr.msk.bf16.mxu0 %vm9674_vm2, %v9673_v45  ;;  %8715 = vmatprep.mubr.msk.bf16.mxu1 %vm9674_vm2, %v9673_v45 }
 0x4b1   : > { %8674 = vmatpush3.bf16.msra.mxu0 %v11457_v18  ;;  %8710 = vmatpush3.bf16.msra.mxu1 %v11457_v18 }
 0x4b2   : > { %8675 = vmatprep.subr.bf16.mxu0 %v9673_v45  ;;  %8711 = vmatprep.subr.bf16.mxu1 %v9673_v45 }
 0x4b5   : > { %8676 = vmatpush3.bf16.msra.mxu0 %v11465_v13  ;;  %8712 = vmatpush3.bf16.msra.mxu1 %v11465_v13 }
 0x4b6   : > { %8677 = vmatprep.subr.bf16.mxu0 %v9673_v45  ;;  %8713 = vmatprep.subr.bf16.mxu1 %v9673_v45 }
 0x4b9   : > { %8678 = vmatpush3.bf16.msra.mxu0 %v11471_v44  ;;  %8714 = vmatpush3.bf16.msra.mxu1 %v11471_v44 }
 0x4ba   : > { %8695 = vmatprep.subr.bf16.mxu0 %v9673_v45  ;;  %8731 = vmatprep.subr.bf16.mxu1 %v9673_v45 }
 0x4bc   : > { %8680 = vmatmul.mubr.msk.bf16.vlgmr.msra.gmra.mrb[180].mxu0 %vm2983_vm1, %v9374_v62  ;;  %8716 = vmatmul.mubr.msk.bf16.vlgmr.msra.gmra.mrb[180].mxu1 %vm2983_vm1, %v9375_v1  ;;  %v9412_v62 = vld [vmem:[%s12366_s7 + $0xe0] sm:$0xff]  }
 0x4bd   : > { %8696 = vmatpush3.bf16.msra.mxu0 %v11446_v27  ;;  %8732 = vmatpush3.bf16.msra.mxu1 %v11446_v27  ;;  %v9413_v1 = vld [vmem:[%s12366_s7 + $0xa0] sm:$0xff]  }
 0x4be   : > { %8697 = vmatprep.subr.bf16.mxu0 %v9673_v45  ;;  %8733 = vmatprep.subr.bf16.mxu1 %v9673_v45 }
 0x4bf   : > { %8703 = vmatprep.mubr.msk.bf16.mxu0 %vm9674_vm2, %v9673_v45  ;;  %8739 = vmatprep.mubr.msk.bf16.mxu1 %vm9674_vm2, %v9673_v45 }
 0x4c1   : > { %8698 = vmatpush3.bf16.msra.mxu0 %v11457_v18  ;;  %8734 = vmatpush3.bf16.msra.mxu1 %v11457_v18 }
 0x4c2   : > { %8699 = vmatprep.subr.bf16.mxu0 %v9673_v45  ;;  %8735 = vmatprep.subr.bf16.mxu1 %v9673_v45 }
 0x4c5   : > { %8700 = vmatpush3.bf16.msra.mxu0 %v11465_v13  ;;  %8736 = vmatpush3.bf16.msra.mxu1 %v11465_v13 }
 0x4c6   : > { %8701 = vmatprep.subr.bf16.mxu0 %v9673_v45  ;;  %8737 = vmatprep.subr.bf16.mxu1 %v9673_v45 }
 0x4c9   : > { %8702 = vmatpush3.bf16.msra.mxu0 %v11471_v44  ;;  %8738 = vmatpush3.bf16.msra.mxu1 %v11471_v44 }
 0x4ca   : > { %8719 = vmatprep.subr.bf16.mxu0 %v9673_v45  ;;  %8755 = vmatprep.subr.bf16.mxu1 %v9673_v45 }
 0x4cc   : > { %8704 = vmatmul.mubr.msk.bf16.vlgmr.msra.gmra.mrb[184].mxu0 %vm2983_vm1, %v9376_v6  ;;  %8740 = vmatmul.mubr.msk.bf16.vlgmr.msra.gmra.mrb[184].mxu1 %vm2983_vm1, %v9377_v48  ;;  %v9414_v48 = vld [vmem:[%s12366_s7 + $0xe8] sm:$0xff]  }
 0x4cd   : > { %8720 = vmatpush3.bf16.msra.mxu0 %v11446_v27  ;;  %8756 = vmatpush3.bf16.msra.mxu1 %v11446_v27 }
 0x4ce   : > { %8721 = vmatprep.subr.bf16.mxu0 %v9673_v45  ;;  %8757 = vmatprep.subr.bf16.mxu1 %v9673_v45 }
 0x4cf   : > { %8727 = vmatprep.mubr.msk.bf16.mxu0 %vm9674_vm2, %v9673_v45  ;;  %8763 = vmatprep.mubr.msk.bf16.mxu1 %vm9674_vm2, %v9673_v45 }
 0x4d1   : > { %8722 = vmatpush3.bf16.msra.mxu0 %v11457_v18  ;;  %8758 = vmatpush3.bf16.msra.mxu1 %v11457_v18 }
 0x4d2   : > { %8723 = vmatprep.subr.bf16.mxu0 %v9673_v45  ;;  %8759 = vmatprep.subr.bf16.mxu1 %v9673_v45 }
 0x4d5   : > { %8724 = vmatpush3.bf16.msra.mxu0 %v11465_v13  ;;  %8760 = vmatpush3.bf16.msra.mxu1 %v11465_v13 }
 0x4d6   : > { %8725 = vmatprep.subr.bf16.mxu0 %v9673_v45  ;;  %8761 = vmatprep.subr.bf16.mxu1 %v9673_v45 }
 0x4d9   : > { %8726 = vmatpush3.bf16.msra.mxu0 %v11471_v44  ;;  %8762 = vmatpush3.bf16.msra.mxu1 %v11471_v44 }
 0x4da   : > { %8743 = vmatprep.subr.bf16.mxu0 %v9673_v45  ;;  %8779 = vmatprep.subr.bf16.mxu1 %v9673_v45 }
 0x4dc   : > { %8728 = vmatmul.mubr.msk.bf16.vlgmr.msra.gmra.mrb[188].mxu0 %vm2983_vm1, %v9378_v0  ;;  %8764 = vmatmul.mubr.msk.bf16.vlgmr.msra.gmra.mrb[188].mxu1 %vm2983_vm1, %v9379_v21 }
 0x4dd   : > { %8744 = vmatpush3.bf16.msra.mxu0 %v11446_v27  ;;  %8780 = vmatpush3.bf16.msra.mxu1 %v11446_v27 }
 0x4de   : > { %8745 = vmatprep.subr.bf16.mxu0 %v9673_v45  ;;  %8781 = vmatprep.subr.bf16.mxu1 %v9673_v45 }
 0x4df   : > { %8751 = vmatprep.mubr.msk.bf16.mxu0 %vm9674_vm2, %v9673_v45  ;;  %8787 = vmatprep.mubr.msk.bf16.mxu1 %vm9674_vm2, %v9673_v45 }
 0x4e1   : > { %8746 = vmatpush3.bf16.msra.mxu0 %v11457_v18  ;;  %8782 = vmatpush3.bf16.msra.mxu1 %v11457_v18 }
 0x4e2   : > { %8747 = vmatprep.subr.bf16.mxu0 %v9673_v45  ;;  %8783 = vmatprep.subr.bf16.mxu1 %v9673_v45 }
 0x4e5   : > { %8748 = vmatpush3.bf16.msra.mxu0 %v11465_v13  ;;  %8784 = vmatpush3.bf16.msra.mxu1 %v11465_v13 }
 0x4e6   : > { %8749 = vmatprep.subr.bf16.mxu0 %v9673_v45  ;;  %8785 = vmatprep.subr.bf16.mxu1 %v9673_v45 }
 0x4e9   : > { %8750 = vmatpush3.bf16.msra.mxu0 %v11471_v44  ;;  %8786 = vmatpush3.bf16.msra.mxu1 %v11471_v44 }
 0x4ea   : > { %8767 = vmatprep.subr.bf16.mxu0 %v9673_v45  ;;  %8803 = vmatprep.subr.bf16.mxu1 %v9673_v45 }
 0x4ec   : > { %8752 = vmatmul.mubr.msk.bf16.vlgmr.msra.gmra.mrb[192].mxu0 %vm2983_vm1, %v9380_v63  ;;  %8788 = vmatmul.mubr.msk.bf16.vlgmr.msra.gmra.mrb[192].mxu1 %vm2983_vm1, %v9381_v59 }
 0x4ed   : > { %8768 = vmatpush3.bf16.msra.mxu0 %v11446_v27  ;;  %8804 = vmatpush3.bf16.msra.mxu1 %v11446_v27 }
 0x4ee   : > { %8769 = vmatprep.subr.bf16.mxu0 %v9673_v45  ;;  %8805 = vmatprep.subr.bf16.mxu1 %v9673_v45 }
 0x4ef   : > { %8775 = vmatprep.mubr.msk.bf16.mxu0 %vm9674_vm2, %v9673_v45  ;;  %8811 = vmatprep.mubr.msk.bf16.mxu1 %vm9674_vm2, %v9673_v45 }
 0x4f1   : > { %8770 = vmatpush3.bf16.msra.mxu0 %v11457_v18  ;;  %8806 = vmatpush3.bf16.msra.mxu1 %v11457_v18 }
 0x4f2   : > { %8771 = vmatprep.subr.bf16.mxu0 %v9673_v45  ;;  %8807 = vmatprep.subr.bf16.mxu1 %v9673_v45 }
 0x4f5   : > { %8772 = vmatpush3.bf16.msra.mxu0 %v11465_v13  ;;  %8808 = vmatpush3.bf16.msra.mxu1 %v11465_v13 }
 0x4f6   : > { %8773 = vmatprep.subr.bf16.mxu0 %v9673_v45  ;;  %8809 = vmatprep.subr.bf16.mxu1 %v9673_v45 }
 0x4f9   : > { %8774 = vmatpush3.bf16.msra.mxu0 %v11471_v44  ;;  %8810 = vmatpush3.bf16.msra.mxu1 %v11471_v44 }
 0x4fa   : > { %8791 = vmatprep.subr.bf16.mxu0 %v9673_v45  ;;  %8827 = vmatprep.subr.bf16.mxu1 %v9673_v45 }
 0x4fc   : > { %8776 = vmatmul.mubr.msk.bf16.vlgmr.msra.gmra.mrb[196].mxu0 %vm2983_vm1, %v9382_v15  ;;  %8812 = vmatmul.mubr.msk.bf16.vlgmr.msra.gmra.mrb[196].mxu1 %vm2983_vm1, %v9383_v24  ;;  %v9415_v15 = vld [vmem:[%s12366_s7 + $0xa8] sm:$0xff]   ;;  %v9416_v24 = vld [vmem:[%s12366_s7 + $0xf0] sm:$0xff]  }
 0x4fd   : > { %8792 = vmatpush3.bf16.msra.mxu0 %v11446_v27  ;;  %8828 = vmatpush3.bf16.msra.mxu1 %v11446_v27 }
 0x4fe   : > { %8793 = vmatprep.subr.bf16.mxu0 %v9673_v45  ;;  %8829 = vmatprep.subr.bf16.mxu1 %v9673_v45 }
 0x4ff   : > { %8799 = vmatprep.mubr.msk.bf16.mxu0 %vm9674_vm2, %v9673_v45  ;;  %8835 = vmatprep.mubr.msk.bf16.mxu1 %vm9674_vm2, %v9673_v45 }
 0x501   : > { %8794 = vmatpush3.bf16.msra.mxu0 %v11457_v18  ;;  %8830 = vmatpush3.bf16.msra.mxu1 %v11457_v18 }
 0x502   : > { %8795 = vmatprep.subr.bf16.mxu0 %v9673_v45  ;;  %8831 = vmatprep.subr.bf16.mxu1 %v9673_v45 }
 0x505   : > { %8796 = vmatpush3.bf16.msra.mxu0 %v11465_v13  ;;  %8832 = vmatpush3.bf16.msra.mxu1 %v11465_v13 }
 0x506   : > { %8797 = vmatprep.subr.bf16.mxu0 %v9673_v45  ;;  %8833 = vmatprep.subr.bf16.mxu1 %v9673_v45 }
 0x509   : > { %8798 = vmatpush3.bf16.msra.mxu0 %v11471_v44  ;;  %8834 = vmatpush3.bf16.msra.mxu1 %v11471_v44 }
 0x50a   : > { %8815 = vmatprep.subr.bf16.mxu0 %v9673_v45  ;;  %8448 = vmatprep.subr.bf16.mxu1 %v9388_v23 }
 0x50c   : > { %8800 = vmatmul.mubr.msk.bf16.vlgmr.msra.gmra.mrb[200].mxu0 %vm2983_vm1, %v9384_v50  ;;  %8836 = vmatmul.mubr.msk.bf16.vlgmr.msra.gmra.mrb[200].mxu1 %vm2983_vm1, %v9387_v12 }
 0x50d   : > { %8816 = vmatpush3.bf16.msra.mxu0 %v11446_v27  ;;  %8823 = vmatprep.mubr.msk.bf16.mxu0 %vm9674_vm2, %v9673_v45 }
 0x50e   : > { %8817 = vmatprep.subr.bf16.mxu0 %v9673_v45  ;;  %8449 = vmatpush3.bf16.msra.mxu1 %v9389_v29 }
 0x50f   : > { %8450 = vmatprep.subr.bf16.mxu1 %v9390_v35 }
 0x511   : > { %8818 = vmatpush3.bf16.msra.mxu0 %v11457_v18 }
 0x512   : > { %8819 = vmatprep.subr.bf16.mxu0 %v9673_v45  ;;  %8451 = vmatpush3.bf16.msra.mxu1 %v9391_v28  ;;  %v9419_v28 = vld [vmem:[%s12366_s7 + $0xb8] sm:$0xff]  }
 0x513   : > { %8452 = vmatprep.subr.bf16.mxu1 %v9392_v53 }
 0x515   : > { %8820 = vmatpush3.bf16.msra.mxu0 %v11465_v13 }
 0x516   : > { %8821 = vmatprep.subr.bf16.mxu0 %v9673_v45  ;;  %8453 = vmatpush3.bf16.msra.mxu1 %v9393_v40 }
 0x517   : > { %8454 = vmatprep.subr.bf16.mxu1 %v9394_v42 }
 0x519   : > { %8822 = vmatpush3.bf16.msra.mxu0 %v11471_v44 }
 0x51a   : > { %8839 = vmatprep.subr.bf16.mxu0 %v9673_v45  ;;  %8455 = vmatpush3.bf16.msra.mxu1 %v9395_v38 }
 0x51c   : > { %8824 = vmatmul.mubr.msk.bf16.vlgmr.msra.gmra.mrb[204].mxu0 %vm2983_vm1, %v9385_v37  ;;  %v9417_v37 = vld [vmem:[%s12366_s7 + $0xb0] sm:$0xff]  }
 0x51d   : > { %8840 = vmatpush3.bf16.msra.mxu0 %v11446_v27  ;;  %8847 = vmatprep.mubr.msk.bf16.mxu0 %vm9674_vm2, %v9673_v45  ;;  %v9396_v27 = vld [vmem:[%s12366_s7 + $0x60] sm:$0xff]  }
 0x51e   : > { %8841 = vmatprep.subr.bf16.mxu0 %v9673_v45  ;;  %8456 = vmatprep.subr.bf16.mxu1 %v9396_v27 }
 0x51f   : > { %8457 = vmatpush3.bf16.msra.mxu1 %v9397_v30 }
 0x520   : > { %8458 = vmatprep.subr.bf16.mxu1 %v9398_v43 }
 0x521   : > { %8842 = vmatpush3.bf16.msra.mxu0 %v11457_v18  ;;  %v9404_v18 = vld [vmem:[%s12366_s7 + $0xc0] sm:$0xff]  }
 0x522   : > { %8843 = vmatprep.subr.bf16.mxu0 %v9673_v45 }
 0x523   : > { %8459 = vmatpush3.bf16.msra.mxu1 %v9399_v58 }
 0x524   : > { %8460 = vmatprep.subr.bf16.mxu1 %v9400_v39 }
 0x525   : > { %8844 = vmatpush3.bf16.msra.mxu0 %v11465_v13 }
 0x526   : > { %8845 = vmatprep.subr.bf16.mxu0 %v9673_v45 }
 0x527   : > { %8461 = vmatpush3.bf16.msra.mxu1 %v9401_v7 }
 0x528   : > { %8462 = vmatprep.subr.bf16.mxu1 %v9402_v5 }
 0x529   : > { %8846 = vmatpush3.bf16.msra.mxu0 %v11471_v44 }
 0x52a   : > { %8470 = vmatprep.subr.bf16.mxu0 %v9404_v18  ;;  %v9436_v18 = vld [vmem:[%s12366_s7 + $0x1c0] sm:$0xff]  }
 0x52b   : > { %8463 = vmatpush3.bf16.msra.mxu1 %v9403_v46 }
 0x52c   : > { %8848 = vmatmul.mubr.msk.bf16.vlgmr.msra.gmra.mrb[208].mxu0 %vm2983_vm1, %v9386_v17  ;;  %v9418_v17 = vld [vmem:[%s12366_s7 + $0xf8] sm:$0xff]  }
 0x52d   : > { %8471 = vmatpush3.bf16.msra.mxu0 %v9405_v56 }
 0x52e   : > { %8472 = vmatprep.subr.bf16.mxu0 %v9406_v47 }
 0x531   : > { %8473 = vmatpush3.bf16.msra.mxu0 %v9407_v54 }
 0x532   : > { %8474 = vmatprep.subr.bf16.mxu0 %v9408_v41 }
 0x535   : > { %8475 = vmatpush3.bf16.msra.mxu0 %v9409_v2 }
 0x536   : > { %8476 = vmatprep.subr.bf16.mxu0 %v9410_v8 }
 0x539   : > { %8477 = vmatpush3.bf16.msra.mxu0 %v9411_v51 }
 0x53a   : > { %8478 = vmatprep.subr.bf16.mxu0 %v9412_v62 }
 0x53d   : > { %8479 = vmatpush3.bf16.msra.mxu0 %v9413_v1 }
 0x53e   : > { %8480 = vmatprep.subr.bf16.mxu0 %v9414_v48 }
 0x541   : > { %8481 = vmatpush3.bf16.msra.mxu0 %v9415_v15 }
 0x542   : > { %8482 = vmatprep.subr.bf16.mxu0 %v9416_v24 }
 0x545   : > { %8483 = vmatpush3.bf16.msra.mxu0 %v9417_v37 }
 0x546   : > { %8484 = vmatprep.subr.bf16.mxu0 %v9418_v17 }
 0x549   : > { %8485 = vmatpush3.bf16.msra.mxu0 %v9419_v28 }
 0x54a   : > { %8514 = vmatprep.subr.bf16.mxu0 %v9436_v18  ;;  %v9445_v18 = vld [vmem:[%s12366_s7 + $0x1a0] sm:$0xff]  }
 0x57f   : > { %v11691_v33 = vpop.f32.mrb[176].mxu0  ;;  %v11715_v57 = vpop.f32.mrb[176].mxu1 }
 0x580   : > { %v8669_v25 = vpop.f32.mrb[177].mxu0  ;;  %v8693_v4 = vpop.f32.mrb[177].mxu1 }
 0x581   : > { %v11696_v55 = vpop.f32.mrb[178].mxu0  ;;  %v11720_v22 = vpop.f32.mrb[178].mxu1  ;;  %v9420_v25 = vld [vmem:[%s12366_s7 + $0x140] sm:$0xff]  }
 0x582   : > { %v3994_v14 = vpack.c.bf16 %v11696_v55, %v11691_v33  ;;  %v8670_v31 = vpop.f32.mrb[179].mxu0  ;;  %v4100_v20 = vpack.c.bf16 %v11720_v22, %v11715_v57  ;;  %v8694_v10 = vpop.f32.mrb[179].mxu1  ;;  %8492 = vmatprep.subr.bf16.mxu1 %v9420_v25  ;;  %v9422_v25 = vld [vmem:[%s12366_s7 + $0x148] sm:$0xff]   ;;  %v9424_v57 = vld [vmem:[%s12366_s7 + $0x150] sm:$0xff]   ;;  %v9426_v33 = vld [vmem:[%s12366_s7 + $0x158] sm:$0xff]  }
 0x583   : > { %v9425_v22 = vld [vmem:[%s12366_s7 + $0x110] sm:$0xff]   ;;  %v9427_v55 = vld [vmem:[%s12366_s7 + $0x118] sm:$0xff]  }
 0x58f   : > { %v4040_v32 = vpop.f32.mrb[180].mxu0  ;;  %v11749_v61 = vpop.f32.mrb[180].mxu1 }
 0x590   : > { %v8681_v34 = vpop.f32.mrb[181].mxu0  ;;  %v8717_v16 = vpop.f32.mrb[181].mxu1 }
 0x591   : > { %v4043_v52 = vpop.f32.mrb[182].mxu0  ;;  %v11754_v60 = vpop.f32.mrb[182].mxu1 }
 0x592   : > { %v4047_v19 = vpack.c.bf16 %v4043_v52, %v4040_v32  ;;  %v8682_v26 = vpop.f32.mrb[183].mxu0  ;;  %v4206_v13 = vpack.c.bf16 %v11754_v60, %v11749_v61  ;;  %v8718_v9 = vpop.f32.mrb[183].mxu1  ;;  %v9442_v61 = vld [vmem:[%s12366_s7 + $0x1d8] sm:$0xff]  }
 0x593   : > { %v9443_v60 = vld [vmem:[%s12366_s7 + $0x198] sm:$0xff]  }
 0x594   : > { %4791 = vrot.lane.b32.xlu1 %v4047_v19, %s12467_s16 }
 0x59f   : > { %v4146_v49 = vpop.f32.mrb[184].mxu0  ;;  %v11777_v6 = vpop.f32.mrb[184].mxu1 }
 0x5a0   : > { %v8705_v36 = vpop.f32.mrb[185].mxu0  ;;  %v8741_v0 = vpop.f32.mrb[185].mxu1 }
 0x5a1   : > { %v4149_v11 = vpop.f32.mrb[186].mxu0  ;;  %v11782_v21 = vpop.f32.mrb[186].mxu1 }
 0x5a2   : > { %v4153_v44 = vpack.c.bf16 %v4149_v11, %v4146_v49  ;;  %v8706_v3 = vpop.f32.mrb[187].mxu0  ;;  %v4312_v63 = vpack.c.bf16 %v11782_v21, %v11777_v6  ;;  %v8742_v59 = vpop.f32.mrb[187].mxu1  ;;  %v9439_v6 = vld [vmem:[%s12366_s7 + $0x188] sm:$0xff]   ;;  %v9440_v21 = vld [vmem:[%s12366_s7 + $0x1d0] sm:$0xff]  }
 0x5a4   : > { %4794 = vrot.lane.b32.xlu0 %v4153_v44, %s12467_s16 }
 0x5af   : > { %v4252_v50 = vpop.f32.mrb[188].mxu0  ;;  %v11805_v53 = vpop.f32.mrb[188].mxu1 }
 0x5b0   : > { %v8729_v12 = vpop.f32.mrb[189].mxu0  ;;  %v8765_v40 = vpop.f32.mrb[189].mxu1 }
 0x5b1   : > { %v4255_v23 = vpop.f32.mrb[190].mxu0  ;;  %v11807_v31 = vpop.f32.mrb[190].mxu1 }
 0x5b2   : > { %v4259_v29 = vpack.c.bf16 %v4255_v23, %v4252_v50  ;;  %v8730_v35 = vpop.f32.mrb[191].mxu0  ;;  %v4418_v42 = vpack.c.bf16 %v11807_v31, %v11805_v53  ;;  %v8766_v38 = vpop.f32.mrb[191].mxu1  ;;  %v9452_v53 = vld [vmem:[%s12368_s9] sm:$0xff]  }
 0x5b3   : > { %v9421_v35 = vld [vmem:[%s12366_s7 + $0x100] sm:$0xff]   ;;  %v9423_v38 = vld [vmem:[%s12366_s7 + $0x108] sm:$0xff]  }
 0x5b4   : > { %4797 = vrot.lane.b32.xlu1 %v4259_v29, %s12467_s16  ;;  %v9453_v31 = vld [vmem:[%s12368_s9 + $0x20] sm:$0xff]  }
 0x5bf   : > { %v4358_v27 = vpop.f32.mrb[192].mxu0  ;;  %v11812_v58 = vpop.f32.mrb[192].mxu1 }
 0x5c0   : > { %v8753_v30 = vpop.f32.mrb[193].mxu0  ;;  %v8789_v39 = vpop.f32.mrb[193].mxu1 }
 0x5c1   : > { %v4361_v43 = vpop.f32.mrb[194].mxu0  ;;  %v11814_v32 = vpop.f32.mrb[194].mxu1  ;;  %v9431_v30 = vld [vmem:[%s12366_s7 + $0x128] sm:$0xff]   ;;  %v9435_v39 = vld [vmem:[%s12366_s7 + $0x138] sm:$0xff]  }
 0x5c2   : > { %v4365_v4 = vpack.c.bf16 %v4361_v43, %v4358_v27  ;;  %v8754_v10 = vpop.f32.mrb[195].mxu0  ;;  %v4524_v7 = vpack.c.bf16 %v11814_v32, %v11812_v58  ;;  %v8790_v34 = vpop.f32.mrb[195].mxu1  ;;  %v9430_v27 = vld [vmem:[%s12366_s7 + $0x168] sm:$0xff]   ;;  %v9432_v43 = vld [vmem:[%s12366_s7 + $0x170] sm:$0xff]  }
 0x5c3   : > { %v9434_v10 = vld [vmem:[%s12366_s7 + $0x178] sm:$0xff]  }
 0x5c4   : > { %4800 = vrot.lane.b32.xlu0 %v4365_v4, %s12467_s16  ;;  %v9433_v4 = vld [vmem:[%s12366_s7 + $0x130] sm:$0xff]  }
 0x5cf   : > { %v4464_v5 = vpop.f32.mrb[196].mxu0  ;;  %v11822_v56 = vpop.f32.mrb[196].mxu1 }
 0x5d0   : > { %v8777_v52 = vpop.f32.mrb[197].mxu0  ;;  %v8813_v47 = vpop.f32.mrb[197].mxu1 }
 0x5d1   : > { %v4467_v19 = vpop.f32.mrb[198].mxu0  ;;  %v11824_v16 = vpop.f32.mrb[198].mxu1  ;;  %v9437_v52 = vld [vmem:[%s12366_s7 + $0x180] sm:$0xff]   ;;  %v9446_v47 = vld [vmem:[%s12366_s7 + $0x1e8] sm:$0xff]  }
 0x5d2   : > { %v4471_v26 = vpack.c.bf16 %v4467_v19, %v4464_v5  ;;  %v8778_v46 = vpop.f32.mrb[199].mxu0  ;;  %v4630_v54 = vpack.c.bf16 %v11824_v16, %v11822_v56  ;;  %v8814_v41 = vpop.f32.mrb[199].mxu1  ;;  %v9456_v56 = vld [vmem:[%s12368_s9 + $0x10] sm:$0xff]  }
 0x5d3   : > { %v9447_v41 = vld [vmem:[%s12366_s7 + $0x1a8] sm:$0xff]   ;;  %v9457_v16 = vld [vmem:[%s12368_s9 + $0x30] sm:$0xff]  }
 0x5d4   : > { %4803 = vrot.lane.b32.xlu1 %v4471_v26, %s12467_s16  ;;  %v9438_v26 = vld [vmem:[%s12366_s7 + $0x1c8] sm:$0xff]  }
 0x5df   : > { %v4570_v9 = vpop.f32.mrb[200].mxu0  ;;  %v11829_v51 = vpop.f32.mrb[200].mxu1 }
 0x5e0   : > { %v8801_v49 = vpop.f32.mrb[201].mxu0  ;;  %v8837_v48 = vpop.f32.mrb[201].mxu1 }
 0x5e1   : > { %v4573_v2 = vpop.f32.mrb[202].mxu0  ;;  %v11831_v0 = vpop.f32.mrb[202].mxu1  ;;  %v9449_v49 = vld [vmem:[%s12366_s7 + $0x1b0] sm:$0xff]  }
 0x5e2   : > { %v4577_v36 = vpack.c.bf16 %v4573_v2, %v4570_v9  ;;  %v8802_v8 = vpop.f32.mrb[203].mxu0  ;;  %v4736_v59 = vpack.c.bf16 %v11831_v0, %v11829_v51  ;;  %v8838_v15 = vpop.f32.mrb[203].mxu1  ;;  %v9448_v9 = vld [vmem:[%s12366_s7 + $0x1f0] sm:$0xff]   ;;  %v9450_v2 = vld [vmem:[%s12366_s7 + $0x1f8] sm:$0xff]  }
 0x5e3   : > { %v9459_v51 = vld [vmem:[%s12368_s9 + $0x38] sm:$0xff]  }
 0x5e4   : > { %4806 = vrot.lane.b32.xlu0 %v4577_v36, %s12467_s16  ;;  %v9451_v36 = vld [vmem:[%s12366_s7 + $0x1b8] sm:$0xff]  }
 0x5ef   : > { %v4676_v11 = vpop.f32.mrb[204].mxu0 }
 0x5f0   : > { %v8825_v44 = vpop.f32.mrb[205].mxu0 }
 0x5f1   : > { %v4679_v3 = vpop.f32.mrb[206].mxu0 }
 0x5f2   : > { %v4683_v62 = vpack.c.bf16 %v4679_v3, %v4676_v11  ;;  %v8826_v1 = vpop.f32.mrb[207].mxu0 }
 0x5f4   : > { %4809 = vrot.lane.b32.xlu1 %v4683_v62, %s12467_s16 }
 0x5ff   : > { %v4782_v24 = vpop.f32.mrb[208].mxu0 }
 0x600   : > { %v8849_v50 = vpop.f32.mrb[209].mxu0 }
 0x601   : > { %v4785_v37 = vpop.f32.mrb[210].mxu0 }
 0x602   : > { %v4789_v12 = vpack.c.bf16 %v4785_v37, %v4782_v24  ;;  %v8850_v17 = vpop.f32.mrb[211].mxu0  ;;  %v7391_v37 = vld [vmem:[%s12367_s8] ss:$0 sm:$0xff] }
 0x604   : > { %4812 = vrot.lane.b32.xlu0 %v4789_v12, %s12467_s16  ;;  %s432_s16 = scalar_lea.vmem [#allocation2], %s431_s21 }
 0x605   : > { %s6879_s22 = sshll.u32 %s432_s16, 4  ;;  %s12319_s22 = int_to_ptr.vmem [resolvable:$true] %s6879_s22 }
 0x606   : > { %v4792_v23 = vpop.permute.xlu1 %4791  ;;  %s9608_s29 = scalar_lea.vmem %s12319_s22, 16  ;;  %p9615_p0 = scmp.lt.s32.totalorder %s12319_s22, %s9613_s17 }
 0x607   : > { %v4816_v40 = vsel %vm2983_vm1, %v3994_v14, %v4792_v23  ;;  %v9428_v14 = vld [vmem:[%s12366_s7 + $0x160] sm:$0xff]   ;;  %p9609_p11 = scmp.ne.s32.totalorder %s12319_s22, %s9608_s29  ;;  %p9616_p1 = scmp.lt.s32.totalorder %s9614_s0, %s9608_s29 }
 0x609   : > { %p9610_p12 = pnand %p9609_p11, %p9784_p5  ;;  %p9617_p2 = por %p9616_p1, %p9615_p0 }
 0x60b   : > { %p9611_p13 = pneg %p9610_p12 }
 0x60d   : > { %p9618_p3 = pnand %p9617_p2, %p9611_p13 }
 0x616   : > { %v4795_v29 = vpop.permute.xlu0 %4794 }
 0x617   : > { %v4820_v28 = vsel %vm2983_vm1, %v4100_v20, %v4795_v29  ;;  %v9429_v20 = vld [vmem:[%s12366_s7 + $0x120] sm:$0xff]  }
 0x618   : > { %5397 = vmatprep.mubr.bf16.mxu1 %v4820_v28 }
 0x619   : > { %5398 = vmatmul.mubr.bf16.vlgmr.msra.gmra.mrb[204].mxu1 %v4816_v40 }
 0x61a   : > { %8493 = vmatpush3.bf16.msra.mxu1 %v9421_v35 }
 0x61b   : > { %8494 = vmatprep.subr.bf16.mxu1 %v9422_v25 }
 0x61e   : > { %8495 = vmatpush3.bf16.msra.mxu1 %v9423_v38 }
 0x61f   : > { %8496 = vmatprep.subr.bf16.mxu1 %v9424_v57 }
 0x622   : > { %8497 = vmatpush3.bf16.msra.mxu1 %v9425_v22 }
 0x623   : > { %8498 = vmatprep.subr.bf16.mxu1 %v9426_v33 }
 0x626   : > { %8499 = vmatpush3.bf16.msra.mxu1 %v9427_v55  ;;  %v4798_v34 = vpop.permute.xlu1 %4797 }
 0x627   : > { %8500 = vmatprep.subr.bf16.mxu1 %v9428_v14  ;;  %v4824_v46 = vsel %vm2983_vm1, %v4206_v13, %v4798_v34  ;;  %v9444_v13 = vld [vmem:[%s12366_s7 + $0x1e0] sm:$0xff]  }
 0x62a   : > { %8501 = vmatpush3.bf16.msra.mxu1 %v9429_v20 }
 0x62b   : > { %8502 = vmatprep.subr.bf16.mxu1 %v9430_v27 }
 0x62e   : > { %8503 = vmatpush3.bf16.msra.mxu1 %v9431_v30 }
 0x62f   : > { %8504 = vmatprep.subr.bf16.mxu1 %v9432_v43 }
 0x632   : > { %8505 = vmatpush3.bf16.msra.mxu1 %v9433_v4 }
 0x633   : > { %8506 = vmatprep.subr.bf16.mxu1 %v9434_v10 }
 0x636   : > { %v4801_v5 = vpop.permute.xlu0 %4800  ;;  %8507 = vmatpush3.bf16.msra.mxu1 %v9435_v39 }
 0x637   : > { %v4828_v19 = vsel %vm2983_vm1, %v4312_v63, %v4801_v5  ;;  %8851 = vmatprep.subr.bf16.mxu1 %v9673_v45  ;;  %v9441_v63 = vld [vmem:[%s12366_s7 + $0x190] sm:$0xff]  }
 0x638   : > { %5438 = vmatprep.mubr.bf16.mxu0 %v4828_v19 }
 0x639   : > { %5439 = vmatmul.mubr.bf16.vlgmr.msra.gmra.mrb[212].mxu0 %v4824_v46 }
 0x63a   : > { %8515 = vmatpush3.bf16.msra.mxu0 %v9437_v52 }
 0x63b   : > { %8516 = vmatprep.subr.bf16.mxu0 %v9438_v26 }
 0x63e   : > { %8517 = vmatpush3.bf16.msra.mxu0 %v9439_v6 }
 0x63f   : > { %8518 = vmatprep.subr.bf16.mxu0 %v9440_v21 }
 0x642   : > { %8519 = vmatpush3.bf16.msra.mxu0 %v9441_v63 }
 0x643   : > { %8520 = vmatprep.subr.bf16.mxu0 %v9442_v61 }
 0x646   : > { %8521 = vmatpush3.bf16.msra.mxu0 %v9443_v60  ;;  %v4804_v8 = vpop.permute.xlu1 %4803 }
 0x647   : > { %8522 = vmatprep.subr.bf16.mxu0 %v9444_v13  ;;  %v4832_v3 = vsel %vm2983_vm1, %v4418_v42, %v4804_v8  ;;  %v9454_v42 = vld [vmem:[%s12368_s9 + $0x8] sm:$0xff]  }
 0x648   : > { %v9462_v8 = vld [vmem:[%s12368_s9 + $0x68] sm:$0xff]  }
 0x64a   : > { %8523 = vmatpush3.bf16.msra.mxu0 %v9445_v18 }
 0x64b   : > { %8524 = vmatprep.subr.bf16.mxu0 %v9446_v47 }
 0x64e   : > { %8525 = vmatpush3.bf16.msra.mxu0 %v9447_v41 }
 0x64f   : > { %8526 = vmatprep.subr.bf16.mxu0 %v9448_v9  ;;  %v9460_v9 = vld [vmem:[%s12368_s9 + $0x60] sm:$0xff]  }
 0x652   : > { %8527 = vmatpush3.bf16.msra.mxu0 %v9449_v49 }
 0x653   : > { %8528 = vmatprep.subr.bf16.mxu0 %v9450_v2  ;;  %v9461_v2 = vld [vmem:[%s12368_s9 + $0x40] sm:$0xff]  }
 0x656   : > { %v4807_v11 = vpop.permute.xlu0 %4806  ;;  %8529 = vmatpush3.bf16.msra.mxu0 %v9451_v36 }
 0x657   : > { %v4836_v44 = vsel %vm2983_vm1, %v4524_v7, %v4807_v11  ;;  %8863 = vmatprep.subr.bf16.mxu0 %v9673_v45  ;;  %v9455_v7 = vld [vmem:[%s12368_s9 + $0x28] sm:$0xff]  }
 0x658   : > { %5479 = vmatprep.mubr.bf16.mxu1 %v4836_v44  ;;  %v9463_v11 = vld [vmem:[%s12368_s9 + $0x48] sm:$0xff]   ;;  %v9464_v44 = vld [vmem:[%s12368_s9 + $0x70] sm:$0xff]  }
 0x659   : > { %5480 = vmatmul.mubr.bf16.vlgmr.msra.gmra.mrb[208].mxu1 %v4832_v3  ;;  %v9465_v3 = vld [vmem:[%s12368_s9 + $0x50] sm:$0xff]  }
 0x65a   : > { %8859 = vmatprep.mubr.msk.bf16.mxu1 %vm9674_vm2, %v9673_v45  ;;  %8852 = vmatpush3.bf16.msra.mxu1 %v9453_v31 }
 0x65b   : > { %8853 = vmatprep.subr.bf16.mxu1 %v9673_v45 }
 0x65e   : > { %8854 = vmatpush3.bf16.msra.mxu1 %v9455_v7  ;;  %v9471_v7 = vld [vmem:[%s12368_s9 + $0x88] sm:$0xff]  }
 0x65f   : > { %8855 = vmatprep.subr.bf16.mxu1 %v9673_v45 }
 0x662   : > { %8856 = vmatpush3.bf16.msra.mxu1 %v9457_v16  ;;  %v9473_v16 = vld [vmem:[%s12368_s9 + $0x90] sm:$0xff]  }
 0x663   : > { %8857 = vmatprep.subr.bf16.mxu1 %v9673_v45 }
 0x666   : > { %v4810_v62 = vpop.permute.xlu1 %4809  ;;  %8858 = vmatpush3.bf16.msra.mxu1 %v9459_v51  ;;  %v9475_v51 = vld [vmem:[%s12368_s9 + $0x98] sm:$0xff]  }
 0x667   : > { %v4840_v32 = vsel %vm2983_vm1, %v4630_v54, %v4810_v62  ;;  %v9458_v54 = vld [vmem:[%s12368_s9 + $0x18] sm:$0xff]   ;;  %8875 = vmatprep.subr.bf16.mxu1 %v9673_v45 }
 0x668   : > { %v9466_v62 = vld [vmem:[%s12368_s9 + $0x78] sm:$0xff]  }
 0x676   : > { %v4813_v1 = vpop.permute.xlu0 %4812 }
 0x677   : > { %v4844_v58 = vsel %vm2983_vm1, %v4736_v59, %v4813_v1  ;;  %v9467_v1 = vld [vmem:[%s12368_s9 + $0x58] sm:$0xff]  }
 0x678   : > { %5520 = vmatprep.mubr.bf16.mxu0 %v4844_v58  ;;  %v9468_v58 = vld [vmem:[%s12368_s9 + $0xa0] sm:$0xff]  }
 0x679   : > { %5521 = vmatmul.mubr.bf16.vlgmr.msra.gmra.mrb[216].mxu0 %v4840_v32 }
 0x67a   : > { %8871 = vmatprep.mubr.msk.bf16.mxu0 %vm9674_vm2, %v9673_v45  ;;  %8864 = vmatpush3.bf16.msra.mxu0 %v9452_v53  ;;  %v9469_v53 = vld [vmem:[%s12368_s9 + $0x80] sm:$0xff]  }
 0x67b   : > { %8865 = vmatprep.subr.bf16.mxu0 %v9673_v45 }
 0x67e   : > { %8866 = vmatpush3.bf16.msra.mxu0 %v9454_v42  ;;  %v9470_v42 = vld [vmem:[%s12368_s9 + $0xa8] sm:$0xff]  }
 0x67f   : > { %8867 = vmatprep.subr.bf16.mxu0 %v9673_v45 }
 0x682   : > { %8868 = vmatpush3.bf16.msra.mxu0 %v9456_v56  ;;  %v9472_v56 = vld [vmem:[%s12368_s9 + $0xb0] sm:$0xff]  }
 0x683   : > { %8869 = vmatprep.subr.bf16.mxu0 %v9673_v45 }
 0x686   : > { %8870 = vmatpush3.bf16.msra.mxu0 %v9458_v54  ;;  %v9474_v54 = vld [vmem:[%s12368_s9 + $0xb8] sm:$0xff]  }
 0x687   : > { %8887 = vmatprep.subr.bf16.mxu0 %v9673_v45 }
 0x6ec   : > { %v8464_v48 = vpop.f32.mrb[204].mxu1 }
 0x6ed   : > { %v8465_v0 = vpop.f32.mrb[205].mxu1 }
 0x6ee   : > { %v8466_v59 = vadd.f32 %v8465_v0, %v8464_v48  ;;  %v8467_v15 = vpop.f32.mrb[206].mxu1  ;;  %v9476_v48 = vld [vmem:[%s12368_s9 + $0xe0] sm:$0xff]  }
 0x6ef   : > { %v8468_v24 = vpop.f32.mrb[207].mxu1 }
 0x6f0   : > { %v8469_v50 = vadd.f32 %v8468_v24, %v8467_v15  ;;  %v5400_v23 = vadd.f32 %v8466_v59, %v7391_v37  ;;  %v9477_v59 = vld [vmem:[%s12368_s9 + $0xc0] sm:$0xff]   ;;  %v9478_v24 = vld [vmem:[%s12368_s9 + $0xe8] sm:$0xff]  }
 0x6f2   : > { %v5403_v25 = vadd.f32 %v8469_v50, %v7391_v37  ;;  %v9479_v50 = vld [vmem:[%s12368_s9 + $0xc8] sm:$0xff]   ;;  %v9480_v37 = vld [vmem:[%s12368_s9 + $0xf0] sm:$0xff]  }
 0x70c   : > { %v8486_v12 = vpop.f32.mrb[212].mxu0 }
 0x70d   : > { %v8487_v17 = vpop.f32.mrb[213].mxu0 }
 0x70e   : > { %v8488_v29 = vadd.f32 %v8487_v17, %v8486_v12  ;;  %v8489_v35 = vpop.f32.mrb[214].mxu0  ;;  %v9481_v12 = vld [vmem:[%s12368_s9 + $0xd0] sm:$0xff]   ;;  %v9482_v17 = vld [vmem:[%s12368_s9 + $0xf8] sm:$0xff]  }
 0x70f   : > { %v8490_v28 = vpop.f32.mrb[215].mxu0 }
 0x710   : > { %v5441_v40 = vadd.f32 %v8488_v29, %v5400_v23  ;;  %v8491_v38 = vadd.f32 %v8490_v28, %v8489_v35  ;;  %v9483_v23 = vld [vmem:[%s12368_s9 + $0xd8] sm:$0xff]   ;;  %v9484_v29 = vld [vmem:[%s12368_s9 + $0x120] sm:$0xff]  }
 0x711   : > { %v9485_v28 = vld [vmem:[%s12368_s9 + $0x100] sm:$0xff]  }
 0x712   : > { %v5444_v57 = vadd.f32 %v8491_v38, %v5403_v25  ;;  %v9487_v38 = vld [vmem:[%s12368_s9 + $0x108] sm:$0xff]  }
 0x72c   : > { %v8508_v22 = vpop.f32.mrb[208].mxu1 }
 0x72d   : > { %v8509_v33 = vpop.f32.mrb[209].mxu1 }
 0x72e   : > { %v8510_v55 = vadd.f32 %v8509_v33, %v8508_v22  ;;  %v8511_v14 = vpop.f32.mrb[210].mxu1  ;;  %v9489_v22 = vld [vmem:[%s12368_s9 + $0x110] sm:$0xff]   ;;  %v9490_v33 = vld [vmem:[%s12368_s9 + $0x138] sm:$0xff]  }
 0x72f   : > { %v8512_v20 = vpop.f32.mrb[211].mxu1 }
 0x730   : > { %v5482_v27 = vadd.f32 %v8510_v55, %v5441_v40  ;;  %v8513_v30 = vadd.f32 %v8512_v20, %v8511_v14  ;;  %v9486_v40 = vld [vmem:[%s12368_s9 + $0x128] sm:$0xff]   ;;  %v9491_v55 = vld [vmem:[%s12368_s9 + $0x118] sm:$0xff]   ;;  %v9492_v14 = vld [vmem:[%s12368_s9 + $0x160] sm:$0xff]  }
 0x732   : > { %v5485_v43 = vadd.f32 %v8513_v30, %v5444_v57  ;;  %v9488_v57 = vld [vmem:[%s12368_s9 + $0x130] sm:$0xff]  }
 0x74c   : > { %v8530_v4 = vpop.f32.mrb[216].mxu0 }
 0x74d   : > { %v8531_v10 = vpop.f32.mrb[217].mxu0 }
 0x74e   : > { %v8532_v39 = vadd.f32 %v8531_v10, %v8530_v4  ;;  %v8533_v34 = vpop.f32.mrb[218].mxu0  ;;  %v9495_v4 = vld [vmem:[%s12368_s9 + $0x148] sm:$0xff]   ;;  %v9496_v10 = vld [vmem:[%s12368_s9 + $0x170] sm:$0xff]  }
 0x74f   : > { %v8534_v5 = vpop.f32.mrb[219].mxu0 }
 0x750   : > { %v5523_v52 = vadd.f32 %v8532_v39, %v5482_v27  ;;  %v8535_v19 = vadd.f32 %v8534_v5, %v8533_v34  ;;  %v9493_v27 = vld [vmem:[%s12368_s9 + $0x140] sm:$0xff]   ;;  %v9497_v39 = vld [vmem:[%s12368_s9 + $0x150] sm:$0xff]   ;;  %v9498_v34 = vld [vmem:[%s12368_s9 + $0x178] sm:$0xff]  }
 0x751   : > { %v9499_v5 = vld [vmem:[%s12368_s9 + $0x158] sm:$0xff]  }
 0x752   : > { %v5531_v26 = vmin.f32 %v5523_v52, 0.0  ;;  %v5526_v46 = vadd.f32 %v8535_v19, %v5485_v43  ;;  %vm5529_vm11 = vcmp.gt.f32.partialorder %v5523_v52, 0.0  ;;  %v9494_v43 = vld [vmem:[%s12368_s9 + $0x168] sm:$0xff]  }
 0x754   : > { %v5533_v6 = vmul.f32 1.442695, %v5531_v26  ;;  %v5532_v21 = vmin.f32 %v5526_v46, 0.0  ;;  %vm5530_vm12 = vcmp.gt.f32.partialorder %v5526_v46, 0.0  ;;  %v9501_v26 = vld [vmem:[%s12368_s9 + $0x180] sm:$0xff]  }
 0x756   : > { %9600 = vpow2.f32 %v5533_v6  ;;  %v5535_v63 = vmul.f32 1.442695, %v5532_v21  ;;  %v9502_v6 = vld [vmem:[%s12368_s9 + $0x1a8] sm:$0xff]  }
 0x757   : > { %v9503_v21 = vld [vmem:[%s12368_s9 + $0x188] sm:$0xff]  }
 0x758   : > { %9602 = vpow2.f32 %v5535_v63  ;;  %v9504_v63 = vld [vmem:[%s12368_s9 + $0x1b0] sm:$0xff]  }
 0x760   : > { %v9601_v61 = vpop.eup %9600 }
 0x761   : > { %v7456_v60 = vadd.f32 -1.0, %v9601_v61  ;;  %v9505_v61 = vld [vmem:[%s12368_s9 + $0x190] sm:$0xff]  }
 0x762   : > { %v9603_v13 = vpop.eup %9602 }
 0x763   : > { %v7457_v18 = vadd.f32 -1.0, %v9603_v13  ;;  %v5539_v47 = vsel %vm5529_vm11, %v5523_v52, %v7456_v60  ;;  %v9500_v52 = vld [vmem:[%s12368_s9 + $0x1a0] sm:$0xff]   ;;  %v9506_v60 = vld [vmem:[%s12368_s9 + $0x1b8] sm:$0xff]  }
 0x764   : > { %v9507_v13 = vld [vmem:[%s12368_s9 + $0x198] sm:$0xff]  }
 0x765   : > { %v5540_v41 = vsel %vm5530_vm12, %v5526_v46, %v7457_v18  ;;  %v9508_v18 = vld [vmem:[%s12368_s9 + $0x1e0] sm:$0xff]  }
 0x766   : > { %v12003_v49 = vpack.c.bf16 %v5540_v41, %v5539_v47  ;;  %v9509_v41 = vld [vmem:[%s12368_s9 + $0x1c0] sm:$0xff]  }
 0x768   : > { %8872 = vmatmul.mubr.msk.bf16.vlgmr.msra.gmra.mrb[220].mxu0 %vm2983_vm1, %v12003_v49  ;;  %v12011_v36 = vshrl.u32 %v12003_v49, 16  ;;  %v5703_v31 = vrot.slane %v12003_v49, 1  ;;  %v5857_v15 = vrot.slane %v12003_v49, 2  ;;  %v6011_v25 = vrot.slane %v12003_v49, 3 }
 0x769   : > { %8888 = vmatpush3.bf16.msra.mxu0 %v9460_v9  ;;  %8895 = vmatprep.mubr.msk.bf16.mxu0 %vm9674_vm2, %v9673_v45  ;;  %v6165_v30 = vrot.slane %v12003_v49, 4  ;;  %v6319_v46 = vrot.slane %v12003_v49, 5  ;;  %v6473_v9 = vrot.slane %v12003_v49, 6 }
 0x76a   : > { %8860 = vmatmul.mubr.msk.bf16.vlgmr.msra.gmra.mrb[212].mxu1 %vm2983_vm1, %v12011_v36  ;;  %8889 = vmatprep.subr.bf16.mxu0 %v9673_v45  ;;  %v5780_v32 = vrot.slane %v12011_v36, 1  ;;  %v5934_v0 = vrot.slane %v12011_v36, 2  ;;  %v6088_v35 = vrot.slane %v12011_v36, 3  ;;  %v6242_v20 = vrot.slane %v12011_v36, 4 }
 0x76b   : > { %8876 = vmatpush3.bf16.msra.mxu1 %v9461_v2  ;;  %8883 = vmatprep.mubr.msk.bf16.mxu1 %vm9674_vm2, %v9673_v45  ;;  %v6396_v19 = vrot.slane %v12011_v36, 5  ;;  %v6550_v47 = vrot.slane %v12011_v36, 6  ;;  %v9510_v2 = vld [vmem:[%s12368_s9 + $0x1e8] sm:$0xff]  }
 0x76c   : > { %8877 = vmatprep.subr.bf16.mxu1 %v9673_v45 }
 0x76d   : > { %8890 = vmatpush3.bf16.msra.mxu0 %v9462_v8  ;;  %v9511_v8 = vld [vmem:[%s12368_s9 + $0x1c8] sm:$0xff]  }
 0x76e   : > { %8891 = vmatprep.subr.bf16.mxu0 %v9673_v45 }
 0x76f   : > { %8878 = vmatpush3.bf16.msra.mxu1 %v9463_v11  ;;  %v9512_v11 = vld [vmem:[%s12368_s9 + $0x1f0] sm:$0xff]  }
 0x770   : > { %8879 = vmatprep.subr.bf16.mxu1 %v9673_v45 }
 0x771   : > { %8892 = vmatpush3.bf16.msra.mxu0 %v9464_v44  ;;  %v9513_v44 = vld [vmem:[%s12368_s9 + $0x1d0] sm:$0xff]  }
 0x772   : > { %8893 = vmatprep.subr.bf16.mxu0 %v9673_v45 }
 0x773   : > { %8880 = vmatpush3.bf16.msra.mxu1 %v9465_v3  ;;  %v9514_v3 = vld [vmem:[%s12368_s9 + $0x1f8] sm:$0xff]  }
 0x774   : > { %8881 = vmatprep.subr.bf16.mxu1 %v9673_v45 }
 0x775   : > { %8894 = vmatpush3.bf16.msra.mxu0 %v9466_v62  ;;  %v9515_v62 = vld [vmem:[%s12368_s9 + $0x1d8] sm:$0xff]  }
 0x776   : > { %8911 = vmatprep.subr.bf16.mxu0 %v9673_v45 }
 0x777   : > { %8882 = vmatpush3.bf16.msra.mxu1 %v9467_v1  ;;  %v6704_v1 = vrot.slane %v12011_v36, 7 }
 0x778   : > { %8896 = vmatmul.mubr.msk.bf16.vlgmr.msra.gmra.mrb[224].mxu0 %vm2983_vm1, %v5780_v32  ;;  %8899 = vmatprep.subr.bf16.mxu1 %v9673_v45  ;;  %v9516_v32 = vld [vmem:[%s12370_s11] sm:$0xff]  }
 0x779   : > { %8912 = vmatpush3.bf16.msra.mxu0 %v9468_v58  ;;  %8919 = vmatprep.mubr.msk.bf16.mxu0 %vm9674_vm2, %v9673_v45  ;;  %v6627_v58 = vrot.slane %v12003_v49, 7 }
 0x77a   : > { %8884 = vmatmul.mubr.msk.bf16.vlgmr.msra.gmra.mrb[216].mxu1 %vm2983_vm1, %v5703_v31  ;;  %8913 = vmatprep.subr.bf16.mxu0 %v9673_v45 }
 0x77b   : > { %8900 = vmatpush3.bf16.msra.mxu1 %v9469_v53  ;;  %8907 = vmatprep.mubr.msk.bf16.mxu1 %vm9674_vm2, %v9673_v45  ;;  %v9517_v53 = vld [vmem:[%s12370_s11 + $0x8] sm:$0xff]  }
 0x77c   : > { %8901 = vmatprep.subr.bf16.mxu1 %v9673_v45 }
 0x77d   : > { %8914 = vmatpush3.bf16.msra.mxu0 %v9470_v42 }
 0x77e   : > { %8915 = vmatprep.subr.bf16.mxu0 %v9673_v45 }
 0x77f   : > { %8902 = vmatpush3.bf16.msra.mxu1 %v9471_v7 }
 0x780   : > { %8903 = vmatprep.subr.bf16.mxu1 %v9673_v45 }
 0x781   : > { %8916 = vmatpush3.bf16.msra.mxu0 %v9472_v56 }
 0x782   : > { %8917 = vmatprep.subr.bf16.mxu0 %v9673_v45 }
 0x783   : > { %8904 = vmatpush3.bf16.msra.mxu1 %v9473_v16 }
 0x784   : > { %8905 = vmatprep.subr.bf16.mxu1 %v9673_v45 }
 0x785   : > { %8918 = vmatpush3.bf16.msra.mxu0 %v9474_v54 }
 0x786   : > { %8935 = vmatprep.subr.bf16.mxu0 %v9673_v45 }
 0x787   : > { %8906 = vmatpush3.bf16.msra.mxu1 %v9475_v51  ;;  %v9518_v51 = vld [vmem:[%s12370_s11 + $0x10] sm:$0xff]  }
 0x788   : > { %8920 = vmatmul.mubr.msk.bf16.vlgmr.msra.gmra.mrb[228].mxu0 %vm2983_vm1, %v5934_v0  ;;  %8923 = vmatprep.subr.bf16.mxu1 %v9673_v45  ;;  %v9519_v0 = vld [vmem:[%s12370_s11 + $0x18] sm:$0xff]  }
 0x789   : > { %8936 = vmatpush3.bf16.msra.mxu0 %v9476_v48  ;;  %8943 = vmatprep.mubr.msk.bf16.mxu0 %vm9674_vm2, %v9673_v45 }
 0x78a   : > { %8908 = vmatmul.mubr.msk.bf16.vlgmr.msra.gmra.mrb[220].mxu1 %vm2983_vm1, %v5857_v15  ;;  %8937 = vmatprep.subr.bf16.mxu0 %v9673_v45 }
 0x78b   : > { %8924 = vmatpush3.bf16.msra.mxu1 %v9477_v59  ;;  %8931 = vmatprep.mubr.msk.bf16.mxu1 %vm9674_vm2, %v9673_v45 }
 0x78c   : > { %8925 = vmatprep.subr.bf16.mxu1 %v9673_v45 }
 0x78d   : > { %8938 = vmatpush3.bf16.msra.mxu0 %v9478_v24 }
 0x78e   : > { %8939 = vmatprep.subr.bf16.mxu0 %v9673_v45 }
 0x78f   : > { %8926 = vmatpush3.bf16.msra.mxu1 %v9479_v50 }
 0x790   : > { %8927 = vmatprep.subr.bf16.mxu1 %v9673_v45 }
 0x791   : > { %8940 = vmatpush3.bf16.msra.mxu0 %v9480_v37 }
 0x792   : > { %8941 = vmatprep.subr.bf16.mxu0 %v9673_v45 }
 0x793   : > { %8928 = vmatpush3.bf16.msra.mxu1 %v9481_v12 }
 0x794   : > { %8929 = vmatprep.subr.bf16.mxu1 %v9673_v45 }
 0x795   : > { %8942 = vmatpush3.bf16.msra.mxu0 %v9482_v17 }
 0x796   : > { %8959 = vmatprep.subr.bf16.mxu0 %v9673_v45 }
 0x797   : > { %8930 = vmatpush3.bf16.msra.mxu1 %v9483_v23 }
 0x798   : > { %8944 = vmatmul.mubr.msk.bf16.vlgmr.msra.gmra.mrb[232].mxu0 %vm2983_vm1, %v6088_v35  ;;  %8947 = vmatprep.subr.bf16.mxu1 %v9673_v45 }
 0x799   : > { %8960 = vmatpush3.bf16.msra.mxu0 %v9484_v29  ;;  %8967 = vmatprep.mubr.msk.bf16.mxu0 %vm9674_vm2, %v9673_v45 }
 0x79a   : > { %8932 = vmatmul.mubr.msk.bf16.vlgmr.msra.gmra.mrb[224].mxu1 %vm2983_vm1, %v6011_v25  ;;  %8961 = vmatprep.subr.bf16.mxu0 %v9673_v45 }
 0x79b   : > { %8948 = vmatpush3.bf16.msra.mxu1 %v9485_v28  ;;  %8955 = vmatprep.mubr.msk.bf16.mxu1 %vm9674_vm2, %v9673_v45 }
 0x79c   : > { %8949 = vmatprep.subr.bf16.mxu1 %v9673_v45 }
 0x79d   : > { %8962 = vmatpush3.bf16.msra.mxu0 %v9486_v40 }
 0x79e   : > { %8963 = vmatprep.subr.bf16.mxu0 %v9673_v45 }
 0x79f   : > { %8950 = vmatpush3.bf16.msra.mxu1 %v9487_v38 }
 0x7a0   : > { %8951 = vmatprep.subr.bf16.mxu1 %v9673_v45 }
 0x7a1   : > { %8964 = vmatpush3.bf16.msra.mxu0 %v9488_v57 }
 0x7a2   : > { %8965 = vmatprep.subr.bf16.mxu0 %v9673_v45 }
 0x7a3   : > { %8952 = vmatpush3.bf16.msra.mxu1 %v9489_v22 }
 0x7a4   : > { %8953 = vmatprep.subr.bf16.mxu1 %v9673_v45 }
 0x7a5   : > { %8966 = vmatpush3.bf16.msra.mxu0 %v9490_v33 }
 0x7a6   : > { %8983 = vmatprep.subr.bf16.mxu0 %v9673_v45 }
 0x7a7   : > { %8954 = vmatpush3.bf16.msra.mxu1 %v9491_v55 }
 0x7a8   : > { %8968 = vmatmul.mubr.msk.bf16.vlgmr.msra.gmra.mrb[236].mxu0 %vm2983_vm1, %v6242_v20  ;;  %8971 = vmatprep.subr.bf16.mxu1 %v9673_v45 }
 0x7a9   : > { %8984 = vmatpush3.bf16.msra.mxu0 %v9492_v14  ;;  %8991 = vmatprep.mubr.msk.bf16.mxu0 %vm9674_vm2, %v9673_v45 }
 0x7aa   : > { %8956 = vmatmul.mubr.msk.bf16.vlgmr.msra.gmra.mrb[228].mxu1 %vm2983_vm1, %v6165_v30  ;;  %8985 = vmatprep.subr.bf16.mxu0 %v9673_v45 }
 0x7ab   : > { %8972 = vmatpush3.bf16.msra.mxu1 %v9493_v27  ;;  %8979 = vmatprep.mubr.msk.bf16.mxu1 %vm9674_vm2, %v9673_v45 }
 0x7ac   : > { %8973 = vmatprep.subr.bf16.mxu1 %v9673_v45 }
 0x7ad   : > { %8986 = vmatpush3.bf16.msra.mxu0 %v9494_v43 }
 0x7ae   : > { %8987 = vmatprep.subr.bf16.mxu0 %v9673_v45 }
 0x7af   : > { %8974 = vmatpush3.bf16.msra.mxu1 %v9495_v4 }
 0x7b0   : > { %8975 = vmatprep.subr.bf16.mxu1 %v9673_v45 }
 0x7b1   : > { %8988 = vmatpush3.bf16.msra.mxu0 %v9496_v10 }
 0x7b2   : > { %8989 = vmatprep.subr.bf16.mxu0 %v9673_v45 }
 0x7b3   : > { %8976 = vmatpush3.bf16.msra.mxu1 %v9497_v39 }
 0x7b4   : > { %8977 = vmatprep.subr.bf16.mxu1 %v9673_v45 }
 0x7b5   : > { %8990 = vmatpush3.bf16.msra.mxu0 %v9498_v34 }
 0x7b6   : > { %9007 = vmatprep.subr.bf16.mxu0 %v9673_v45 }
 0x7b7   : > { %8978 = vmatpush3.bf16.msra.mxu1 %v9499_v5 }
 0x7b8   : > { %8992 = vmatmul.mubr.msk.bf16.vlgmr.msra.gmra.mrb[240].mxu0 %vm2983_vm1, %v6396_v19  ;;  %8995 = vmatprep.subr.bf16.mxu1 %v9673_v45 }
 0x7b9   : > { %9008 = vmatpush3.bf16.msra.mxu0 %v9500_v52  ;;  %9015 = vmatprep.mubr.msk.bf16.mxu0 %vm9674_vm2, %v9673_v45 }
 0x7ba   : > { %8980 = vmatmul.mubr.msk.bf16.vlgmr.msra.gmra.mrb[232].mxu1 %vm2983_vm1, %v6319_v46  ;;  %9009 = vmatprep.subr.bf16.mxu0 %v9673_v45 }
 0x7bb   : > { %8996 = vmatpush3.bf16.msra.mxu1 %v9501_v26  ;;  %9003 = vmatprep.mubr.msk.bf16.mxu1 %vm9674_vm2, %v9673_v45 }
 0x7bc   : > { %8997 = vmatprep.subr.bf16.mxu1 %v9673_v45 }
 0x7bd   : > { %9010 = vmatpush3.bf16.msra.mxu0 %v9502_v6 }
 0x7be   : > { %9011 = vmatprep.subr.bf16.mxu0 %v9673_v45 }
 0x7bf   : > { %8998 = vmatpush3.bf16.msra.mxu1 %v9503_v21 }
 0x7c0   : > { %8999 = vmatprep.subr.bf16.mxu1 %v9673_v45 }
 0x7c1   : > { %9012 = vmatpush3.bf16.msra.mxu0 %v9504_v63 }
 0x7c2   : > { %9013 = vmatprep.subr.bf16.mxu0 %v9673_v45 }
 0x7c3   : > { %9000 = vmatpush3.bf16.msra.mxu1 %v9505_v61 }
 0x7c4   : > { %9001 = vmatprep.subr.bf16.mxu1 %v9673_v45 }
 0x7c5   : > { %9014 = vmatpush3.bf16.msra.mxu0 %v9506_v60 }
 0x7c6   : > { %9031 = vmatprep.subr.bf16.mxu0 %v9673_v45 }
 0x7c7   : > { %9002 = vmatpush3.bf16.msra.mxu1 %v9507_v13 }
 0x7c8   : > { %9016 = vmatmul.mubr.msk.bf16.vlgmr.msra.gmra.mrb[244].mxu0 %vm2983_vm1, %v6550_v47  ;;  %9019 = vmatprep.subr.bf16.mxu1 %v9673_v45 }
 0x7c9   : > { %9032 = vmatpush3.bf16.msra.mxu0 %v9508_v18  ;;  %9039 = vmatprep.mubr.msk.bf16.mxu0 %vm9674_vm2, %v9673_v45 }
 0x7ca   : > { %9004 = vmatmul.mubr.msk.bf16.vlgmr.msra.gmra.mrb[236].mxu1 %vm2983_vm1, %v6473_v9  ;;  %9033 = vmatprep.subr.bf16.mxu0 %v9673_v45 }
 0x7cb   : > { %9020 = vmatpush3.bf16.msra.mxu1 %v9509_v41  ;;  %9027 = vmatprep.mubr.msk.bf16.mxu1 %vm9674_vm2, %v9673_v45 }
 0x7cc   : > { %9021 = vmatprep.subr.bf16.mxu1 %v9673_v45 }
 0x7cd   : > { %9034 = vmatpush3.bf16.msra.mxu0 %v9510_v2 }
 0x7ce   : > { %9035 = vmatprep.subr.bf16.mxu0 %v9673_v45 }
 0x7cf   : > { %9022 = vmatpush3.bf16.msra.mxu1 %v9511_v8 }
 0x7d0   : > { %9023 = vmatprep.subr.bf16.mxu1 %v9673_v45 }
 0x7d1   : > { %9036 = vmatpush3.bf16.msra.mxu0 %v9512_v11 }
 0x7d2   : > { %9037 = vmatprep.subr.bf16.mxu0 %v9673_v45 }
 0x7d3   : > { %9024 = vmatpush3.bf16.msra.mxu1 %v9513_v44 }
 0x7d4   : > { %9025 = vmatprep.subr.bf16.mxu1 %v9673_v45 }
 0x7d5   : > { %9038 = vmatpush3.bf16.msra.mxu0 %v9514_v3 }
 0x7d7   : > { %9026 = vmatpush3.bf16.msra.mxu1 %v9515_v62 }
 0x7d8   : > { %9040 = vmatmul.mubr.msk.bf16.vlgmr.msra.gmra.mrb[248].mxu0 %vm2983_vm1, %v6704_v1  ;;  %9043 = vmatprep.subr.bf16.mxu1 %v9673_v45 }
 0x7da   : > { %9028 = vmatmul.mubr.msk.bf16.vlgmr.msra.gmra.mrb[240].mxu1 %vm2983_vm1, %v6627_v58 }
 0x7db   : > { %9051 = vmatprep.mubr.msk.bf16.mxu1 %vm9674_vm2, %v9673_v45  ;;  %9044 = vmatpush3.bf16.msra.mxu1 %v9516_v32 }
 0x7dc   : > { %9045 = vmatprep.subr.bf16.mxu1 %v9673_v45 }
 0x7df   : > { %9046 = vmatpush3.bf16.msra.mxu1 %v9517_v53 }
 0x7e0   : > { %9047 = vmatprep.subr.bf16.mxu1 %v9673_v45 }
 0x7e3   : > { %9048 = vmatpush3.bf16.msra.mxu1 %v9518_v51 }
 0x7e4   : > { %9049 = vmatprep.subr.bf16.mxu1 %v9673_v45 }
 0x7e7   : > { %9050 = vmatpush3.bf16.msra.mxu1 %v9519_v0 }
 0x83b   : > { %v5688_v36 = vpop.f32.mrb[220].mxu0 }
 0x83c   : > { %v8873_v49 = vpop.f32.mrb[221].mxu0 }
 0x83d   : > { %v5622_v31 = vpop.f32.mrb[212].mxu1  ;;  %v5691_v42 = vpop.f32.mrb[222].mxu0 }
 0x83e   : > { %v5689_v7 = vadd.f32 %v5688_v36, %v5622_v31  ;;  %v8861_v56 = vpop.f32.mrb[213].mxu1  ;;  %v8874_v16 = vpop.f32.mrb[223].mxu0 }
 0x83f   : > { %v5625_v54 = vpop.f32.mrb[214].mxu1 }
 0x840   : > { %v8862_v48 = vpop.f32.mrb[215].mxu1 }
 0x84b   : > { %v5842_v59 = vpop.f32.mrb[224].mxu0 }
 0x84c   : > { %v8897_v15 = vpop.f32.mrb[225].mxu0 }
 0x84d   : > { %v5765_v24 = vpop.f32.mrb[216].mxu1  ;;  %v5845_v50 = vpop.f32.mrb[226].mxu0 }
 0x84e   : > { %v5771_v37 = vadd.f32 %v5765_v24, %v5689_v7  ;;  %v8885_v12 = vpop.f32.mrb[217].mxu1  ;;  %v8898_v17 = vpop.f32.mrb[227].mxu0  ;;  %v6773_v50 = vld [vmem:[%s12369_s10] sm:$0x1] }
 0x84f   : > { %v5768_v23 = vpop.f32.mrb[218].mxu1 }
 0x850   : > { %v8886_v29 = vpop.f32.mrb[219].mxu1  ;;  %v5848_v35 = vadd.f32 %v5842_v59, %v5771_v37 }
 0x85b   : > { %v5996_v28 = vpop.f32.mrb[228].mxu0 }
 0x85c   : > { %v8921_v25 = vpop.f32.mrb[229].mxu0 }
 0x85d   : > { %v5919_v40 = vpop.f32.mrb[220].mxu1  ;;  %v5999_v38 = vpop.f32.mrb[230].mxu0 }
 0x85e   : > { %v5925_v45 = vadd.f32 %v5919_v40, %v5848_v35  ;;  %v8909_v57 = vpop.f32.mrb[221].mxu1  ;;  %v8922_v22 = vpop.f32.mrb[231].mxu0 }
 0x85f   : > { %v5922_v33 = vpop.f32.mrb[222].mxu1 }
 0x860   : > { %v8910_v55 = vpop.f32.mrb[223].mxu1  ;;  %v6002_v14 = vadd.f32 %v5996_v28, %v5925_v45  ;;  %v6790_v45 = vld [vmem:[%s12371_s12] sm:$0x1] }
 0x86b   : > { %v6150_v20 = vpop.f32.mrb[232].mxu0 }
 0x86c   : > { %v8945_v27 = vpop.f32.mrb[233].mxu0 }
 0x86d   : > { %v6073_v30 = vpop.f32.mrb[224].mxu1  ;;  %v6153_v43 = vpop.f32.mrb[234].mxu0 }
 0x86e   : > { %v6079_v4 = vadd.f32 %v6073_v30, %v6002_v14  ;;  %v8933_v10 = vpop.f32.mrb[225].mxu1  ;;  %v8946_v39 = vpop.f32.mrb[235].mxu0 }
 0x86f   : > { %v6076_v34 = vpop.f32.mrb[226].mxu1 }
 0x870   : > { %v8934_v5 = vpop.f32.mrb[227].mxu1  ;;  %v6156_v52 = vadd.f32 %v6150_v20, %v6079_v4 }
 0x87b   : > { %v6304_v19 = vpop.f32.mrb[236].mxu0 }
 0x87c   : > { %v8969_v26 = vpop.f32.mrb[237].mxu0 }
 0x87d   : > { %v6227_v46 = vpop.f32.mrb[228].mxu1  ;;  %v6307_v6 = vpop.f32.mrb[238].mxu0 }
 0x87e   : > { %v6233_v21 = vadd.f32 %v6227_v46, %v6156_v52  ;;  %v8957_v63 = vpop.f32.mrb[229].mxu1  ;;  %v8970_v61 = vpop.f32.mrb[239].mxu0 }
 0x87f   : > { %v6230_v60 = vpop.f32.mrb[230].mxu1 }
 0x880   : > { %v8958_v13 = vpop.f32.mrb[231].mxu1  ;;  %v6310_v18 = vadd.f32 %v6304_v19, %v6233_v21 }
 0x88b   : > { %v6458_v47 = vpop.f32.mrb[240].mxu0 }
 0x88c   : > { %v8993_v41 = vpop.f32.mrb[241].mxu0 }
 0x88d   : > { %v6381_v9 = vpop.f32.mrb[232].mxu1  ;;  %v6461_v2 = vpop.f32.mrb[242].mxu0 }
 0x88e   : > { %v6387_v8 = vadd.f32 %v6381_v9, %v6310_v18  ;;  %v8981_v11 = vpop.f32.mrb[233].mxu1  ;;  %v8994_v44 = vpop.f32.mrb[243].mxu0 }
 0x88f   : > { %v6384_v3 = vpop.f32.mrb[234].mxu1 }
 0x890   : > { %v8982_v62 = vpop.f32.mrb[235].mxu1  ;;  %v6464_v1 = vadd.f32 %v6458_v47, %v6387_v8 }
 0x89b   : > { %v6612_v58 = vpop.f32.mrb[244].mxu0 }
 0x89c   : > { %v9017_v32 = vpop.f32.mrb[245].mxu0 }
 0x89d   : > { %v6535_v36 = vpop.f32.mrb[236].mxu1  ;;  %v6615_v53 = vpop.f32.mrb[246].mxu0 }
 0x89e   : > { %v6541_v49 = vadd.f32 %v6535_v36, %v6464_v1  ;;  %v9005_v31 = vpop.f32.mrb[237].mxu1  ;;  %v9018_v42 = vpop.f32.mrb[247].mxu0 }
 0x89f   : > { %v6538_v7 = vpop.f32.mrb[238].mxu1 }
 0x8a0   : > { %v9006_v56 = vpop.f32.mrb[239].mxu1  ;;  %v6618_v16 = vadd.f32 %v6612_v58, %v6541_v49 }
 0x8ab   : > { %v6766_v54 = vpop.f32.mrb[248].mxu0 }
 0x8ac   : > { %v9041_v51 = vpop.f32.mrb[249].mxu0 }
 0x8ad   : > { %v6689_v48 = vpop.f32.mrb[240].mxu1  ;;  %v6769_v0 = vpop.f32.mrb[250].mxu0 }
 0x8ae   : > { %v6695_v59 = vadd.f32 %v6689_v48, %v6618_v16  ;;  %v9029_v15 = vpop.f32.mrb[241].mxu1  ;;  %v9042_v24 = vpop.f32.mrb[251].mxu0 }
 0x8af   : > { %v6692_v37 = vpop.f32.mrb[242].mxu1 }
 0x8b0   : > { %v6772_v12 = vadd.f32 %v6766_v54, %v6695_v59  ;;  %v9030_v17 = vpop.f32.mrb[243].mxu1 }
 0x8b2   : > { %v6774_v23 = vadd.f32 %v6773_v50, %v6772_v12 }
 0x8b4   : > { %v6776_v29 = vmin.f32 %v6774_v23, 0.0  ;;  %vm6775_vm13 = vcmp.gt.f32.partialorder %v6774_v23, 0.0 }
 0x8b6   : > { %v6777_v35 = vmul.f32 1.442695, %v6776_v29 }
 0x8b8   : > { %9604 = vpow2.f32 %v6777_v35 }
 0x8c2   : > { %v9605_v28 = vpop.eup %9604 }
 0x8c3   : > { %v7538_v25 = vadd.f32 -1.0, %v9605_v28 }
 0x8c5   : > { %v6780_v40 = vsel %vm6775_vm13, %v6774_v23, %v7538_v25 }
 0x8c6   : > { %v6781_v38 = vpack.c.bf16 %v6780_v40, %v6780_v40 }
 0x8c8   : > { %9052 = vmatmul.mubr.msk.bf16.vlgmr.msra.gmra.mrb[244].mxu1 %vm2983_vm1, %v6781_v38 }
 0x99b   : > { %v6852_v57 = vpop.f32.mrb[244].mxu1 }
 0x99c   : > { %v6853_v22 = vadd.f32 %v6852_v57, %v6790_v45  ;;  %v9053_v33 = vpop.f32.mrb[245].mxu1 }
 0x99d   : > { %v6855_v55 = vpop.f32.mrb[246].mxu1 }
 0x99e   : > { %v6859_v14 = vmin.f32 %v6853_v22, 0.0  ;;  %v9054_v20 = vpop.f32.mrb[247].mxu1  ;;  %vm6858_vm15 = vcmp.gt.f32.partialorder %v6853_v22, 0.0 }
 0x9a0   : > { %v6860_v27 = vmul.f32 1.442695, %v6859_v14 }
 0x9a2   : > { %9606 = vpow2.f32 %v6860_v27 }
 0x9ac   : > { %v9607_v30 = vpop.eup %9606 }
 0x9ad   : > { %v7544_v43 = vadd.f32 -1.0, %v9607_v30 }
 0x9af   : > { %v6863_v4 = vsel %vm6858_vm15, %v6853_v22, %v7544_v43 }
 0x9b0   : > { %6865 = vst.msk [vmem:[%s432_s16] sm:$0x1] %vm6864_vm14, %v6863_v4 }
 0x9b1   : > { %9621 = shalt.err (!%p9618_p3)
}
 0x9b2   : > { %s9622_s21 = scalar_lea.hbm %s12317_s30, 16  ;;  %s9626_s23 = scalar_lea.hbm %s12372_s13, 32 }
 0x9b3   : > { %p9623_p4 = scmp.ne.s32.totalorder %s12317_s30, %s9622_s21  ;;  %p9627_p9 = scmp.lt.u32.totalorder %s12317_s30, %s12372_s13 }
 0x9b4   : > { %p9628_p10 = scmp.lt.u32.totalorder %s9626_s23, %s9622_s21  ;;  %p9630_p12 = scmp.lt.u32.totalorder %s9622_s21, %s12317_s30 }
 0x9b5   : > { %p9624_p7 = pnand %p9623_p4, %p9784_p5 }
 0x9b6   : > { %p9629_p11 = por %p9628_p10, %p9627_p9 }
 0x9b7   : > { %p9625_p8 = pneg %p9624_p7 }
 0x9b8   : > { %p9631_p13 = por %p9630_p12, %p9629_p11 }
 0x9ba   : > { %p9632_p0 = pnand %p9631_p13, %p9625_p8 }
 0x9bc   : > { %9635 = shalt.err (!%p9632_p0)
}
 0x9bd   : > { %9055 = dma.vmem_to_hbm [thread:$0]  (%p9784_p5), %s12319_s22, 16, %s12317_s30, %s6867_s15  }
 0x9be PF: > { %p9061_p1 = scmp.ge.s32.totalorder %s9670_s28, 2  ;;  %s6891_s0 = sand.u32 1, %s9658_s25  }
 0x9bf   : > { %s6892_s29 = scalar_lea.sflag [#allocation3], %s6891_s0 }
 0x9c0   : > { %p9058_p2 = pnand %p9061_p1, %p9788_p6 }
 0x9c2   : > { %9653 = dma.done.wait (!%p9058_p2), %s6892_s29, 16  }
 0x9c3   : > { %9655 = vsyncadd (!%p9058_p2), %s6892_s29, 4294967280  ;;  %s12468_s17 = sld [smem:[#allocation5_spill]]  ;;  %s12469_s27 = sld [smem:[#allocation6_spill]] }
 0x9c4   : > { %p23_p3 = scmp.ge.s32.totalorder %s9771_s14, 4   ;;  %s12470_s25 = smov %s9662_s26 }
 0x9c5   : > { %s12472_s28 = smov %s9771_s14 }
 0x9c6   :  { %25 = sbr.rel (!%p23_p3) target bundleno = 5 (0x5), region = 137 }
 0x9c9   : > { %s12471_s26 = smov %s12468_s17 }
 0x9cd   :  { %6896 = vsyncpa [#allocation3], 1 }
 0x9ce   :  { %6898 = vsyncpa [#allocation3 + $0x1], 1 }

</bundles_post_ra>
